<compile_context>
chip_gen: v5e
topology: v5e:2x2
jax: 0.10.0
libtpu: 0.0.40
codegen_flags: <defaults>
</compile_context>

<pallas_src>
import jax
import jax.numpy as jnp
from jax.experimental import pallas as pl
from jax.experimental.pallas import tpu as pltpu


def _linkpred_kernel(zs_ref, zd_ref, ws_ref, wd_ref, aux_ref, o_ref):
    # Two small MXU GEMMs directly on the streamed activation tiles.
    # (Default matmul precision; f32 accumulate via preferred_element_type.)
    h = jnp.dot(zs_ref[...], ws_ref[...], preferred_element_type=jnp.float32)
    h = h + jnp.dot(zd_ref[...], wd_ref[...], preferred_element_type=jnp.float32)
    # Fused hidden bias (b_src + b_dst) + ReLU on the VPU.
    h = jnp.maximum(h + aux_ref[0:1, :], 0.0)
    # Final C -> 1 projection: multiply + lane reduce (XLU slot), + b_final.
    out = jnp.sum(h * aux_ref[1:2, :], axis=-1)                 # (tm,)
    # Lane-dense (1, tm) store -> unmasked vector stores.
    o_ref[...] = (out[None, :] + aux_ref[2:3, 0:1]).astype(o_ref.dtype)


def _pick_row_tile(N):
    """grid=1 on single-TC chips; an even 'parallel' grid on dual-TC v7x."""
    try:
        kind = jax.devices()[0].device_kind.lower()
        dual_tc = "v7" in kind
    except Exception:  # pragma: no cover - conservative fallback
        dual_tc = False
    if dual_tc and N % 256 == 0:
        return N // 2          # 2 parallel grid steps -> both TensorCores busy
    return N                   # single TC: one big step, no per-step overhead


def link_predictor(z_src, z_dst, params, *, tm=None):
    """params = (w_src, b_src, w_dst, b_dst, w_fin, b_fin); weights are stored
    pre-transposed to (in, out) so the kernel computes plain `x @ W`."""
    w_src, b_src, w_dst, b_dst, w_fin, b_fin = params
    N, C = z_src.shape

    if tm is None:
        tm = _pick_row_tile(N)
    tm = min(tm, N)
    assert N % tm == 0, "batch must be divisible by the row tile"
    assert (tm % 8 == 0) or (tm == N), "row tile must be sublane aligned"
    assert (tm % 128 == 0) or (tm == N), "row tile should be lane-dense"
    # TODO(synk): ragged / non-tileable N would need a pad-and-mask path.

    # Tiny (3, C) operand, packed once: [b_src + b_dst ; w_fin^T ; b_fin].
    aux = jnp.concatenate(
        [(b_src + b_dst).reshape(1, C),
         w_fin.reshape(1, C),
         jnp.broadcast_to(b_fin.reshape(1, 1), (1, C))], axis=0)

    grid = (N // tm,)
    out_slab = pl.pallas_call(
        _linkpred_kernel,
        out_shape=jax.ShapeDtypeStruct((1, N), z_src.dtype),
        grid_spec=pltpu.PrefetchScalarGridSpec(
            num_scalar_prefetch=0,
            grid=grid,
            in_specs=[
                pl.BlockSpec((tm, C), lambda i: (i, 0)),    # z_src tile
                pl.BlockSpec((tm, C), lambda i: (i, 0)),    # z_dst tile
                pl.BlockSpec((C, C), lambda i: (0, 0)),     # W_src (resident)
                pl.BlockSpec((C, C), lambda i: (0, 0)),     # W_dst (resident)
                pl.BlockSpec((3, C), lambda i: (0, 0)),     # [b_h; w_fin; b_fin]
            ],
            out_specs=pl.BlockSpec((1, tm), lambda i: (0, i)),  # lane-dense slab
        ),
        compiler_params=pltpu.CompilerParams(
            dimension_semantics=("parallel",)),
    )(z_src, z_dst, w_src, w_dst, aux)

    # (1, N) slab -> (N, 1) column; row-major order is identical, so this is
    # a free metadata reshape (no standalone elementwise epilogue anymore).
    return out_slab.reshape(N, 1)


def _init_linear(key, in_ch, out_ch):
    # Deterministic PyTorch-style init: U(-1/sqrt(in), 1/sqrt(in)).
    k_w, k_b = jax.random.split(key)
    bound = 1.0 / jnp.sqrt(jnp.float32(in_ch))
    # Store weight transposed: (in, out).
    w = jax.random.uniform(k_w, (in_ch, out_ch), jnp.float32, -bound, bound)
    b = jax.random.uniform(k_b, (1, out_ch), jnp.float32, -bound, bound)
    return w, b


if __name__ == "__main__":
    key = jax.random.PRNGKey(0)
    N, C = 512, 32   # node-pair embeddings, in_channels=32

    k_zs, k_zd, k1, k2, k3 = jax.random.split(key, 5)
    z_src = jax.random.normal(k_zs, (N, C), jnp.float32)
    z_dst = jax.random.normal(k_zd, (N, C), jnp.float32)

    w_src, b_src = _init_linear(k1, C, C)
    w_dst, b_dst = _init_linear(k2, C, C)
    w_fin, b_fin = _init_linear(k3, C, 1)
    params = (w_src, b_src, w_dst, b_dst, w_fin, b_fin)

    # Single jit region: the aux packing, pallas_call, and reshape fuse into
    # one launch region (no standalone concat/add ops over HBM).
    run = jax.jit(link_predictor)
    out = jax.block_until_ready(run(z_src, z_dst, params))

    # Pure-JAX reference for correctness (original, unfused formulation).
    h_ref = jnp.maximum(z_src @ w_src + b_src + z_dst @ w_dst + b_dst, 0.0)
    ref = h_ref @ w_fin + b_fin
    assert out.shape == (N, 1)
    assert jnp.allclose(out, ref, atol=1e-5, rtol=1e-5)

    print("KERNEL_OK")
</pallas_src>

<mosaic_0001>
module attributes {stable_mosaic.version = 11 : i64} {
  func.func @_linkpred_kernel(%arg0: i32, %arg1: memref<512x32xf32, #tpu.memory_space<vmem>>, %arg2: memref<512x32xf32, #tpu.memory_space<vmem>>, %arg3: memref<32x32xf32, #tpu.memory_space<vmem>>, %arg4: memref<32x32xf32, #tpu.memory_space<vmem>>, %arg5: memref<3x32xf32, #tpu.memory_space<vmem>>, %arg6: memref<1x512xf32, #tpu.memory_space<vmem>>) attributes {dimension_semantics = [#tpu.dimension_semantics<parallel>], iteration_bounds = array<i64: 1>, scalar_prefetch = 0 : i64, scratch_operands = 0 : i64, tpu.core_type = #tpu.core_type<tc>, window_params = [{transform_indices = @transform_0, window_bounds = array<i64: 512, 32>}, {transform_indices = @transform_1, window_bounds = array<i64: 512, 32>}, {pipeline_mode = #tpu.pipeline_mode<synchronous>, transform_indices = @transform_2, window_bounds = array<i64: 32, 32>}, {pipeline_mode = #tpu.pipeline_mode<synchronous>, transform_indices = @transform_3, window_bounds = array<i64: 32, 32>}, {pipeline_mode = #tpu.pipeline_mode<synchronous>, transform_indices = @transform_4, window_bounds = array<i64: 3, 32>}, {transform_indices = @transform_5, window_bounds = array<i64: 1, 512>}]} {
    %c0 = arith.constant 0 : index
    %c0_0 = arith.constant 0 : index
    %0 = vector.load %arg1[%c0, %c0_0] : memref<512x32xf32, #tpu.memory_space<vmem>>, vector<512x32xf32>
    %c0_1 = arith.constant 0 : index
    %c0_2 = arith.constant 0 : index
    %1 = vector.load %arg3[%c0_1, %c0_2] : memref<32x32xf32, #tpu.memory_space<vmem>>, vector<32x32xf32>
    %cst = arith.constant dense<0.000000e+00> : vector<512x32xf32>
    %2 = tpu.matmul %0, %1, %cst {dimension_numbers = #tpu.dot_dimension_numbers<[1], [0], [0], [1], [0, 0, 1, 1], [], []>} : vector<512x32xf32>, vector<32x32xf32>, vector<512x32xf32> -> vector<512x32xf32>
    %c0_3 = arith.constant 0 : index
    %c0_4 = arith.constant 0 : index
    %3 = vector.load %arg2[%c0_3, %c0_4] : memref<512x32xf32, #tpu.memory_space<vmem>>, vector<512x32xf32>
    %c0_5 = arith.constant 0 : index
    %c0_6 = arith.constant 0 : index
    %4 = vector.load %arg4[%c0_5, %c0_6] : memref<32x32xf32, #tpu.memory_space<vmem>>, vector<32x32xf32>
    %cst_7 = arith.constant dense<0.000000e+00> : vector<512x32xf32>
    %5 = tpu.matmul %3, %4, %cst_7 {dimension_numbers = #tpu.dot_dimension_numbers<[1], [0], [0], [1], [0, 0, 1, 1], [], []>} : vector<512x32xf32>, vector<32x32xf32>, vector<512x32xf32> -> vector<512x32xf32>
    %6 = arith.addf %2, %5 : vector<512x32xf32>
    %c0_8 = arith.constant 0 : index
    %c0_9 = arith.constant 0 : index
    %7 = vector.load %arg5[%c0_8, %c0_9] : memref<3x32xf32, #tpu.memory_space<vmem>>, vector<1x32xf32>
    %8 = vector.broadcast %7 : vector<1x32xf32> to vector<512x32xf32>
    %9 = arith.addf %6, %8 : vector<512x32xf32>
    %cst_10 = arith.constant 0.000000e+00 : f32
    %10 = vector.broadcast %cst_10 : f32 to vector<512x32xf32>
    %11 = arith.maximumf %9, %10 : vector<512x32xf32>
    %c1 = arith.constant 1 : index
    %c0_11 = arith.constant 0 : index
    %12 = vector.load %arg5[%c1, %c0_11] : memref<3x32xf32, #tpu.memory_space<vmem>>, vector<1x32xf32>
    %13 = vector.broadcast %12 : vector<1x32xf32> to vector<512x32xf32>
    %14 = arith.mulf %11, %13 : vector<512x32xf32>
    %cst_12 = arith.constant dense<0.000000e+00> : vector<512xf32>
    %15 = vector.multi_reduction <add>, %14, %cst_12 [1] : vector<512x32xf32> to vector<512xf32>
    %16 = vector.shape_cast %15 : vector<512xf32> to vector<1x512xf32>
    %c2 = arith.constant 2 : index
    %c0_13 = arith.constant 0 : index
    %17 = vector.load %arg5[%c2, %c0_13] : memref<3x32xf32, #tpu.memory_space<vmem>>, vector<1x1xf32>
    %18 = vector.broadcast %17 : vector<1x1xf32> to vector<1x512xf32>
    %19 = arith.addf %16, %18 : vector<1x512xf32>
    %c0_14 = arith.constant 0 : index
    %c0_15 = arith.constant 0 : index
    %20 = vector.load %arg6[%c0_14, %c0_15] : memref<1x512xf32, #tpu.memory_space<vmem>>, vector<1x512xf32>
    tpu.vector_store %arg6[%c0_14, %c0_15], %19 {strides = array<i32>} : memref<1x512xf32, #tpu.memory_space<vmem>>, vector<1x512xf32>,
    return
  }
  func.func @transform_0(%arg0: i32) -> (i32, i32) {
    %c0_i32 = arith.constant 0 : i32
    %c0_i32_0 = arith.constant 0 : i32
    return %arg0, %c0_i32 : i32, i32
  }
  func.func @transform_1(%arg0: i32) -> (i32, i32) {
    %c0_i32 = arith.constant 0 : i32
    %c0_i32_0 = arith.constant 0 : i32
    return %arg0, %c0_i32 : i32, i32
  }
  func.func @transform_2(%arg0: i32) -> (i32, i32) {
    %c0_i32 = arith.constant 0 : i32
    %c0_i32_0 = arith.constant 0 : i32
    %c0_i32_1 = arith.constant 0 : i32
    return %c0_i32, %c0_i32_0 : i32, i32
  }
  func.func @transform_3(%arg0: i32) -> (i32, i32) {
    %c0_i32 = arith.constant 0 : i32
    %c0_i32_0 = arith.constant 0 : i32
    %c0_i32_1 = arith.constant 0 : i32
    return %c0_i32, %c0_i32_0 : i32, i32
  }
  func.func @transform_4(%arg0: i32) -> (i32, i32) {
    %c0_i32 = arith.constant 0 : i32
    %c0_i32_0 = arith.constant 0 : i32
    %c0_i32_1 = arith.constant 0 : i32
    return %c0_i32, %c0_i32_0 : i32, i32
  }
  func.func @transform_5(%arg0: i32) -> (i32, i32) {
    %c0_i32 = arith.constant 0 : i32
    %c0_i32_0 = arith.constant 0 : i32
    return %c0_i32, %arg0 : i32, i32
  }
}

</mosaic_0001>

<bundles_post_ra>
// kernel: link_predictor.1
= control target key start
LH: loop header
LB: loop body
LE: loop exit
PB: predicated region body
PF: predicated region fallthrough
CT: control target
= control target key end

     0   :  { %vm157_vm0 = vcmask 261120   ;;  %s4452_s0 = inlined_call_operand.vmem [shape: f32[512,32], index: 0, kind: input, shape index: {}]   ;;  %s4453_s1 = inlined_call_operand.vmem [shape: f32[512,32], index: 1, kind: input, shape index: {}]   ;;  %s4454_s2 = inlined_call_operand.vmem [shape: f32[32,32], index: 2, kind: input, shape index: {}]   ;;  %s4455_s3 = inlined_call_operand.vmem [shape: f32[32,32], index: 3, kind: input, shape index: {}]   ;;  %s4456_s4 = inlined_call_operand.vmem [shape: f32[3,32], index: 4, kind: input, shape index: {}]   ;;  %s4457_s5 = inlined_call_operand.hbm [shape: f32[1,512], index: 5, kind: output, shape index: {}]  }
   0x1   :  { %v156_v0 = vld [vmem:[%s4455_s3 + $0x18] sm:$0xff]  ;;  %v155_v2 = vld [vmem:[%s4455_s3 + $0x10] sm:$0xff]  ;;  %v154_v4 = vld [vmem:[%s4455_s3 + $0x8] sm:$0xff] }
   0x2   :  { %v88_v1 = vld [vmem:[%s4454_s2 + $0x18] sm:$0xff]  ;;  %362 = vmatpush.msra.mxu0 %v156_v0  ;;  %v87_v3 = vld [vmem:[%s4454_s2 + $0x10] sm:$0xff]  ;;  %v86_v5 = vld [vmem:[%s4454_s2 + $0x8] sm:$0xff]  ;;  %3021 = vmatpush.msra.mxu2 %v156_v0 }
   0x3   :  { %763 = vmatpush.msra.mxu1 %v88_v1  ;;  %3025 = vmatpush.msra.mxu3 %v88_v1  ;;  %v153_v6 = vld [vmem:[%s4455_s3] sm:$0xff] }
   0x4   :  { %363 = vmatpush.msra.mxu0 %v155_v2  ;;  %v85_v7 = vld [vmem:[%s4454_s2] sm:$0xff]  ;;  %3022 = vmatpush.msra.mxu2 %v155_v2 }
   0x5   :  { %764 = vmatpush.msra.mxu1 %v87_v3  ;;  %3026 = vmatpush.msra.mxu3 %v87_v3  ;;  %v89_v8 = vld [vmem:[%s4453_s1] sm:$0xff] }
   0x6   :  { %364 = vmatpush.msra.mxu0 %v154_v4  ;;  %v21_v9 = vld [vmem:[%s4452_s0] sm:$0xff]  ;;  %3023 = vmatpush.msra.mxu2 %v154_v4 }
   0x7   :  { %765 = vmatpush.msra.mxu1 %v86_v5  ;;  %3027 = vmatpush.msra.mxu3 %v86_v5 }
   0x8   :  { %10 = vsyncpa [#allocation3], 0  ;;  %365 = vmatpush.msra.mxu0 %v153_v6  ;;  %3024 = vmatpush.msra.mxu2 %v153_v6  ;;  %v90_v10 = vld [vmem:[%s4453_s1 + $0x8] sm:$0xff]  ;;  %v91_v12 = vld [vmem:[%s4453_s1 + $0x10] sm:$0xff]  ;;  %v3066_v31 = vmov 0   ;;  %vm2711_vm1 = vcmask 130112  }
   0x9   :  { %766 = vmatpush.msra.mxu1 %v85_v7  ;;  %2893 = vmatmul.msk.f32.vlgmr.msra.gmra.mxu0 %vm157_vm0, %v89_v8  ;;  %v22_v11 = vld [vmem:[%s4452_s0 + $0x8] sm:$0xff]  ;;  %v23_v13 = vld [vmem:[%s4452_s0 + $0x10] sm:$0xff]  ;;  %v92_v14 = vld [vmem:[%s4453_s1 + $0x18] sm:$0xff]  ;;  %vm2715_vm2 = vcmask 195712   ;;  %vm2719_vm3 = vcmask 261312   ;;  %vm2723_vm4 = vcmask 326912  }
   0xa   :  { %2957 = vmatmul.msk.f32.vlgmr.msra.gmra.mxu1 %vm157_vm0, %v21_v9  ;;  %3028 = vmatpush.msra.mxu3 %v85_v7  ;;  %v24_v15 = vld [vmem:[%s4452_s0 + $0x18] sm:$0xff]  ;;  %v93_v16 = vld [vmem:[%s4453_s1 + $0x20] sm:$0xff]  ;;  %v94_v18 = vld [vmem:[%s4453_s1 + $0x28] sm:$0xff]  ;;  %vm2727_vm5 = vcmask 392512   ;;  %vm2731_vm6 = vcmask 458112   ;;  %vm2735_vm7 = vcmask 523712  }
   0xb   :  { %v25_v17 = vld [vmem:[%s4452_s0 + $0x20] sm:$0xff]  ;;  %v26_v19 = vld [vmem:[%s4452_s0 + $0x28] sm:$0xff]  ;;  %v95_v22 = vld [vmem:[%s4453_s1 + $0x30] sm:$0xff]  ;;  %3031 = vset.pattern.permute.xlu0 %v3066_v31  ;;  %3033 = vset.pattern.permute.xlu2 %v3066_v31  ;;  %vm2739_vm8 = vcmask 589312   ;;  %vm2743_vm9 = vcmask 654912   ;;  %vm2747_vm10 = vcmask 720512  }
   0xc   :  { %v121_v20 = vld [vmem:[%s4453_s1 + $0x100] sm:$0xff]  ;;  %v27_v23 = vld [vmem:[%s4452_s0 + $0x30] sm:$0xff]  ;;  %v122_v24 = vld [vmem:[%s4453_s1 + $0x108] sm:$0xff]  ;;  %3032 = vset.pattern.permute.xlu1 %v3066_v31  ;;  %vm2751_vm11 = vcmask 786112   ;;  %vm2755_vm12 = vcmask 851712   ;;  %vm2759_vm13 = vcmask 917312  }
   0xd   :  { %v53_v21 = vld [vmem:[%s4452_s0 + $0x100] sm:$0xff]  ;;  %2925 = vmatmul.msk.f32.vlgmr.msra.gmra.mxu2 %vm157_vm0, %v121_v20  ;;  %v54_v25 = vld [vmem:[%s4452_s0 + $0x108] sm:$0xff]  ;;  %v96_v26 = vld [vmem:[%s4453_s1 + $0x38] sm:$0xff]  ;;  %vm2763_vm14 = vcmask 982912   ;;  %vm2767_vm15 = vcmask 1048512   ;;  %s2884_s10 = sshll.u32 %s4457_s5, 4  ;;  %s2885_s10 = int_to_ptr.hbm [resolvable:$true] %s2884_s10 }
   0xe   :  { %2989 = vmatmul.msk.f32.vlgmr.msra.gmra.mxu3 %vm157_vm0, %v53_v21  ;;  %v28_v27 = vld [vmem:[%s4452_s0 + $0x38] sm:$0xff]  ;;  %v123_v28 = vld [vmem:[%s4453_s1 + $0x110] sm:$0xff]  ;;  %v1348_v30 = vld [vmem:[%s4456_s4 + $0x2] sm:$0x1] }
   0xf   :  { %v55_v29 = vld [vmem:[%s4452_s0 + $0x110] sm:$0xff]  ;;  %1351 = vperm.xlu0 %3031, %v1348_v30   ;;  %v97_v32 = vld [vmem:[%s4453_s1 + $0x40] sm:$0xff]  ;;  %v124_v34 = vld [vmem:[%s4453_s1 + $0x118] sm:$0xff] }
  0x10   :  { %v29_v33 = vld [vmem:[%s4452_s0 + $0x40] sm:$0xff]  ;;  %v56_v35 = vld [vmem:[%s4452_s0 + $0x118] sm:$0xff]  ;;  %v98_v36 = vld [vmem:[%s4453_s1 + $0x48] sm:$0xff] }
  0x11   :  { %2894 = vmatmul.msk.f32.gmra.mxu0 %vm157_vm0, %v90_v10  ;;  %v30_v37 = vld [vmem:[%s4452_s0 + $0x48] sm:$0xff]  ;;  %v125_v38 = vld [vmem:[%s4453_s1 + $0x120] sm:$0xff]  ;;  %v99_v40 = vld [vmem:[%s4453_s1 + $0x50] sm:$0xff] }
  0x12   :  { %2958 = vmatmul.msk.f32.gmra.mxu1 %vm157_vm0, %v22_v11  ;;  %v57_v39 = vld [vmem:[%s4452_s0 + $0x120] sm:$0xff]  ;;  %v31_v41 = vld [vmem:[%s4452_s0 + $0x50] sm:$0xff]  ;;  %v126_v42 = vld [vmem:[%s4453_s1 + $0x128] sm:$0xff] }
  0x13   :  { %v58_v43 = vld [vmem:[%s4452_s0 + $0x128] sm:$0xff]  ;;  %v100_v44 = vld [vmem:[%s4453_s1 + $0x58] sm:$0xff]  ;;  %v127_v46 = vld [vmem:[%s4453_s1 + $0x130] sm:$0xff] }
  0x14   :  { %v32_v45 = vld [vmem:[%s4452_s0 + $0x58] sm:$0xff]  ;;  %v59_v47 = vld [vmem:[%s4452_s0 + $0x130] sm:$0xff]  ;;  %v101_v48 = vld [vmem:[%s4453_s1 + $0x60] sm:$0xff] }
  0x15   :  { %2926 = vmatmul.msk.f32.gmra.mxu2 %vm157_vm0, %v122_v24  ;;  %v33_v49 = vld [vmem:[%s4452_s0 + $0x60] sm:$0xff]  ;;  %v128_v50 = vld [vmem:[%s4453_s1 + $0x138] sm:$0xff]  ;;  %v102_v52 = vld [vmem:[%s4453_s1 + $0x68] sm:$0xff] }
  0x16   :  { %2990 = vmatmul.msk.f32.gmra.mxu3 %vm157_vm0, %v54_v25  ;;  %v60_v51 = vld [vmem:[%s4452_s0 + $0x138] sm:$0xff]  ;;  %v34_v53 = vld [vmem:[%s4452_s0 + $0x68] sm:$0xff]  ;;  %v129_v54 = vld [vmem:[%s4453_s1 + $0x140] sm:$0xff] }
  0x17   :  { %v61_v55 = vld [vmem:[%s4452_s0 + $0x140] sm:$0xff]  ;;  %v103_v56 = vld [vmem:[%s4453_s1 + $0x70] sm:$0xff]  ;;  %v130_v58 = vld [vmem:[%s4453_s1 + $0x148] sm:$0xff] }
  0x18   :  { %v35_v57 = vld [vmem:[%s4452_s0 + $0x70] sm:$0xff]  ;;  %v62_v59 = vld [vmem:[%s4452_s0 + $0x148] sm:$0xff]  ;;  %v104_v60 = vld [vmem:[%s4453_s1 + $0x78] sm:$0xff] }
  0x19   :  { %2895 = vmatmul.msk.f32.gmra.mxu0 %vm157_vm0, %v91_v12  ;;  %v36_v61 = vld [vmem:[%s4452_s0 + $0x78] sm:$0xff]  ;;  %v131_v62 = vld [vmem:[%s4453_s1 + $0x150] sm:$0xff]  ;;  %v3344_v0 = vld [vmem:[%s4456_s4] ss:$0 sm:$0xff] }
  0x1a   :  { %2959 = vmatmul.msk.f32.gmra.mxu1 %vm157_vm0, %v23_v13  ;;  %v63_v63 = vld [vmem:[%s4452_s0 + $0x150] sm:$0xff]  ;;  %v105_v3 = vld [vmem:[%s4453_s1 + $0x80] sm:$0xff]  ;;  %v132_v8 = vld [vmem:[%s4453_s1 + $0x158] sm:$0xff] }
  0x1b   :  { %v37_v4 = vld [vmem:[%s4452_s0 + $0x80] sm:$0xff]  ;;  %v64_v9 = vld [vmem:[%s4452_s0 + $0x158] sm:$0xff]  ;;  %v107_v25 = vld [vmem:[%s4453_s1 + $0x90] sm:$0xff] }
  0x1c   :  { %v3358_v7 = vld [vmem:[%s4456_s4 + $0x1] ss:$0 sm:$0xff]  ;;  %v134_v30 = vld [vmem:[%s4453_s1 + $0x168] sm:$0xff] }
  0x1d   :  { %2927 = vmatmul.msk.f32.gmra.mxu2 %vm157_vm0, %v123_v28  ;;  %v65_v20 = vld [vmem:[%s4452_s0 + $0x160] sm:$0xff]  ;;  %v66_v31 = vld [vmem:[%s4452_s0 + $0x168] sm:$0xff] }
  0x1e   :  { %2991 = vmatmul.msk.f32.gmra.mxu3 %vm157_vm0, %v55_v29 }
  0x21   :  { %2896 = vmatmul.msk.f32.gmra.mxu0 %vm157_vm0, %v92_v14  ;;  %v106_v14 = vld [vmem:[%s4453_s1 + $0x88] sm:$0xff] }
  0x22   :  { %2960 = vmatmul.msk.f32.gmra.mxu1 %vm157_vm0, %v24_v15  ;;  %v38_v15 = vld [vmem:[%s4452_s0 + $0x88] sm:$0xff] }
  0x25   :  { %2928 = vmatmul.msk.f32.gmra.mxu2 %vm157_vm0, %v124_v34 }
  0x26   :  { %2992 = vmatmul.msk.f32.gmra.mxu3 %vm157_vm0, %v56_v35 }
  0x29   :  { %2897 = vmatmul.msk.f32.gmra.mxu0 %vm157_vm0, %v93_v16 }
  0x2a   :  { %2961 = vmatmul.msk.f32.gmra.mxu1 %vm157_vm0, %v25_v17 }
  0x2d   :  { %2929 = vmatmul.msk.f32.gmra.mxu2 %vm157_vm0, %v125_v38 }
  0x2e   :  { %2993 = vmatmul.msk.f32.gmra.mxu3 %vm157_vm0, %v57_v39 }
  0x31   :  { %2898 = vmatmul.msk.f32.gmra.mxu0 %vm157_vm0, %v94_v18 }
  0x32   :  { %2962 = vmatmul.msk.f32.gmra.mxu1 %vm157_vm0, %v26_v19  ;;  %v133_v19 = vld [vmem:[%s4453_s1 + $0x160] sm:$0xff] }
  0x35   :  { %2930 = vmatmul.msk.f32.gmra.mxu2 %vm157_vm0, %v126_v42  ;;  %v67_v42 = vld [vmem:[%s4452_s0 + $0x170] sm:$0xff] }
  0x36   :  { %2994 = vmatmul.msk.f32.gmra.mxu3 %vm157_vm0, %v58_v43 }
  0x39   :  { %2899 = vmatmul.msk.f32.gmra.mxu0 %vm157_vm0, %v95_v22 }
  0x3a   :  { %2963 = vmatmul.msk.f32.gmra.mxu1 %vm157_vm0, %v27_v23 }
  0x3d   :  { %2931 = vmatmul.msk.f32.gmra.mxu2 %vm157_vm0, %v127_v46 }
  0x3e   :  { %2995 = vmatmul.msk.f32.gmra.mxu3 %vm157_vm0, %v59_v47  ;;  %v109_v47 = vld [vmem:[%s4453_s1 + $0xa0] sm:$0xff] }
  0x41   :  { %2900 = vmatmul.msk.f32.gmra.mxu0 %vm157_vm0, %v96_v26  ;;  %v39_v26 = vld [vmem:[%s4452_s0 + $0x90] sm:$0xff] }
  0x42   :  { %2964 = vmatmul.msk.f32.gmra.mxu1 %vm157_vm0, %v28_v27 }
  0x45   :  { %2932 = vmatmul.msk.f32.gmra.mxu2 %vm157_vm0, %v128_v50 }
  0x46   :  { %2996 = vmatmul.msk.f32.gmra.mxu3 %vm157_vm0, %v60_v51 }
  0x49   :  { %2901 = vmatmul.msk.f32.gmra.mxu0 %vm157_vm0, %v97_v32 }
  0x4a   :  { %2965 = vmatmul.msk.f32.gmra.mxu1 %vm157_vm0, %v29_v33 }
  0x4d   :  { %2933 = vmatmul.msk.f32.gmra.mxu2 %vm157_vm0, %v129_v54 }
  0x4e   :  { %2997 = vmatmul.msk.f32.gmra.mxu3 %vm157_vm0, %v61_v55 }
  0x51   :  { %2902 = vmatmul.msk.f32.gmra.mxu0 %vm157_vm0, %v98_v36  ;;  %v108_v36 = vld [vmem:[%s4453_s1 + $0x98] sm:$0xff] }
  0x52   :  { %2966 = vmatmul.msk.f32.gmra.mxu1 %vm157_vm0, %v30_v37  ;;  %v40_v37 = vld [vmem:[%s4452_s0 + $0x98] sm:$0xff] }
  0x55   :  { %2934 = vmatmul.msk.f32.gmra.mxu2 %vm157_vm0, %v130_v58  ;;  %v110_v58 = vld [vmem:[%s4453_s1 + $0xa8] sm:$0xff] }
  0x56   :  { %2998 = vmatmul.msk.f32.gmra.mxu3 %vm157_vm0, %v62_v59  ;;  %v42_v59 = vld [vmem:[%s4452_s0 + $0xa8] sm:$0xff] }
  0x59   :  { %2903 = vmatmul.msk.f32.gmra.mxu0 %vm157_vm0, %v99_v40 }
  0x5a   :  { %2967 = vmatmul.msk.f32.gmra.mxu1 %vm157_vm0, %v31_v41  ;;  %v135_v41 = vld [vmem:[%s4453_s1 + $0x170] sm:$0xff] }
  0x5d   :  { %2935 = vmatmul.msk.f32.gmra.mxu2 %vm157_vm0, %v131_v62 }
  0x5e   :  { %2999 = vmatmul.msk.f32.gmra.mxu3 %vm157_vm0, %v63_v63  ;;  %v137_v63 = vld [vmem:[%s4453_s1 + $0x180] sm:$0xff] }
  0x61   :  { %2904 = vmatmul.msk.f32.gmra.mxu0 %vm157_vm0, %v100_v44 }
  0x62   :  { %2968 = vmatmul.msk.f32.gmra.mxu1 %vm157_vm0, %v32_v45 }
  0x65   :  { %2936 = vmatmul.msk.f32.gmra.mxu2 %vm157_vm0, %v132_v8  ;;  %v43_v8 = vld [vmem:[%s4452_s0 + $0xb0] sm:$0xff] }
  0x66   :  { %3000 = vmatmul.msk.f32.gmra.mxu3 %vm157_vm0, %v64_v9 }
  0x69   :  { %2905 = vmatmul.msk.f32.gmra.mxu0 %vm157_vm0, %v101_v48  ;;  %v41_v48 = vld [vmem:[%s4452_s0 + $0xa0] sm:$0xff] }
  0x6a   :  { %2969 = vmatmul.msk.f32.gmra.mxu1 %vm157_vm0, %v33_v49 }
  0x6d   :  { %2937 = vmatmul.msk.f32.gmra.mxu2 %vm157_vm0, %v133_v19  ;;  %v44_v19 = vld [vmem:[%s4452_s0 + $0xb8] sm:$0xff] }
  0x6e   :  { %3001 = vmatmul.msk.f32.gmra.mxu3 %vm157_vm0, %v65_v20 }
  0x71   :  { %2906 = vmatmul.msk.f32.gmra.mxu0 %vm157_vm0, %v102_v52  ;;  %v136_v52 = vld [vmem:[%s4453_s1 + $0x178] sm:$0xff] }
  0x72   :  { %2970 = vmatmul.msk.f32.gmra.mxu1 %vm157_vm0, %v34_v53  ;;  %v68_v53 = vld [vmem:[%s4452_s0 + $0x178] sm:$0xff] }
  0x75   :  { %2938 = vmatmul.msk.f32.gmra.mxu2 %vm157_vm0, %v134_v30 }
  0x76   :  { %3002 = vmatmul.msk.f32.gmra.mxu3 %vm157_vm0, %v66_v31  ;;  %v113_v31 = vld [vmem:[%s4453_s1 + $0xc0] sm:$0xff] }
  0x79   :  { %2907 = vmatmul.msk.f32.gmra.mxu0 %vm157_vm0, %v103_v56 }
  0x7a   :  { %2971 = vmatmul.msk.f32.gmra.mxu1 %vm157_vm0, %v35_v57 }
  0x7d   :  { %2939 = vmatmul.msk.f32.gmra.mxu2 %vm157_vm0, %v135_v41 }
  0x7e   :  { %3003 = vmatmul.msk.f32.gmra.mxu3 %vm157_vm0, %v67_v42 }
  0x81   :  { %2908 = vmatmul.msk.f32.gmra.mxu0 %vm157_vm0, %v104_v60 }
  0x82   :  { %2972 = vmatmul.msk.f32.gmra.mxu1 %vm157_vm0, %v36_v61 }
  0x85   :  { %2940 = vmatmul.msk.f32.gmra.mxu2 %vm157_vm0, %v136_v52 }
  0x86   :  { %v367_v1 = vpop.f32.mrf.mxu0  ;;  %3004 = vmatmul.msk.f32.gmra.mxu3 %vm157_vm0, %v68_v53 }
  0x87   :  { %v768_v2 = vpop.f32.mrf.mxu1 }
  0x88   :  { %v769_v5 = vadd.f32 %v768_v2, %v367_v1  ;;  %v69_v1 = vld [vmem:[%s4452_s0 + $0x180] sm:$0xff] }
  0x89   :  { %2909 = vmatmul.msk.f32.gmra.mxu0 %vm157_vm0, %v105_v3 }
  0x8a   :  { %v962_v6 = vadd.f32 %v3344_v0, %v769_v5  ;;  %2973 = vmatmul.msk.f32.gmra.mxu1 %vm157_vm0, %v37_v4 }
  0x8c   :  { %v1026_v10 = vmax.f32 %v962_v6, 0.0  ;;  %v111_v6 = vld [vmem:[%s4453_s1 + $0xb0] sm:$0xff] }
  0x8d   :  { %2941 = vmatmul.msk.f32.gmra.mxu2 %vm157_vm0, %v137_v63  ;;  %v74_v63 = vld [vmem:[%s4452_s0 + $0x1a8] sm:$0xff] }
  0x8e   :  { %v1092_v11 = vmul.f32 %v3358_v7, %v1026_v10  ;;  %v370_v12 = vpop.f32.mrf.mxu0  ;;  %3005 = vmatmul.msk.f32.gmra.mxu3 %vm157_vm0, %v69_v1 }
  0x8f   :  { %v771_v13 = vpop.f32.mrf.mxu1 }
  0x90   :  { %v772_v16 = vadd.f32 %v771_v13, %v370_v12  ;;  %v1156_v17 = vsel %vm157_vm0, %v1092_v11, 0.0  ;;  %v138_v12 = vld [vmem:[%s4453_s1 + $0x188] sm:$0xff] }
  0x91   :  { %1157 = vadd.xlane.f32.xlu0 %v1156_v17  ;;  %2910 = vmatmul.msk.f32.gmra.mxu0 %vm157_vm0, %v106_v14  ;;  %v70_v13 = vld [vmem:[%s4452_s0 + $0x188] sm:$0xff] }
  0x92   :  { %v963_v18 = vadd.f32 %v3344_v0, %v772_v16  ;;  %2974 = vmatmul.msk.f32.gmra.mxu1 %vm157_vm0, %v38_v15 }
  0x94   :  { %v1027_v21 = vmax.f32 %v963_v18, 0.0  ;;  %v112_v18 = vld [vmem:[%s4453_s1 + $0xb8] sm:$0xff] }
  0x95   :  { %2942 = vmatmul.msk.f32.gmra.mxu2 %vm157_vm0, %v138_v12 }
  0x96   :  { %v1093_v22 = vmul.f32 %v3358_v7, %v1027_v21  ;;  %v373_v23 = vpop.f32.mrf.mxu0  ;;  %3006 = vmatmul.msk.f32.gmra.mxu3 %vm157_vm0, %v70_v13  ;;  %v143_v13 = vld [vmem:[%s4453_s1 + $0x1b0] sm:$0xff] }
  0x97   :  { %v774_v24 = vpop.f32.mrf.mxu1 }
  0x98   :  { %v775_v27 = vadd.f32 %v774_v24, %v373_v23  ;;  %v1159_v28 = vsel %vm157_vm0, %v1093_v22, 0.0  ;;  %v3493_v23 = vpop.f32.mrf.mxu2  ;;  %v3495_v24 = vpop.f32.mrf.mxu3 }
  0x99   :  { %1160 = vadd.xlane.f32.xlu1 %v1159_v28  ;;  %2911 = vmatmul.msk.f32.gmra.mxu0 %vm157_vm0, %v107_v25  ;;  %v139_v25 = vld [vmem:[%s4453_s1 + $0x190] sm:$0xff] }
  0x9a   :  { %v964_v29 = vadd.f32 %v3344_v0, %v775_v27  ;;  %2975 = vmatmul.msk.f32.gmra.mxu1 %vm157_vm0, %v39_v26  ;;  %v71_v26 = vld [vmem:[%s4452_s0 + $0x190] sm:$0xff] }
  0x9c   :  { %v1028_v32 = vmax.f32 %v964_v29, 0.0 }
  0x9d   :  { %2943 = vmatmul.msk.f32.gmra.mxu2 %vm157_vm0, %v139_v25 }
  0x9e   :  { %v1094_v33 = vmul.f32 %v3358_v7, %v1028_v32  ;;  %v376_v34 = vpop.f32.mrf.mxu0  ;;  %3007 = vmatmul.msk.f32.gmra.mxu3 %vm157_vm0, %v71_v26  ;;  %v45_v32 = vld [vmem:[%s4452_s0 + $0xc0] sm:$0xff] }
  0x9f   :  { %v777_v35 = vpop.f32.mrf.mxu1 }
  0xa0   :  { %v778_v38 = vadd.f32 %v777_v35, %v376_v34  ;;  %v1162_v39 = vsel %vm157_vm0, %v1094_v33, 0.0 }
  0xa1   :  { %1163 = vadd.xlane.f32.xlu1 %v1162_v39  ;;  %2912 = vmatmul.msk.f32.gmra.mxu0 %vm157_vm0, %v108_v36  ;;  %v140_v36 = vld [vmem:[%s4453_s1 + $0x198] sm:$0xff]  ;;  %v3522_v39 = vpop.f32.mrf.mxu2 }
  0xa2   :  { %v965_v40 = vadd.f32 %v3344_v0, %v778_v38  ;;  %2976 = vmatmul.msk.f32.gmra.mxu1 %vm157_vm0, %v40_v37  ;;  %v72_v37 = vld [vmem:[%s4452_s0 + $0x198] sm:$0xff] }
  0xa4   :  { %v1029_v43 = vmax.f32 %v965_v40, 0.0  ;;  %v3524_v40 = vpop.f32.mrf.mxu3 }
  0xa5   :  { %2944 = vmatmul.msk.f32.gmra.mxu2 %vm157_vm0, %v140_v36  ;;  %v144_v36 = vld [vmem:[%s4453_s1 + $0x1b8] sm:$0xff] }
  0xa6   :  { %v1095_v44 = vmul.f32 %v3358_v7, %v1029_v43  ;;  %v379_v45 = vpop.f32.mrf.mxu0  ;;  %3008 = vmatmul.msk.f32.gmra.mxu3 %vm157_vm0, %v72_v37  ;;  %v76_v37 = vld [vmem:[%s4452_s0 + $0x1b8] sm:$0xff] }
  0xa7   :  { %v780_v46 = vpop.f32.mrf.mxu1 }
  0xa8   :  { %v781_v49 = vadd.f32 %v780_v46, %v379_v45  ;;  %v1165_v50 = vsel %vm157_vm0, %v1095_v44, 0.0  ;;  %v114_v44 = vld [vmem:[%s4453_s1 + $0xc8] sm:$0xff] }
  0xa9   :  { %1166 = vadd.xlane.f32.xlu2 %v1165_v50  ;;  %2913 = vmatmul.msk.f32.gmra.mxu0 %vm157_vm0, %v109_v47  ;;  %v46_v45 = vld [vmem:[%s4452_s0 + $0xc8] sm:$0xff]  ;;  %v73_v50 = vld [vmem:[%s4452_s0 + $0x1a0] sm:$0xff]  ;;  %v3548_v53 = vpop.f32.mrf.mxu2 }
  0xaa   :  { %v966_v51 = vadd.f32 %v3344_v0, %v781_v49  ;;  %2977 = vmatmul.msk.f32.gmra.mxu1 %vm157_vm0, %v41_v48  ;;  %v141_v49 = vld [vmem:[%s4453_s1 + $0x1a0] sm:$0xff] }
  0xac   :  { %v1030_v54 = vmax.f32 %v966_v51, 0.0 }
  0xad   :  { %2945 = vmatmul.msk.f32.gmra.mxu2 %vm157_vm0, %v141_v49 }
  0xae   :  { %v1096_v55 = vmul.f32 %v3358_v7, %v1030_v54  ;;  %v382_v56 = vpop.f32.mrf.mxu0  ;;  %3009 = vmatmul.msk.f32.gmra.mxu3 %vm157_vm0, %v73_v50  ;;  %v3550_v54 = vpop.f32.mrf.mxu3 }
  0xaf   :  { %v783_v57 = vpop.f32.mrf.mxu1 }
  0xb0   :  { %v784_v60 = vadd.f32 %v783_v57, %v382_v56  ;;  %v1168_v61 = vsel %vm157_vm0, %v1096_v55, 0.0  ;;  %v115_v57 = vld [vmem:[%s4453_s1 + $0xd0] sm:$0xff] }
  0xb1   :  { %1169 = vadd.xlane.f32.xlu2 %v1168_v61  ;;  %2914 = vmatmul.msk.f32.gmra.mxu0 %vm157_vm0, %v110_v58  ;;  %v47_v58 = vld [vmem:[%s4452_s0 + $0xd0] sm:$0xff] }
  0xb2   :  { %v967_v62 = vadd.f32 %v3344_v0, %v784_v60  ;;  %2978 = vmatmul.msk.f32.gmra.mxu1 %vm157_vm0, %v42_v59 }
  0xb4   :  { %v1031_v2 = vmax.f32 %v967_v62, 0.0  ;;  %v142_v62 = vld [vmem:[%s4453_s1 + $0x1a8] sm:$0xff] }
  0xb5   :  { %2946 = vmatmul.msk.f32.gmra.mxu2 %vm157_vm0, %v142_v62  ;;  %v52_v62 = vld [vmem:[%s4452_s0 + $0xf8] sm:$0xff] }
  0xb6   :  { %v1097_v3 = vmul.f32 %v3358_v7, %v1031_v2  ;;  %v385_v4 = vpop.f32.mrf.mxu0  ;;  %3010 = vmatmul.msk.f32.gmra.mxu3 %vm157_vm0, %v74_v63 }
  0xb7   :  { %v786_v5 = vpop.f32.mrf.mxu1 }
  0xb8   :  { %v787_v9 = vadd.f32 %v786_v5, %v385_v4  ;;  %v1171_v10 = vsel %vm157_vm0, %v1097_v3, 0.0  ;;  %v116_v5 = vld [vmem:[%s4453_s1 + $0xd8] sm:$0xff] }
  0xb9   :  { %1172 = vadd.xlane.f32.xlu1 %v1171_v10  ;;  %2915 = vmatmul.msk.f32.gmra.mxu0 %vm157_vm0, %v111_v6  ;;  %v48_v6 = vld [vmem:[%s4452_s0 + $0xd8] sm:$0xff]  ;;  %v3578_v10 = vpop.f32.mrf.mxu2 }
  0xba   :  { %v968_v11 = vadd.f32 %v3344_v0, %v787_v9  ;;  %2979 = vmatmul.msk.f32.gmra.mxu1 %vm157_vm0, %v43_v8 }
  0xbc   :  { %v1032_v14 = vmax.f32 %v968_v11, 0.0  ;;  %v3580_v11 = vpop.f32.mrf.mxu3 }
  0xbd   :  { %2947 = vmatmul.msk.f32.gmra.mxu2 %vm157_vm0, %v143_v13 }
  0xbe   :  { %v1098_v15 = vmul.f32 %v3358_v7, %v1032_v14  ;;  %v388_v16 = vpop.f32.mrf.mxu0  ;;  %v75_v14 = vld [vmem:[%s4452_s0 + $0x1b0] sm:$0xff] }
  0xbf   :  { %v789_v17 = vpop.f32.mrf.mxu1  ;;  %3011 = vmatmul.msk.f32.gmra.mxu3 %vm157_vm0, %v75_v14 }
  0xc0   :  { %v790_v20 = vadd.f32 %v789_v17, %v388_v16  ;;  %v1174_v21 = vsel %vm157_vm0, %v1098_v15, 0.0 }
  0xc1   :  { %1175 = vadd.xlane.f32.xlu2 %v1174_v21  ;;  %2916 = vmatmul.msk.f32.gmra.mxu0 %vm157_vm0, %v112_v18  ;;  %v3604_v26 = vpop.f32.mrf.mxu2 }
  0xc2   :  { %v969_v22 = vadd.f32 %v3344_v0, %v790_v20  ;;  %2980 = vmatmul.msk.f32.gmra.mxu1 %vm157_vm0, %v44_v19  ;;  %v117_v19 = vld [vmem:[%s4453_s1 + $0xe0] sm:$0xff] }
  0xc3   :  { %v49_v20 = vld [vmem:[%s4452_s0 + $0xe0] sm:$0xff] }
  0xc4   :  { %v1033_v27 = vmax.f32 %v969_v22, 0.0 }
  0xc5   :  { %2948 = vmatmul.msk.f32.gmra.mxu2 %vm157_vm0, %v144_v36 }
  0xc6   :  { %v1099_v28 = vmul.f32 %v3358_v7, %v1033_v27  ;;  %v391_v29 = vpop.f32.mrf.mxu0  ;;  %v3606_v27 = vpop.f32.mrf.mxu3 }
  0xc7   :  { %v792_v30 = vpop.f32.mrf.mxu1  ;;  %3012 = vmatmul.msk.f32.gmra.mxu3 %vm157_vm0, %v76_v37 }
  0xc8   :  { %v793_v33 = vadd.f32 %v792_v30, %v391_v29  ;;  %v1177_v34 = vsel %vm157_vm0, %v1099_v28, 0.0 }
  0xc9   :  { %1178 = vadd.xlane.f32.xlu1 %v1177_v34  ;;  %2917 = vmatmul.msk.f32.gmra.mxu0 %vm157_vm0, %v113_v31 }
  0xca   :  { %v970_v35 = vadd.f32 %v3344_v0, %v793_v33  ;;  %2981 = vmatmul.msk.f32.gmra.mxu1 %vm157_vm0, %v45_v32  ;;  %v118_v32 = vld [vmem:[%s4453_s1 + $0xe8] sm:$0xff] }
  0xcb   :  { %v50_v33 = vld [vmem:[%s4452_s0 + $0xe8] sm:$0xff] }
  0xcc   :  { %v1034_v38 = vmax.f32 %v970_v35, 0.0 }
  0xce   :  { %v1100_v41 = vmul.f32 %v3358_v7, %v1034_v38  ;;  %v394_v42 = vpop.f32.mrf.mxu0 }
  0xcf   :  { %v795_v43 = vpop.f32.mrf.mxu1 }
  0xd0   :  { %v796_v46 = vadd.f32 %v795_v43, %v394_v42  ;;  %v1180_v47 = vsel %vm157_vm0, %v1100_v41, 0.0  ;;  %v3627_v42 = vpop.f32.mrf.mxu2  ;;  %v3629_v43 = vpop.f32.mrf.mxu3 }
  0xd1   :  { %1181 = vadd.xlane.f32.xlu2 %v1180_v47  ;;  %2918 = vmatmul.msk.f32.gmra.mxu0 %vm157_vm0, %v114_v44  ;;  %v119_v47 = vld [vmem:[%s4453_s1 + $0xf0] sm:$0xff] }
  0xd2   :  { %v971_v48 = vadd.f32 %v3344_v0, %v796_v46  ;;  %2982 = vmatmul.msk.f32.gmra.mxu1 %vm157_vm0, %v46_v45 }
  0xd4   :  { %v1035_v51 = vmax.f32 %v971_v48, 0.0  ;;  %v51_v48 = vld [vmem:[%s4452_s0 + $0xf0] sm:$0xff] }
  0xd6   :  { %v1101_v52 = vmul.f32 %v3358_v7, %v1035_v51  ;;  %v397_v55 = vpop.f32.mrf.mxu0 }
  0xd7   :  { %v798_v56 = vpop.f32.mrf.mxu1 }
  0xd8   :  { %v799_v59 = vadd.f32 %v798_v56, %v397_v55  ;;  %v1183_v60 = vsel %vm157_vm0, %v1101_v52, 0.0  ;;  %v1352_v52 = vpop.permute.xlu0 %1351 }
  0xd9   :  { %1184 = vadd.xlane.f32.xlu1 %v1183_v60  ;;  %2919 = vmatmul.msk.f32.gmra.mxu0 %vm157_vm0, %v115_v57  ;;  %v3643_v57 = vpop.f32.mrf.mxu2 }
  0xda   :  { %v972_v61 = vadd.f32 %v3344_v0, %v799_v59  ;;  %2983 = vmatmul.msk.f32.gmra.mxu1 %vm157_vm0, %v47_v58  ;;  %v3645_v58 = vpop.f32.mrf.mxu3 }
  0xdc   :  { %v1036_v1 = vmax.f32 %v972_v61, 0.0  ;;  %v120_v61 = vld [vmem:[%s4453_s1 + $0xf8] sm:$0xff] }
  0xde   :  { %v1102_v2 = vmul.f32 %v3358_v7, %v1036_v1  ;;  %v400_v3 = vpop.f32.mrf.mxu0 }
  0xdf   :  { %v801_v4 = vpop.f32.mrf.mxu1 }
  0xe0   :  { %v802_v8 = vadd.f32 %v801_v4, %v400_v3  ;;  %v1186_v9 = vsel %vm157_vm0, %v1102_v2, 0.0  ;;  %v145_v2 = vld [vmem:[%s4453_s1 + $0x1c0] sm:$0xff] }
  0xe1   :  { %1187 = vadd.xlane.f32.xlu2 %v1186_v9  ;;  %2920 = vmatmul.msk.f32.gmra.mxu0 %vm157_vm0, %v116_v5  ;;  %v77_v3 = vld [vmem:[%s4452_s0 + $0x1c0] sm:$0xff]  ;;  %v3664_v5 = vperm.slane %v1352_v52, 0 }
  0xe2   :  { %v973_v12 = vadd.f32 %v3344_v0, %v802_v8  ;;  %2984 = vmatmul.msk.f32.gmra.mxu1 %vm157_vm0, %v48_v6  ;;  %2949 = vmatmul.msk.f32.gmra.mxu2 %vm157_vm0, %v145_v2 }
  0xe3   :  { %3013 = vmatmul.msk.f32.gmra.mxu3 %vm157_vm0, %v77_v3 }
  0xe4   :  { %v1037_v15 = vmax.f32 %v973_v12, 0.0 }
  0xe6   :  { %v1103_v16 = vmul.f32 %v3358_v7, %v1037_v15  ;;  %v403_v17 = vpop.f32.mrf.mxu0 }
  0xe7   :  { %v804_v18 = vpop.f32.mrf.mxu1 }
  0xe8   :  { %v805_v21 = vadd.f32 %v804_v18, %v403_v17  ;;  %v1189_v22 = vsel %vm157_vm0, %v1103_v16, 0.0 }
  0xe9   :  { %1190 = vadd.xlane.f32.xlu1 %v1189_v22  ;;  %2921 = vmatmul.msk.f32.gmra.mxu0 %vm157_vm0, %v117_v19  ;;  %v3670_v22 = vpop.f32.mrf.mxu2 }
  0xea   :  { %v974_v25 = vadd.f32 %v3344_v0, %v805_v21  ;;  %2985 = vmatmul.msk.f32.gmra.mxu1 %vm157_vm0, %v49_v20 }
  0xec   :  { %v1038_v28 = vmax.f32 %v974_v25, 0.0  ;;  %v3672_v25 = vpop.f32.mrf.mxu3 }
  0xee   :  { %v1104_v29 = vmul.f32 %v3358_v7, %v1038_v28  ;;  %v406_v30 = vpop.f32.mrf.mxu0 }
  0xef   :  { %v807_v31 = vpop.f32.mrf.mxu1 }
  0xf0   :  { %v808_v34 = vadd.f32 %v807_v31, %v406_v30  ;;  %v1192_v35 = vsel %vm157_vm0, %v1104_v29, 0.0 }
  0xf1   :  { %1193 = vadd.xlane.f32.xlu2 %v1192_v35  ;;  %2922 = vmatmul.msk.f32.gmra.mxu0 %vm157_vm0, %v118_v32 }
  0xf2   :  { %v975_v38 = vadd.f32 %v3344_v0, %v808_v34  ;;  %2986 = vmatmul.msk.f32.gmra.mxu1 %vm157_vm0, %v50_v33 }
  0xf4   :  { %v1039_v41 = vmax.f32 %v975_v38, 0.0  ;;  %v146_v38 = vld [vmem:[%s4453_s1 + $0x1c8] sm:$0xff] }
  0xf5   :  { %2950 = vmatmul.msk.f32.gmra.mxu2 %vm157_vm0, %v146_v38 }
  0xf6   :  { %v1105_v44 = vmul.f32 %v3358_v7, %v1039_v41  ;;  %v409_v45 = vpop.f32.mrf.mxu0  ;;  %v78_v41 = vld [vmem:[%s4452_s0 + $0x1c8] sm:$0xff] }
  0xf7   :  { %v810_v46 = vpop.f32.mrf.mxu1  ;;  %3014 = vmatmul.msk.f32.gmra.mxu3 %vm157_vm0, %v78_v41 }
  0xf8   :  { %v811_v49 = vadd.f32 %v810_v46, %v409_v45  ;;  %v1195_v50 = vsel %vm157_vm0, %v1105_v44, 0.0  ;;  %v487_v46 = vpop.f32.mrf.mxu2 }
  0xf9   :  { %1196 = vadd.xlane.f32.xlu1 %v1195_v50  ;;  %2923 = vmatmul.msk.f32.gmra.mxu0 %vm157_vm0, %v119_v47  ;;  %v888_v47 = vpop.f32.mrf.mxu3 }
  0xfa   :  { %v976_v51 = vadd.f32 %v3344_v0, %v811_v49  ;;  %2987 = vmatmul.msk.f32.gmra.mxu1 %vm157_vm0, %v51_v48  ;;  %v3687_v50 = vadd.f32 %v888_v47, %v487_v46  ;;  %v80_v46 = vld [vmem:[%s4452_s0 + $0x1d8] sm:$0xff] }
  0xfc   :  { %v1040_v55 = vmax.f32 %v976_v51, 0.0 }
  0xfe   :  { %v1106_v56 = vmul.f32 %v3358_v7, %v1040_v55  ;;  %v412_v59 = vpop.f32.mrf.mxu0 }
  0xff   :  { %v813_v60 = vpop.f32.mrf.mxu1 }
 0x100   :  { %v814_v63 = vadd.f32 %v813_v60, %v412_v59  ;;  %v1198_v1 = vsel %vm157_vm0, %v1106_v56, 0.0 }
 0x101   :  { %1199 = vadd.xlane.f32.xlu2 %v1198_v1  ;;  %2924 = vmatmul.msk.f32.gmra.mxu0 %vm157_vm0, %v120_v61 }
 0x102   :  { %v977_v4 = vadd.f32 %v3344_v0, %v814_v63  ;;  %2988 = vmatmul.msk.f32.gmra.mxu1 %vm157_vm0, %v52_v62 }
 0x104   :  { %v1041_v6 = vmax.f32 %v977_v4, 0.0  ;;  %v1158_v8 = vpop.xlane.xlu0 %1157 }
 0x105   :  { %v1355_v9 = vadd.f32 %v3664_v5, %v1158_v8 }
 0x106   :  { %v1107_v12 = vmul.f32 %v3358_v7, %v1041_v6  ;;  %v415_v16 = vpop.f32.mrf.mxu0 }
 0x107   :  { %v1483_v13 = vrot.slane %v1355_v9, 1  ;;  %v1484_v14 = vrot.slane %v1355_v9, 2  ;;  %v1485_v15 = vrot.slane %v1355_v9, 3  ;;  %1931 = vst [vmem:[#allocation1] ss:$9 sm:$0xff] %v1355_v9  ;;  %v816_v17 = vpop.f32.mrf.mxu1  ;;  %v1486_v18 = vrot.slane %v1355_v9, 4 }
 0x108   :  { %v817_v19 = vadd.f32 %v816_v17, %v415_v16  ;;  %v1487_v20 = vrot.slane %v1355_v9, 5  ;;  %v1201_v21 = vsel %vm157_vm0, %v1107_v12, 0.0  ;;  %v1488_v28 = vrot.slane %v1355_v9, 6  ;;  %v147_v12 = vld [vmem:[%s4453_s1 + $0x1d0] sm:$0xff] }
 0x109   :  { %1933 = vst [vmem:[#allocation1 + $0x1] ss:$9 sm:$0xff] %v1483_v13  ;;  %1202 = vadd.xlane.f32.xlu0 %v1201_v21  ;;  %v1489_v30 = vrot.slane %v1355_v9, 7  ;;  %v79_v13 = vld [vmem:[%s4452_s0 + $0x1d0] sm:$0xff]  ;;  %2951 = vmatmul.msk.f32.gmra.mxu2 %vm157_vm0, %v147_v12  ;;  %v81_v12 = vld [vmem:[%s4452_s0 + $0x1e0] sm:$0xff] }
 0x10a   :  { %1935 = vst [vmem:[#allocation1 + $0x2] ss:$9 sm:$0xff] %v1484_v14  ;;  %v978_v29 = vadd.f32 %v3344_v0, %v817_v19  ;;  %3015 = vmatmul.msk.f32.gmra.mxu3 %vm157_vm0, %v79_v13 }
 0x10b   :  { %1937 = vst [vmem:[#allocation1 + $0x3] ss:$9 sm:$0xff] %v1485_v15 }
 0x10c   :  { %1939 = vst [vmem:[#allocation1 + $0x4] ss:$9 sm:$0xff] %v1486_v18  ;;  %v1042_v31 = vmax.f32 %v978_v29, 0.0  ;;  %v1161_v32 = vpop.xlane.xlu1 %1160 }
 0x10d   :  { %1941 = vst [vmem:[#allocation1 + $0x5] ss:$9 sm:$0xff] %v1487_v20  ;;  %v1356_v36 = vadd.f32 %v3664_v5, %v1161_v32 }
 0x10e   :  { %1943 = vst [vmem:[#allocation1 + $0x6] ss:$9 sm:$0xff] %v1488_v28  ;;  %v1108_v33 = vmul.f32 %v3358_v7, %v1042_v31  ;;  %v418_v34 = vpop.f32.mrf.mxu0 }
 0x10f   :  { %1945 = vst [vmem:[#allocation1 + $0x7] ss:$9 sm:$0xff] %v1489_v30  ;;  %v819_v35 = vpop.f32.mrf.mxu1  ;;  %v1490_v48 = vrot.slane %v1356_v36, 1  ;;  %v1491_v51 = vrot.slane %v1356_v36, 2  ;;  %v1492_v55 = vrot.slane %v1356_v36, 3  ;;  %v1493_v59 = vrot.slane %v1356_v36, 4 }
 0x110   :  { %v820_v37 = vadd.f32 %v819_v35, %v418_v34  ;;  %v1204_v44 = vsel %vm157_vm0, %v1108_v33, 0.0  ;;  %v1494_v62 = vrot.slane %v1356_v36, 5  ;;  %v1495_v1 = vrot.slane %v1356_v36, 6 }
 0x111   :  { %1205 = vadd.xlane.f32.xlu1 %v1204_v44  ;;  %v1496_v3 = vrot.slane %v1356_v36, 7 }
 0x112   :  { %v979_v45 = vadd.f32 %v3344_v0, %v820_v37  ;;  %3016 = vmatmul.msk.f32.gmra.mxu3 %vm157_vm0, %v80_v46 }
 0x114   :  { %v1043_v49 = vmax.f32 %v979_v45, 0.0  ;;  %v1164_v6 = vpop.xlane.xlu1 %1163  ;;  %v148_v45 = vld [vmem:[%s4453_s1 + $0x1d8] sm:$0xff] }
 0x115   :  { %v1357_v14 = vadd.f32 %v3664_v5, %v1164_v6  ;;  %2952 = vmatmul.msk.f32.gmra.mxu2 %vm157_vm0, %v148_v45 }
 0x116   :  { %v3689_v52 = vld [vmem:[#allocation1] sm:$0xff]  ;;  %v1109_v56 = vmul.f32 %v3358_v7, %v1043_v49  ;;  %v421_v60 = vpop.f32.mrf.mxu0 }
 0x117   :  { %1947 = vst [vmem:[#allocation1] ss:$9 sm:$0xff] %v1356_v36  ;;  %v822_v61 = vpop.f32.mrf.mxu1  ;;  %v1497_v20 = vrot.slane %v1357_v14, 1  ;;  %v1498_v21 = vrot.slane %v1357_v14, 2  ;;  %v1499_v29 = vrot.slane %v1357_v14, 3  ;;  %v1500_v31 = vrot.slane %v1357_v14, 4 }
 0x118   :  { %1948 = vst [vmem:[#allocation1 + $0x1] ss:$9 sm:$0xff] %v1490_v48  ;;  %v823_v63 = vadd.f32 %v822_v61, %v421_v60  ;;  %v1207_v2 = vsel %vm157_vm0, %v1109_v56, 0.0  ;;  %v1501_v32 = vrot.slane %v1357_v14, 5  ;;  %v1502_v33 = vrot.slane %v1357_v14, 6 }
 0x119   :  { %1949 = vst [vmem:[#allocation1 + $0x2] ss:$9 sm:$0xff] %v1491_v51  ;;  %1208 = vadd.xlane.f32.xlu2 %v1207_v2  ;;  %v1503_v34 = vrot.slane %v1357_v14, 7 }
 0x11a   :  { %1950 = vst [vmem:[#allocation1 + $0x3] ss:$9 sm:$0xff] %v1492_v55  ;;  %v980_v4 = vadd.f32 %v3344_v0, %v823_v63  ;;  %3017 = vmatmul.msk.f32.gmra.mxu3 %vm157_vm0, %v81_v12 }
 0x11b   :  { %1951 = vst [vmem:[#allocation1 + $0x4] ss:$9 sm:$0xff] %v1493_v59 }
 0x11c   :  { %1952 = vst [vmem:[#allocation1 + $0x5] ss:$9 sm:$0xff] %v1494_v62  ;;  %v1044_v8 = vmax.f32 %v980_v4, 0.0  ;;  %v1167_v38 = vpop.xlane.xlu2 %1166 }
 0x11d   :  { %1953 = vst [vmem:[#allocation1 + $0x6] ss:$9 sm:$0xff] %v1495_v1  ;;  %v1358_v47 = vadd.f32 %v3664_v5, %v1167_v38  ;;  %v82_v38 = vld [vmem:[%s4452_s0 + $0x1e8] sm:$0xff] }
 0x11e   :  { %1954 = vst [vmem:[#allocation1 + $0x7] ss:$9 sm:$0xff] %v1496_v3  ;;  %v1110_v9 = vmul.f32 %v3358_v7, %v1044_v8  ;;  %v424_v15 = vpop.f32.mrf.mxu0 }
 0x11f   :  { %v825_v16 = vpop.f32.mrf.mxu1  ;;  %v1504_v49 = vrot.slane %v1358_v47, 1  ;;  %v1505_v51 = vrot.slane %v1358_v47, 2  ;;  %v1506_v59 = vrot.slane %v1358_v47, 3  ;;  %v1507_v60 = vrot.slane %v1358_v47, 4 }
 0x120   :  { %v826_v17 = vadd.f32 %v825_v16, %v424_v15  ;;  %v1210_v18 = vsel %vm157_vm0, %v1110_v9, 0.0  ;;  %v1508_v61 = vrot.slane %v1358_v47, 5  ;;  %v1509_v62 = vrot.slane %v1358_v47, 6  ;;  %v149_v9 = vld [vmem:[%s4453_s1 + $0x1e0] sm:$0xff] }
 0x121   :  { %1211 = vadd.xlane.f32.xlu0 %v1210_v18  ;;  %v1510_v1 = vrot.slane %v1358_v47, 7  ;;  %2953 = vmatmul.msk.f32.gmra.mxu2 %vm157_vm0, %v149_v9 }
 0x122   :  { %v981_v19 = vadd.f32 %v3344_v0, %v826_v17  ;;  %3018 = vmatmul.msk.f32.gmra.mxu3 %vm157_vm0, %v82_v38 }
 0x124   :  { %v1045_v30 = vmax.f32 %v981_v19, 0.0  ;;  %v1170_v6 = vpop.xlane.xlu2 %1169 }
 0x125   :  { %v3706_v28 = vld [vmem:[#allocation1] sm:$0xff]  ;;  %v1359_v13 = vadd.f32 %v3664_v5, %v1170_v6  ;;  %v83_v6 = vld [vmem:[%s4452_s0 + $0x1f0] sm:$0xff] }
 0x126   :  { %1956 = vst [vmem:[#allocation1] ss:$9 sm:$0xff] %v1357_v14  ;;  %v427_v35 = vpop.f32.mrf.mxu0  ;;  %v1111_v36 = vmul.f32 %v3358_v7, %v1045_v30 }
 0x127   :  { %1957 = vst [vmem:[#allocation1 + $0x1] ss:$9 sm:$0xff] %v1497_v20  ;;  %v828_v37 = vpop.f32.mrf.mxu1  ;;  %v1511_v15 = vrot.slane %v1359_v13, 1  ;;  %v1512_v16 = vrot.slane %v1359_v13, 2  ;;  %v1513_v19 = vrot.slane %v1359_v13, 3  ;;  %v1514_v20 = vrot.slane %v1359_v13, 4 }
 0x128   :  { %1958 = vst [vmem:[#allocation1 + $0x2] ss:$9 sm:$0xff] %v1498_v21  ;;  %v829_v41 = vadd.f32 %v828_v37, %v427_v35  ;;  %v1213_v44 = vsel %vm157_vm0, %v1111_v36, 0.0  ;;  %v1515_v21 = vrot.slane %v1359_v13, 5  ;;  %v150_v37 = vld [vmem:[%s4453_s1 + $0x1e8] sm:$0xff] }
 0x129   :  { %1959 = vst [vmem:[#allocation1 + $0x3] ss:$9 sm:$0xff] %v1499_v29  ;;  %1214 = vadd.xlane.f32.xlu1 %v1213_v44  ;;  %v1516_v29 = vrot.slane %v1359_v13, 6  ;;  %2954 = vmatmul.msk.f32.gmra.mxu2 %vm157_vm0, %v150_v37 }
 0x12a   :  { %1960 = vst [vmem:[#allocation1 + $0x4] ss:$9 sm:$0xff] %v1500_v31  ;;  %v982_v48 = vadd.f32 %v3344_v0, %v829_v41  ;;  %v1517_v31 = vrot.slane %v1359_v13, 7  ;;  %3019 = vmatmul.msk.f32.gmra.mxu3 %vm157_vm0, %v83_v6 }
 0x12b   :  { %1961 = vst [vmem:[#allocation1 + $0x5] ss:$9 sm:$0xff] %v1501_v32 }
 0x12c   :  { %1962 = vst [vmem:[#allocation1 + $0x6] ss:$9 sm:$0xff] %v1502_v33  ;;  %v1046_v55 = vmax.f32 %v982_v48, 0.0  ;;  %v1173_v35 = vpop.xlane.xlu1 %1172 }
 0x12d   :  { %1963 = vst [vmem:[#allocation1 + $0x7] ss:$9 sm:$0xff] %v1503_v34  ;;  %v1360_v41 = vadd.f32 %v3664_v5, %v1173_v35 }
 0x12e   :  { %v1112_v63 = vmul.f32 %v3358_v7, %v1046_v55  ;;  %v430_v2 = vpop.f32.mrf.mxu0 }
 0x12f   :  { %v831_v3 = vpop.f32.mrf.mxu1  ;;  %v1518_v45 = vrot.slane %v1360_v41, 1  ;;  %v1519_v46 = vrot.slane %v1360_v41, 2  ;;  %v1522_v55 = vrot.slane %v1360_v41, 5 }
 0x130   :  { %v1216_v4 = vsel %vm157_vm0, %v1112_v63, 0.0  ;;  %v832_v8 = vadd.f32 %v831_v3, %v430_v2 }
 0x131   :  { %1217 = vadd.xlane.f32.xlu2 %v1216_v4  ;;  %v151_v4 = vld [vmem:[%s4453_s1 + $0x1f0] sm:$0xff] }
 0x132   :  { %v983_v14 = vadd.f32 %v3344_v0, %v832_v8  ;;  %2955 = vmatmul.msk.f32.gmra.mxu2 %vm157_vm0, %v151_v4 }
 0x134   :  { %v3720_v56 = vld [vmem:[#allocation1] sm:$0xff]  ;;  %v1047_v17 = vmax.f32 %v983_v14, 0.0  ;;  %v1176_v2 = vpop.xlane.xlu2 %1175 }
 0x135   :  { %1965 = vst [vmem:[#allocation1] ss:$9 sm:$0xff] %v1358_v47  ;;  %v1361_v8 = vadd.f32 %v3664_v5, %v1176_v2 }
 0x136   :  { %1966 = vst [vmem:[#allocation1 + $0x1] ss:$9 sm:$0xff] %v1504_v49  ;;  %v1113_v30 = vmul.f32 %v3358_v7, %v1047_v17  ;;  %v433_v32 = vpop.f32.mrf.mxu0  ;;  %v1520_v49 = vrot.slane %v1360_v41, 3 }
 0x137   :  { %1967 = vst [vmem:[#allocation1 + $0x2] ss:$9 sm:$0xff] %v1505_v51  ;;  %v834_v33 = vpop.f32.mrf.mxu1  ;;  %v1521_v51 = vrot.slane %v1360_v41, 4  ;;  %v1525_v12 = vrot.slane %v1361_v8, 1  ;;  %v1528_v17 = vrot.slane %v1361_v8, 4 }
 0x138   :  { %1968 = vst [vmem:[#allocation1 + $0x3] ss:$9 sm:$0xff] %v1506_v59  ;;  %v1219_v34 = vsel %vm157_vm0, %v1113_v30, 0.0  ;;  %v835_v36 = vadd.f32 %v834_v33, %v433_v32  ;;  %v1523_v59 = vrot.slane %v1360_v41, 6 }
 0x139   :  { %1969 = vst [vmem:[#allocation1 + $0x4] ss:$9 sm:$0xff] %v1507_v60  ;;  %1220 = vadd.xlane.f32.xlu0 %v1219_v34 }
 0x13a   :  { %1970 = vst [vmem:[#allocation1 + $0x5] ss:$9 sm:$0xff] %v1508_v61  ;;  %v984_v44 = vadd.f32 %v3344_v0, %v835_v36  ;;  %v1524_v61 = vrot.slane %v1360_v41, 7 }
 0x13b   :  { %1971 = vst [vmem:[#allocation1 + $0x6] ss:$9 sm:$0xff] %v1509_v62 }
 0x13c   :  { %1972 = vst [vmem:[#allocation1 + $0x7] ss:$9 sm:$0xff] %v1510_v1  ;;  %v1048_v47 = vmax.f32 %v984_v44, 0.0  ;;  %v1179_v33 = vpop.xlane.xlu1 %1178 }
 0x13d   :  { %v1362_v35 = vadd.f32 %v3664_v5, %v1179_v33 }
 0x13e   :  { %v1114_v60 = vmul.f32 %v3358_v7, %v1048_v47  ;;  %v436_v62 = vpop.f32.mrf.mxu0 }
 0x13f   :  { %v837_v63 = vpop.f32.mrf.mxu1  ;;  %v1532_v37 = vrot.slane %v1362_v35, 1  ;;  %v1533_v38 = vrot.slane %v1362_v35, 2  ;;  %v1536_v47 = vrot.slane %v1362_v35, 5 }
 0x140   :  { %v1222_v1 = vsel %vm157_vm0, %v1114_v60, 0.0  ;;  %v838_v3 = vadd.f32 %v837_v63, %v436_v62 }
 0x141   :  { %1223 = vadd.xlane.f32.xlu1 %v1222_v1  ;;  %v3776_v1 = vld [vmem:[%s4456_s4] ss:$0 sm:$0xff] }
 0x142   :  { %v985_v9 = vadd.f32 %v3344_v0, %v838_v3 }
 0x143   :  { %v3734_v18 = vld [vmem:[#allocation1] sm:$0xff] }
 0x144   :  { %1974 = vst [vmem:[#allocation1] ss:$9 sm:$0xff] %v1359_v13  ;;  %v1526_v13 = vrot.slane %v1361_v8, 2  ;;  %v1049_v14 = vmax.f32 %v985_v9, 0.0 }
 0x145   :  { %1975 = vst [vmem:[#allocation1 + $0x1] ss:$9 sm:$0xff] %v1511_v15 }
 0x146   :  { %1976 = vst [vmem:[#allocation1 + $0x2] ss:$9 sm:$0xff] %v1512_v16  ;;  %v1527_v16 = vrot.slane %v1361_v8, 3  ;;  %v439_v30 = vpop.f32.mrf.mxu0 }
 0x147   :  { %1977 = vst [vmem:[#allocation1 + $0x3] ss:$9 sm:$0xff] %v1513_v19  ;;  %v1529_v19 = vrot.slane %v1361_v8, 5 }
 0x148   :  { %1978 = vst [vmem:[#allocation1 + $0x4] ss:$9 sm:$0xff] %v1514_v20  ;;  %v1530_v20 = vrot.slane %v1361_v8, 6 }
 0x149   :  { %1979 = vst [vmem:[#allocation1 + $0x5] ss:$9 sm:$0xff] %v1515_v21  ;;  %v1115_v21 = vmul.f32 %v3358_v7, %v1049_v14 }
 0x14a   :  { %1980 = vst [vmem:[#allocation1 + $0x6] ss:$9 sm:$0xff] %v1516_v29  ;;  %v1531_v29 = vrot.slane %v1361_v8, 7 }
 0x14b   :  { %1981 = vst [vmem:[#allocation1 + $0x7] ss:$9 sm:$0xff] %v1517_v31  ;;  %v840_v31 = vpop.f32.mrf.mxu1  ;;  %v1225_v32 = vsel %vm157_vm0, %v1115_v21, 0.0 }
 0x14c   :  { %v841_v34 = vadd.f32 %v840_v31, %v439_v30  ;;  %1226 = vadd.xlane.f32.xlu2 %v1225_v32  ;;  %v1185_v31 = vpop.xlane.xlu1 %1184 }
 0x14d   :  { %v1364_v33 = vadd.f32 %v3664_v5, %v1185_v31 }
 0x14e   :  { %v986_v36 = vadd.f32 %v3344_v0, %v841_v34 }
 0x152   :  { %v3748_v48 = vld [vmem:[#allocation1] sm:$0xff] }
 0x153   :  { %1983 = vst [vmem:[#allocation1] ss:$9 sm:$0xff] %v1360_v41  ;;  %v1050_v41 = vmax.f32 %v986_v36, 0.0  ;;  %v843_v60 = vpop.f32.mrf.mxu1  ;;  %v1546_v36 = vrot.slane %v1364_v33, 1 }
 0x154   :  { %1984 = vst [vmem:[#allocation1 + $0x1] ss:$9 sm:$0xff] %v1518_v45  ;;  %v1534_v45 = vrot.slane %v1362_v35, 3 }
 0x155   :  { %1985 = vst [vmem:[#allocation1 + $0x2] ss:$9 sm:$0xff] %v1519_v46  ;;  %v1535_v46 = vrot.slane %v1362_v35, 4 }
 0x156   :  { %1986 = vst [vmem:[#allocation1 + $0x3] ss:$9 sm:$0xff] %v1520_v49  ;;  %v1537_v49 = vrot.slane %v1362_v35, 6 }
 0x157   :  { %1987 = vst [vmem:[#allocation1 + $0x4] ss:$9 sm:$0xff] %v1521_v51  ;;  %v1116_v51 = vmul.f32 %v3358_v7, %v1050_v41 }
 0x158   :  { %1988 = vst [vmem:[#allocation1 + $0x5] ss:$9 sm:$0xff] %v1522_v55  ;;  %v1538_v55 = vrot.slane %v1362_v35, 7 }
 0x159   :  { %1989 = vst [vmem:[#allocation1 + $0x6] ss:$9 sm:$0xff] %v1523_v59  ;;  %v442_v59 = vpop.f32.mrf.mxu0  ;;  %v1228_v0 = vsel %vm157_vm0, %v1116_v51, 0.0  ;;  %v1551_v51 = vrot.slane %v1364_v33, 6 }
 0x15a   :  { %1990 = vst [vmem:[#allocation1 + $0x7] ss:$9 sm:$0xff] %v1524_v61  ;;  %v1182_v61 = vpop.xlane.xlu2 %1181  ;;  %v844_v62 = vadd.f32 %v843_v60, %v442_v59  ;;  %1229 = vadd.xlane.f32.xlu0 %v1228_v0  ;;  %v1552_v59 = vrot.slane %v1364_v33, 7 }
 0x15b   :  { %v1363_v63 = vadd.f32 %v3664_v5, %v1182_v61 }
 0x15c   :  { %v987_v7 = vadd.f32 %v3776_v1, %v844_v62 }
 0x15d   :  { %v1539_v2 = vrot.slane %v1363_v63, 1  ;;  %v1540_v3 = vrot.slane %v1363_v63, 2  ;;  %v1542_v9 = vrot.slane %v1363_v63, 4  ;;  %v1544_v14 = vrot.slane %v1363_v63, 6 }
 0x15e   :  { %v1051_v4 = vmax.f32 %v987_v7, 0.0 }
 0x161   :  { %v3762_v15 = vld [vmem:[#allocation1] sm:$0xff]  ;;  %v445_v21 = vpop.f32.mrf.mxu0 }
 0x162   :  { %1992 = vst [vmem:[#allocation1] ss:$9 sm:$0xff] %v1361_v8  ;;  %v1541_v8 = vrot.slane %v1363_v63, 3  ;;  %v1188_v62 = vpop.xlane.xlu2 %1187 }
 0x163   :  { %1993 = vst [vmem:[#allocation1 + $0x1] ss:$9 sm:$0xff] %v1525_v12  ;;  %v1543_v12 = vrot.slane %v1363_v63, 5 }
 0x164   :  { %1994 = vst [vmem:[#allocation1 + $0x2] ss:$9 sm:$0xff] %v1526_v13  ;;  %v3781_v13 = vpop.f32.mrf.mxu2 }
 0x165   :  { %1995 = vst [vmem:[#allocation1 + $0x3] ss:$9 sm:$0xff] %v1527_v16  ;;  %v3786_v16 = vld [vmem:[%s4456_s4 + $0x1] ss:$0 sm:$0xff] }
 0x166   :  { %1996 = vst [vmem:[#allocation1 + $0x4] ss:$9 sm:$0xff] %v1528_v17  ;;  %v1117_v17 = vmul.f32 %v3786_v16, %v1051_v4 }
 0x167   :  { %1997 = vst [vmem:[#allocation1 + $0x5] ss:$9 sm:$0xff] %v1529_v19  ;;  %v3789_v19 = vpop.f32.mrf.mxu3 }
 0x168   :  { %1998 = vst [vmem:[#allocation1 + $0x6] ss:$9 sm:$0xff] %v1530_v20  ;;  %v1545_v20 = vrot.slane %v1363_v63, 7  ;;  %v1231_v30 = vsel %vm157_vm0, %v1117_v17, 0.0 }
 0x169   :  { %1999 = vst [vmem:[#allocation1 + $0x7] ss:$9 sm:$0xff] %v1531_v29  ;;  %v846_v29 = vpop.f32.mrf.mxu1  ;;  %1232 = vadd.xlane.f32.xlu1 %v1231_v30  ;;  %v448_v60 = vpop.f32.mrf.mxu0 }
 0x16a   :  { %v847_v32 = vadd.f32 %v846_v29, %v445_v21 }
 0x16c   :  { %v988_v34 = vadd.f32 %v3776_v1, %v847_v32 }
 0x16e   :  { %v1052_v41 = vmax.f32 %v988_v34, 0.0 }
 0x170   :  { %v3768_v44 = vld [vmem:[#allocation1] sm:$0xff] }
 0x171   :  { %2001 = vst [vmem:[#allocation1] ss:$9 sm:$0xff] %v1362_v35  ;;  %v3794_v35 = vpop.f32.mrf.mxu2  ;;  %v849_v0 = vpop.f32.mrf.mxu1 }
 0x172   :  { %2002 = vst [vmem:[#allocation1 + $0x1] ss:$9 sm:$0xff] %v1532_v37  ;;  %v3796_v37 = vpop.f32.mrf.mxu3  ;;  %v451_v34 = vpop.f32.mrf.mxu0 }
 0x173   :  { %2003 = vst [vmem:[#allocation1 + $0x2] ss:$9 sm:$0xff] %v1533_v38  ;;  %v1547_v38 = vrot.slane %v1364_v33, 2 }
 0x174   :  { %2004 = vst [vmem:[#allocation1 + $0x3] ss:$9 sm:$0xff] %v1534_v45 }
 0x175   :  { %2005 = vst [vmem:[#allocation1 + $0x4] ss:$9 sm:$0xff] %v1535_v46  ;;  %v1548_v46 = vrot.slane %v1364_v33, 3 }
 0x176   :  { %2006 = vst [vmem:[#allocation1 + $0x5] ss:$9 sm:$0xff] %v1536_v47  ;;  %v1549_v47 = vrot.slane %v1364_v33, 4 }
 0x177   :  { %2007 = vst [vmem:[#allocation1 + $0x6] ss:$9 sm:$0xff] %v1537_v49  ;;  %v1550_v49 = vrot.slane %v1364_v33, 5 }
 0x178   :  { %2008 = vst [vmem:[#allocation1 + $0x7] ss:$9 sm:$0xff] %v1538_v55  ;;  %v1118_v55 = vmul.f32 %v3786_v16, %v1052_v41  ;;  %v1191_v41 = vpop.xlane.xlu1 %1190 }
 0x179   :  { %v3802_v7 = vpop.f32.mrf.mxu2 }
 0x17a   :  { %v1234_v61 = vsel %vm157_vm0, %v1118_v55, 0.0 }
 0x17b   :  { %1235 = vadd.xlane.f32.xlu2 %v1234_v61 }
 0x17f   :  { %v3779_v6 = vld [vmem:[#allocation1] sm:$0xff] }
 0x180   :  { %2010 = vst [vmem:[#allocation1] ss:$9 sm:$0xff] %v1363_v63  ;;  %v850_v63 = vadd.f32 %v849_v0, %v448_v60 }
 0x181   :  { %2011 = vst [vmem:[#allocation1 + $0x1] ss:$9 sm:$0xff] %v1539_v2  ;;  %v3804_v2 = vpop.f32.mrf.mxu3  ;;  %v3810_v29 = vpop.f32.mrf.mxu2 }
 0x182   :  { %2012 = vst [vmem:[#allocation1 + $0x2] ss:$9 sm:$0xff] %v1540_v3  ;;  %v1365_v3 = vadd.f32 %v3664_v5, %v1188_v62  ;;  %v989_v4 = vadd.f32 %v3776_v1, %v850_v63 }
 0x183   :  { %2013 = vst [vmem:[#allocation1 + $0x3] ss:$9 sm:$0xff] %v1541_v8 }
 0x184   :  { %2014 = vst [vmem:[#allocation1 + $0x4] ss:$9 sm:$0xff] %v1542_v9  ;;  %v1553_v8 = vrot.slane %v1365_v3, 1  ;;  %v1554_v9 = vrot.slane %v1365_v3, 2  ;;  %v1555_v17 = vrot.slane %v1365_v3, 3  ;;  %v1557_v21 = vrot.slane %v1365_v3, 5 }
 0x185   :  { %2015 = vst [vmem:[#allocation1 + $0x5] ss:$9 sm:$0xff] %v1543_v12  ;;  %v1053_v12 = vmax.f32 %v989_v4, 0.0  ;;  %v1558_v30 = vrot.slane %v1365_v3, 6 }
 0x186   :  { %2016 = vst [vmem:[#allocation1 + $0x6] ss:$9 sm:$0xff] %v1544_v14 }
 0x187   :  { %2017 = vst [vmem:[#allocation1 + $0x7] ss:$9 sm:$0xff] %v1545_v20  ;;  %v1556_v20 = vrot.slane %v1365_v3, 4  ;;  %v1119_v31 = vmul.f32 %v3786_v16, %v1053_v12  ;;  %v454_v12 = vpop.f32.mrf.mxu0 }
 0x189   :  { %v3813_v32 = vpop.f32.mrf.mxu3 }
 0x18e   :  { %v3798_v45 = vld [vmem:[#allocation1] sm:$0xff] }
 0x18f   :  { %2019 = vst [vmem:[#allocation1] ss:$9 sm:$0xff] %v1364_v33  ;;  %v1559_v33 = vrot.slane %v1365_v3, 7 }
 0x190   :  { %2020 = vst [vmem:[#allocation1 + $0x1] ss:$9 sm:$0xff] %v1546_v36  ;;  %v852_v36 = vpop.f32.mrf.mxu1 }
 0x191   :  { %2021 = vst [vmem:[#allocation1 + $0x2] ss:$9 sm:$0xff] %v1547_v38  ;;  %v1237_v38 = vsel %vm157_vm0, %v1119_v31, 0.0 }
 0x192   :  { %2022 = vst [vmem:[#allocation1 + $0x3] ss:$9 sm:$0xff] %v1548_v46  ;;  %v853_v46 = vadd.f32 %v852_v36, %v451_v34  ;;  %1238 = vadd.xlane.f32.xlu0 %v1237_v38  ;;  %v865_v38 = vadd.f32 %v3495_v24, %v3493_v23  ;;  %v457_v24 = vpop.f32.mrf.mxu0 }
 0x193   :  { %2023 = vst [vmem:[#allocation1 + $0x4] ss:$9 sm:$0xff] %v1549_v47  ;;  %v1366_v47 = vadd.f32 %v3664_v5, %v1191_v41 }
 0x194   :  { %2024 = vst [vmem:[#allocation1 + $0x5] ss:$9 sm:$0xff] %v1550_v49  ;;  %v990_v49 = vadd.f32 %v3776_v1, %v853_v46 }
 0x195   :  { %2025 = vst [vmem:[#allocation1 + $0x6] ss:$9 sm:$0xff] %v1551_v51  ;;  %v3818_v51 = vpop.f32.mrf.mxu2  ;;  %v1560_v55 = vrot.slane %v1366_v47, 1  ;;  %v1561_v60 = vrot.slane %v1366_v47, 2  ;;  %v1562_v62 = vrot.slane %v1366_v47, 3  ;;  %v1563_v63 = vrot.slane %v1366_v47, 4 }
 0x196   :  { %2026 = vst [vmem:[#allocation1 + $0x7] ss:$9 sm:$0xff] %v1552_v59  ;;  %v3820_v59 = vpop.f32.mrf.mxu3  ;;  %v1054_v0 = vmax.f32 %v990_v49, 0.0  ;;  %v1565_v4 = vrot.slane %v1366_v47, 6 }
 0x19d   :  { %v3808_v14 = vld [vmem:[#allocation1] sm:$0xff]  ;;  %v3826_v31 = vpop.f32.mrf.mxu2 }
 0x19e   :  { %2028 = vst [vmem:[#allocation1] ss:$9 sm:$0xff] %v1365_v3  ;;  %v1564_v3 = vrot.slane %v1366_v47, 5 }
 0x19f   :  { %2029 = vst [vmem:[#allocation1 + $0x1] ss:$9 sm:$0xff] %v1553_v8  ;;  %v1120_v8 = vmul.f32 %v3786_v16, %v1054_v0 }
 0x1a0   :  { %2030 = vst [vmem:[#allocation1 + $0x2] ss:$9 sm:$0xff] %v1554_v9  ;;  %v1566_v9 = vrot.slane %v1366_v47, 7 }
 0x1a1   :  { %2031 = vst [vmem:[#allocation1 + $0x3] ss:$9 sm:$0xff] %v1555_v17  ;;  %v855_v17 = vpop.f32.mrf.mxu1 }
 0x1a2   :  { %2032 = vst [vmem:[#allocation1 + $0x4] ss:$9 sm:$0xff] %v1556_v20  ;;  %v1240_v20 = vsel %vm157_vm0, %v1120_v8, 0.0 }
 0x1a3   :  { %2033 = vst [vmem:[#allocation1 + $0x5] ss:$9 sm:$0xff] %v1557_v21  ;;  %v1194_v21 = vpop.xlane.xlu2 %1193  ;;  %1241 = vadd.xlane.f32.xlu1 %v1240_v20 }
 0x1a4   :  { %2034 = vst [vmem:[#allocation1 + $0x6] ss:$9 sm:$0xff] %v1558_v30  ;;  %v856_v30 = vadd.f32 %v855_v17, %v454_v12  ;;  %v1367_v34 = vadd.f32 %v3664_v5, %v1194_v21  ;;  %v874_v12 = vadd.f32 %v3580_v11, %v3578_v10  ;;  %v1197_v21 = vpop.xlane.xlu1 %1196  ;;  %v868_v10 = vadd.f32 %v3524_v40, %v3522_v39 }
 0x1a5   :  { %2035 = vst [vmem:[#allocation1 + $0x7] ss:$9 sm:$0xff] %v1559_v33  ;;  %v3828_v33 = vpop.f32.mrf.mxu3 }
 0x1a6   :  { %v991_v36 = vadd.f32 %v3776_v1, %v856_v30  ;;  %v1567_v41 = vrot.slane %v1367_v34, 1  ;;  %v1568_v46 = vrot.slane %v1367_v34, 2  ;;  %v1570_v0 = vrot.slane %v1367_v34, 4 }
 0x1a7   :  { %v1573_v23 = vrot.slane %v1367_v34, 7 }
 0x1a9   :  { %v858_v17 = vpop.f32.mrf.mxu1 }
 0x1aa   :  { %v859_v30 = vadd.f32 %v858_v17, %v457_v24  ;;  %v995_v24 = vadd.f32 %v3776_v1, %v868_v10 }
 0x1ab   :  { %v1200_v10 = vpop.xlane.xlu2 %1199 }
 0x1ac   :  { %v3822_v61 = vld [vmem:[#allocation1] sm:$0xff] }
 0x1ad   :  { %2037 = vst [vmem:[#allocation1] ss:$9 sm:$0xff] %v1366_v47  ;;  %v1055_v47 = vmax.f32 %v991_v36, 0.0  ;;  %v3840_v8 = vpop.f32.mrf.mxu3  ;;  %v997_v36 = vadd.f32 %v3776_v1, %v874_v12 }
 0x1ae   :  { %2038 = vst [vmem:[#allocation1 + $0x1] ss:$9 sm:$0xff] %v1560_v55  ;;  %v1569_v55 = vrot.slane %v1367_v34, 3 }
 0x1af   :  { %2039 = vst [vmem:[#allocation1 + $0x2] ss:$9 sm:$0xff] %v1561_v60  ;;  %v994_v60 = vadd.f32 %v3776_v1, %v865_v38  ;;  %v1061_v11 = vmax.f32 %v997_v36, 0.0 }
 0x1b0   :  { %2040 = vst [vmem:[#allocation1 + $0x3] ss:$9 sm:$0xff] %v1562_v62  ;;  %v1571_v62 = vrot.slane %v1367_v34, 5 }
 0x1b1   :  { %2041 = vst [vmem:[#allocation1 + $0x4] ss:$9 sm:$0xff] %v1563_v63  ;;  %v3837_v63 = vpop.f32.mrf.mxu2  ;;  %v861_v36 = vpop.f32.mrf.mxu1 }
 0x1b2   :  { %2042 = vst [vmem:[#allocation1 + $0x5] ss:$9 sm:$0xff] %v1564_v3  ;;  %v1572_v3 = vrot.slane %v1367_v34, 6 }
 0x1b3   :  { %2043 = vst [vmem:[#allocation1 + $0x6] ss:$9 sm:$0xff] %v1565_v4  ;;  %v1121_v4 = vmul.f32 %v3786_v16, %v1055_v47 }
 0x1b4   :  { %2044 = vst [vmem:[#allocation1 + $0x7] ss:$9 sm:$0xff] %v1566_v9  ;;  %v1058_v9 = vmax.f32 %v994_v60, 0.0 }
 0x1b5   :  { %v1243_v20 = vsel %vm157_vm0, %v1121_v4, 0.0 }
 0x1b6   :  { %1244 = vadd.xlane.f32.xlu2 %v1243_v20  ;;  %v1124_v38 = vmul.f32 %v3786_v16, %v1058_v9  ;;  %v460_v20 = vpop.f32.mrf.mxu0 }
 0x1b9   :  { %v3854_v60 = vpop.f32.mrf.mxu2 }
 0x1bb   :  { %v3834_v49 = vld [vmem:[#allocation1] sm:$0xff] }
 0x1bc   :  { %2046 = vst [vmem:[#allocation1] ss:$9 sm:$0xff] %v1367_v34  ;;  %v1368_v34 = vadd.f32 %v3664_v5, %v1197_v21  ;;  %v1059_v21 = vmax.f32 %v995_v24, 0.0  ;;  %v871_v24 = vadd.f32 %v3550_v54, %v3548_v53 }
 0x1bd   :  { %2047 = vst [vmem:[#allocation1 + $0x1] ss:$9 sm:$0xff] %v1567_v41  ;;  %v992_v41 = vadd.f32 %v3776_v1, %v859_v30  ;;  %v877_v30 = vadd.f32 %v3606_v27, %v3604_v26  ;;  %v1369_v26 = vadd.f32 %v3664_v5, %v1200_v10 }
 0x1be   :  { %2048 = vst [vmem:[#allocation1 + $0x2] ss:$9 sm:$0xff] %v1568_v46  ;;  %v883_v46 = vadd.f32 %v3645_v58, %v3643_v57  ;;  %v1574_v47 = vrot.slane %v1368_v34, 1  ;;  %v1577_v39 = vrot.slane %v1368_v34, 4  ;;  %v1578_v57 = vrot.slane %v1368_v34, 5 }
 0x1bf   :  { %2049 = vst [vmem:[#allocation1 + $0x3] ss:$9 sm:$0xff] %v1569_v55  ;;  %v1252_v55 = vsel %vm157_vm0, %v1124_v38, 0.0  ;;  %v1127_v58 = vmul.f32 %v3786_v16, %v1061_v11  ;;  %v1579_v9 = vrot.slane %v1368_v34, 6  ;;  %v1580_v17 = vrot.slane %v1368_v34, 7 }
 0x1c0   :  { %2050 = vst [vmem:[#allocation1 + $0x4] ss:$9 sm:$0xff] %v1570_v0  ;;  %v3856_v0 = vpop.f32.mrf.mxu3  ;;  %1253 = vadd.xlane.f32.xlu2 %v1252_v55  ;;  %v1000_v40 = vadd.f32 %v3776_v1, %v883_v46  ;;  %v862_v46 = vadd.f32 %v861_v36, %v460_v20  ;;  %v1125_v27 = vmul.f32 %v3786_v16, %v1059_v21  ;;  %v1583_v20 = vrot.slane %v1369_v26, 3 }
 0x1c1   :  { %2051 = vst [vmem:[#allocation1 + $0x5] ss:$9 sm:$0xff] %v1571_v62  ;;  %v1575_v62 = vrot.slane %v1368_v34, 2  ;;  %v1261_v11 = vsel %vm157_vm0, %v1127_v58, 0.0  ;;  %v996_v53 = vadd.f32 %v3776_v1, %v871_v24  ;;  %v1584_v54 = vrot.slane %v1369_v26, 4 }
 0x1c2   :  { %2052 = vst [vmem:[#allocation1 + $0x6] ss:$9 sm:$0xff] %v1572_v3  ;;  %v1056_v3 = vmax.f32 %v992_v41, 0.0  ;;  %v1064_v41 = vmax.f32 %v1000_v40, 0.0  ;;  %v886_v40 = vadd.f32 %v3672_v25, %v3670_v22  ;;  %v1255_v58 = vsel %vm157_vm0, %v1125_v27, 0.0 }
 0x1c3   :  { %2053 = vst [vmem:[#allocation1 + $0x7] ss:$9 sm:$0xff] %v1573_v23  ;;  %v1576_v23 = vrot.slane %v1368_v34, 3  ;;  %v1585_v25 = vrot.slane %v1369_v26, 5  ;;  %v1586_v36 = vrot.slane %v1369_v26, 6 }
 0x1c4   :  { %v1122_v12 = vmul.f32 %v3786_v16, %v1056_v3  ;;  %v993_v3 = vadd.f32 %v3776_v1, %v862_v46  ;;  %v1001_v22 = vadd.f32 %v3776_v1, %v886_v40  ;;  %v1587_v46 = vrot.slane %v1369_v26, 7 }
 0x1c5   :  { %v895_v40 = vadd.f32 %v3796_v37, %v3794_v35 }
 0x1c6   :  { %v1246_v38 = vsel %vm157_vm0, %v1122_v12, 0.0  ;;  %v1582_v12 = vrot.slane %v1369_v26, 2 }
 0x1c7   :  { %1247 = vadd.xlane.f32.xlu0 %v1246_v38 }
 0x1c8   :  { %1262 = vadd.xlane.f32.xlu2 %v1261_v11  ;;  %v3871_v55 = vpop.f32.mrf.mxu3  ;;  %v1060_v11 = vmax.f32 %v996_v53, 0.0 }
 0x1ca   :  { %v3858_v4 = vld [vmem:[#allocation1] sm:$0xff] }
 0x1cb   :  { %2055 = vst [vmem:[#allocation1] ss:$9 sm:$0xff] %v1368_v34  ;;  %v998_v34 = vadd.f32 %v3776_v1, %v877_v30 }
 0x1cc   :  { %2056 = vst [vmem:[#allocation1 + $0x1] ss:$9 sm:$0xff] %v1574_v47  ;;  %v3869_v47 = vpop.f32.mrf.mxu2 }
 0x1cd   :  { %2057 = vst [vmem:[#allocation1 + $0x2] ss:$9 sm:$0xff] %v1575_v62  ;;  %v892_v62 = vadd.f32 %v3789_v19, %v3781_v13 }
 0x1ce   :  { %2058 = vst [vmem:[#allocation1 + $0x3] ss:$9 sm:$0xff] %v1576_v23  ;;  %v1130_v23 = vmul.f32 %v3786_v16, %v1064_v41 }
 0x1cf   :  { %2059 = vst [vmem:[#allocation1 + $0x4] ss:$9 sm:$0xff] %v1577_v39  ;;  %v1062_v39 = vmax.f32 %v998_v34, 0.0  ;;  %1256 = vadd.xlane.f32.xlu0 %v1255_v58  ;;  %v880_v34 = vadd.f32 %v3629_v43, %v3627_v42  ;;  %v1126_v42 = vmul.f32 %v3786_v16, %v1060_v11 }
 0x1d0   :  { %2060 = vst [vmem:[#allocation1 + $0x5] ss:$9 sm:$0xff] %v1578_v57  ;;  %v1581_v57 = vrot.slane %v1369_v26, 1  ;;  %v1270_v13 = vsel %vm157_vm0, %v1130_v23, 0.0  ;;  %v3894_v10 = vpop.f32.mrf.mxu3 }
 0x1d1   :  { %2061 = vst [vmem:[#allocation1 + $0x6] ss:$9 sm:$0xff] %v1579_v9  ;;  %v1003_v9 = vadd.f32 %v3776_v1, %v892_v62  ;;  %1271 = vadd.xlane.f32.xlu2 %v1270_v13  ;;  %v1128_v21 = vmul.f32 %v3786_v16, %v1062_v39  ;;  %v1065_v62 = vmax.f32 %v1001_v22, 0.0 }
 0x1d2   :  { %2062 = vst [vmem:[#allocation1 + $0x7] ss:$9 sm:$0xff] %v1580_v17  ;;  %v1057_v17 = vmax.f32 %v993_v3, 0.0  ;;  %v1203_v3 = vpop.xlane.xlu0 %1202 }
 0x1d3   :  { %v1067_v30 = vmax.f32 %v1003_v9, 0.0  ;;  %v1264_v23 = vsel %vm157_vm0, %v1128_v21, 0.0  ;;  %v1370_v39 = vadd.f32 %v3664_v5, %v1203_v3 }
 0x1d4   :  { %v1123_v38 = vmul.f32 %v3786_v16, %v1057_v17  ;;  %v3892_v41 = vpop.f32.mrf.mxu2  ;;  %v1004_v17 = vadd.f32 %v3776_v1, %v895_v40 }
 0x1d5   :  { %v1133_v24 = vmul.f32 %v3786_v16, %v1067_v30  ;;  %v1588_v9 = vrot.slane %v1370_v39, 1  ;;  %v1589_v53 = vrot.slane %v1370_v39, 2  ;;  %v1590_v35 = vrot.slane %v1370_v39, 3 }
 0x1d6   :  { %v1249_v27 = vsel %vm157_vm0, %v1123_v38, 0.0  ;;  %v1591_v37 = vrot.slane %v1370_v39, 4  ;;  %v1592_v21 = vrot.slane %v1370_v39, 5  ;;  %v1593_v38 = vrot.slane %v1370_v39, 6 }
 0x1d7   :  { %1250 = vadd.xlane.f32.xlu1 %v1249_v27  ;;  %1265 = vadd.xlane.f32.xlu0 %v1264_v23  ;;  %v1279_v43 = vsel %vm157_vm0, %v1133_v24, 0.0 }
 0x1d9   :  { %v3886_v19 = vld [vmem:[#allocation1] sm:$0xff]  ;;  %1280 = vadd.xlane.f32.xlu2 %v1279_v43 }
 0x1da   :  { %2064 = vst [vmem:[#allocation1] ss:$9 sm:$0xff] %v1369_v26  ;;  %v999_v26 = vadd.f32 %v3776_v1, %v880_v34  ;;  %v1206_v34 = vpop.xlane.xlu1 %1205 }
 0x1db   :  { %2065 = vst [vmem:[#allocation1 + $0x1] ss:$9 sm:$0xff] %v1581_v57  ;;  %v1131_v57 = vmul.f32 %v3786_v16, %v1065_v62  ;;  %v1371_v23 = vadd.f32 %v3664_v5, %v1206_v34 }
 0x1dc   :  { %2066 = vst [vmem:[#allocation1 + $0x2] ss:$9 sm:$0xff] %v1582_v12  ;;  %v1063_v58 = vmax.f32 %v999_v26, 0.0  ;;  %v1258_v12 = vsel %vm157_vm0, %v1126_v42, 0.0  ;;  %v3910_v13 = vpop.f32.mrf.mxu2  ;;  %v898_v26 = vadd.f32 %v3804_v2, %v3802_v7  ;;  %v901_v42 = vadd.f32 %v3813_v32, %v3810_v29 }
 0x1dd   :  { %2067 = vst [vmem:[#allocation1 + $0x3] ss:$9 sm:$0xff] %v1583_v20  ;;  %v3912_v20 = vpop.f32.mrf.mxu3  ;;  %v1595_v43 = vrot.slane %v1371_v23, 1  ;;  %v1599_v7 = vrot.slane %v1371_v23, 5 }
 0x1de   :  { %2068 = vst [vmem:[#allocation1 + $0x4] ss:$9 sm:$0xff] %v1584_v54  ;;  %v1273_v54 = vsel %vm157_vm0, %v1131_v57, 0.0  ;;  %v1129_v30 = vmul.f32 %v3786_v16, %v1063_v58  ;;  %v1005_v40 = vadd.f32 %v3776_v1, %v898_v26  ;;  %v1596_v57 = vrot.slane %v1371_v23, 2 }
 0x1df   :  { %2069 = vst [vmem:[#allocation1 + $0x5] ss:$9 sm:$0xff] %v1585_v25  ;;  %1259 = vadd.xlane.f32.xlu1 %v1258_v12  ;;  %1274 = vadd.xlane.f32.xlu0 %v1273_v54  ;;  %v1002_v25 = vadd.f32 %v3776_v1, %v3687_v50  ;;  %v1600_v54 = vrot.slane %v1371_v23, 6 }
 0x1e0   :  { %2070 = vst [vmem:[#allocation1 + $0x6] ss:$9 sm:$0xff] %v1586_v36  ;;  %v1068_v36 = vmax.f32 %v1004_v17, 0.0  ;;  %v1267_v27 = vsel %vm157_vm0, %v1129_v30, 0.0  ;;  %v1597_v17 = vrot.slane %v1371_v23, 3  ;;  %v1069_v2 = vmax.f32 %v1005_v40, 0.0 }
 0x1e1   :  { %2071 = vst [vmem:[#allocation1 + $0x7] ss:$9 sm:$0xff] %v1587_v46  ;;  %v1594_v46 = vrot.slane %v1370_v39, 7  ;;  %v1066_v11 = vmax.f32 %v1002_v25, 0.0  ;;  %v1209_v25 = vpop.xlane.xlu2 %1208 }
 0x1e2   :  { %v1134_v62 = vmul.f32 %v3786_v16, %v1068_v36  ;;  %v1372_v36 = vadd.f32 %v3664_v5, %v1209_v25 }
 0x1e4   :  { %v3922_v50 = vpop.f32.mrf.mxu2  ;;  %v1282_v24 = vsel %vm157_vm0, %v1134_v62, 0.0  ;;  %v1602_v34 = vrot.slane %v1372_v36, 1  ;;  %v1607_v40 = vrot.slane %v1372_v36, 6 }
 0x1e5   :  { %v3924_v3 = vpop.f32.mrf.mxu3 }
 0x1e7   :  { %1268 = vadd.xlane.f32.xlu1 %v1267_v27  ;;  %1283 = vadd.xlane.f32.xlu0 %v1282_v24 }
 0x1e8   :  { %v3915_v22 = vld [vmem:[#allocation1] sm:$0xff] }
 0x1e9   :  { %2073 = vst [vmem:[#allocation1] ss:$9 sm:$0xff] %v1370_v39  ;;  %v1132_v39 = vmul.f32 %v3786_v16, %v1066_v11  ;;  %v904_v11 = vadd.f32 %v3820_v59, %v3818_v51  ;;  %v1608_v51 = vrot.slane %v1372_v36, 7  ;;  %v910_v59 = vadd.f32 %v3840_v8, %v3837_v63 }
 0x1ea   :  { %2074 = vst [vmem:[#allocation1 + $0x1] ss:$9 sm:$0xff] %v1588_v9  ;;  %v1006_v9 = vadd.f32 %v3776_v1, %v901_v42  ;;  %v1605_v42 = vrot.slane %v1372_v36, 4 }
 0x1eb   :  { %2075 = vst [vmem:[#allocation1 + $0x2] ss:$9 sm:$0xff] %v1589_v53  ;;  %v1276_v58 = vsel %vm157_vm0, %v1132_v39, 0.0  ;;  %v1598_v53 = vrot.slane %v1371_v23, 4  ;;  %v1007_v24 = vadd.f32 %v3776_v1, %v904_v11  ;;  %v1604_v39 = vrot.slane %v1372_v36, 3 }
 0x1ec   :  { %2076 = vst [vmem:[#allocation1 + $0x3] ss:$9 sm:$0xff] %v1590_v35  ;;  %v1070_v29 = vmax.f32 %v1006_v9, 0.0  ;;  %v3938_v32 = vpop.f32.mrf.mxu2 }
 0x1ed   :  { %2077 = vst [vmem:[#allocation1 + $0x4] ss:$9 sm:$0xff] %v1591_v37  ;;  %v3940_v35 = vpop.f32.mrf.mxu3  ;;  %v1601_v37 = vrot.slane %v1371_v23, 7 }
 0x1ee   :  { %2078 = vst [vmem:[#allocation1 + $0x5] ss:$9 sm:$0xff] %v1592_v21  ;;  %v1135_v21 = vmul.f32 %v3786_v16, %v1069_v2  ;;  %v1136_v30 = vmul.f32 %v3786_v16, %v1070_v29  ;;  %v1009_v2 = vadd.f32 %v3776_v1, %v910_v59  ;;  %v907_v29 = vadd.f32 %v3828_v33, %v3826_v31 }
 0x1ef   :  { %2079 = vst [vmem:[#allocation1 + $0x6] ss:$9 sm:$0xff] %v1593_v38  ;;  %1277 = vadd.xlane.f32.xlu1 %v1276_v58  ;;  %v1212_v58 = vpop.xlane.xlu0 %1211 }
 0x1f0   :  { %2080 = vst [vmem:[#allocation1 + $0x7] ss:$9 sm:$0xff] %v1594_v46  ;;  %v1285_v38 = vsel %vm157_vm0, %v1135_v21, 0.0  ;;  %v1288_v46 = vsel %vm157_vm0, %v1136_v30, 0.0  ;;  %v1073_v8 = vmax.f32 %v1009_v2, 0.0  ;;  %v1008_v25 = vadd.f32 %v3776_v1, %v907_v29 }
 0x1f1   :  { %1289 = vadd.xlane.f32.xlu2 %v1288_v46 }
 0x1f2   :  { %v1139_v11 = vmul.f32 %v3786_v16, %v1073_v8 }
 0x1f4   :  { %v3949_v27 = vpop.f32.mrf.mxu2 }
 0x1f5   :  { %v3951_v62 = vpop.f32.mrf.mxu3 }
 0x1f7   :  { %v3936_v12 = vld [vmem:[#allocation1] sm:$0xff]  ;;  %1286 = vadd.xlane.f32.xlu1 %v1285_v38 }
 0x1f8   :  { %2082 = vst [vmem:[#allocation1] ss:$9 sm:$0xff] %v1371_v23  ;;  %v1603_v23 = vrot.slane %v1372_v36, 2 }
 0x1f9   :  { %2083 = vst [vmem:[#allocation1 + $0x1] ss:$9 sm:$0xff] %v1595_v43  ;;  %v1606_v43 = vrot.slane %v1372_v36, 5 }
 0x1fa   :  { %2084 = vst [vmem:[#allocation1 + $0x2] ss:$9 sm:$0xff] %v1596_v57  ;;  %v1071_v57 = vmax.f32 %v1007_v24, 0.0  ;;  %v1297_v24 = vsel %vm157_vm0, %v1139_v11, 0.0 }
 0x1fb   :  { %2085 = vst [vmem:[#allocation1 + $0x3] ss:$9 sm:$0xff] %v1597_v17  ;;  %1298 = vadd.xlane.f32.xlu2 %v1297_v24  ;;  %v928_v24 = vadd.f32 %v3940_v35, %v3938_v32 }
 0x1fc   :  { %2086 = vst [vmem:[#allocation1 + $0x4] ss:$9 sm:$0xff] %v1598_v53  ;;  %v1137_v9 = vmul.f32 %v3786_v16, %v1071_v57  ;;  %v3959_v17 = vpop.f32.mrf.mxu2  ;;  %v84_v57 = vld [vmem:[%s4452_s0 + $0x1f8] sm:$0xff] }
 0x1fd   :  { %2087 = vst [vmem:[#allocation1 + $0x5] ss:$9 sm:$0xff] %v1599_v7  ;;  %v3961_v53 = vpop.f32.mrf.mxu3  ;;  %v1373_v7 = vadd.f32 %v3664_v5, %v1212_v58  ;;  %3020 = vmatmul.msk.f32.gmra.mxu3 %vm157_vm0, %v84_v57 }
 0x1fe   :  { %2088 = vst [vmem:[#allocation1 + $0x6] ss:$9 sm:$0xff] %v1600_v54  ;;  %v1291_v54 = vsel %vm157_vm0, %v1137_v9, 0.0 }
 0x1ff   :  { %2089 = vst [vmem:[#allocation1 + $0x7] ss:$9 sm:$0xff] %v1601_v37  ;;  %1292 = vadd.xlane.f32.xlu0 %v1291_v54  ;;  %v1609_v63 = vrot.slane %v1373_v7, 1  ;;  %v1610_v37 = vrot.slane %v1373_v7, 2  ;;  %v1611_v30 = vrot.slane %v1373_v7, 3  ;;  %v1613_v38 = vrot.slane %v1373_v7, 5 }
 0x200   :  { %v1614_v46 = vrot.slane %v1373_v7, 6 }
 0x204   :  { %v3972_v31 = vpop.f32.mrf.mxu2 }
 0x205   :  { %v3974_v33 = vpop.f32.mrf.mxu3 }
 0x206   :  { %v3954_v26 = vld [vmem:[#allocation1] sm:$0xff] }
 0x207   :  { %2091 = vst [vmem:[#allocation1] ss:$9 sm:$0xff] %v1372_v36  ;;  %v1612_v36 = vrot.slane %v1373_v7, 4 }
 0x208   :  { %2092 = vst [vmem:[#allocation1 + $0x1] ss:$9 sm:$0xff] %v1602_v34  ;;  %v1072_v34 = vmax.f32 %v1008_v25, 0.0 }
 0x209   :  { %2093 = vst [vmem:[#allocation1 + $0x2] ss:$9 sm:$0xff] %v1603_v23  ;;  %v1615_v23 = vrot.slane %v1373_v7, 7 }
 0x20a   :  { %2094 = vst [vmem:[#allocation1 + $0x3] ss:$9 sm:$0xff] %v1604_v39  ;;  %v913_v39 = vadd.f32 %v3856_v0, %v3854_v60  ;;  %v1138_v60 = vmul.f32 %v3786_v16, %v1072_v34  ;;  %v916_v34 = vadd.f32 %v3871_v55, %v3869_v47 }
 0x20b   :  { %2095 = vst [vmem:[#allocation1 + $0x4] ss:$9 sm:$0xff] %v1605_v42  ;;  %v919_v42 = vadd.f32 %v3894_v10, %v3892_v41 }
 0x20c   :  { %2096 = vst [vmem:[#allocation1 + $0x5] ss:$9 sm:$0xff] %v1606_v43  ;;  %v1215_v43 = vpop.xlane.xlu1 %1214  ;;  %v1010_v41 = vadd.f32 %v3776_v1, %v913_v39  ;;  %v3994_v2 = vpop.f32.mrf.mxu2  ;;  %v1011_v47 = vadd.f32 %v3776_v1, %v916_v34 }
 0x20d   :  { %2097 = vst [vmem:[#allocation1 + $0x6] ss:$9 sm:$0xff] %v1607_v40  ;;  %v152_v40 = vld [vmem:[%s4453_s1 + $0x1f8] sm:$0xff]  ;;  %v1374_v0 = vadd.f32 %v3664_v5, %v1215_v43  ;;  %v1012_v10 = vadd.f32 %v3776_v1, %v919_v42  ;;  %v3996_v54 = vpop.f32.mrf.mxu3  ;;  %v1218_v39 = vpop.xlane.xlu2 %1217 }
 0x20e   :  { %2098 = vst [vmem:[#allocation1 + $0x7] ss:$9 sm:$0xff] %v1608_v51  ;;  %2956 = vmatmul.msk.f32.gmra.mxu2 %vm157_vm0, %v152_v40  ;;  %v1294_v51 = vsel %vm157_vm0, %v1138_v60, 0.0  ;;  %v1074_v58 = vmax.f32 %v1010_v41, 0.0  ;;  %v1375_v42 = vadd.f32 %v3664_v5, %v1218_v39  ;;  %v1075_v32 = vmax.f32 %v1011_v47, 0.0  ;;  %v1221_v34 = vpop.xlane.xlu0 %1220 }
 0x20f   :  { %1295 = vadd.xlane.f32.xlu1 %v1294_v51  ;;  %v1616_v59 = vrot.slane %v1374_v0, 1  ;;  %v1076_v9 = vmax.f32 %v1012_v10, 0.0  ;;  %v1619_v8 = vrot.slane %v1374_v0, 4  ;;  %v1621_v25 = vrot.slane %v1374_v0, 6 }
 0x210   :  { %v1624_v60 = vrot.slane %v1375_v42, 2  ;;  %v1625_v41 = vrot.slane %v1375_v42, 3  ;;  %v1626_v10 = vrot.slane %v1375_v42, 4  ;;  %v1627_v51 = vrot.slane %v1375_v42, 5 }
 0x214   :  { %v4011_v43 = vpop.f32.mrf.mxu2 }
 0x215   :  { %v3969_v21 = vld [vmem:[#allocation1] sm:$0xff]  ;;  %v4013_v40 = vpop.f32.mrf.mxu3 }
 0x216   :  { %2100 = vst [vmem:[#allocation1] ss:$9 sm:$0xff] %v1373_v7  ;;  %v1617_v7 = vrot.slane %v1374_v0, 2 }
 0x217   :  { %2101 = vst [vmem:[#allocation1 + $0x1] ss:$9 sm:$0xff] %v1609_v63  ;;  %v1618_v63 = vrot.slane %v1374_v0, 3 }
 0x218   :  { %2102 = vst [vmem:[#allocation1 + $0x2] ss:$9 sm:$0xff] %v1610_v37  ;;  %v1620_v37 = vrot.slane %v1374_v0, 5 }
 0x219   :  { %2103 = vst [vmem:[#allocation1 + $0x3] ss:$9 sm:$0xff] %v1611_v30  ;;  %v1142_v30 = vmul.f32 %v3786_v16, %v1076_v9  ;;  %v1141_v9 = vmul.f32 %v3786_v16, %v1075_v32 }
 0x21a   :  { %2104 = vst [vmem:[#allocation1 + $0x4] ss:$9 sm:$0xff] %v1612_v36  ;;  %v1140_v36 = vmul.f32 %v3786_v16, %v1074_v58 }
 0x21b   :  { %2105 = vst [vmem:[#allocation1 + $0x5] ss:$9 sm:$0xff] %v1613_v38  ;;  %v1622_v38 = vrot.slane %v1374_v0, 7 }
 0x21c   :  { %2106 = vst [vmem:[#allocation1 + $0x6] ss:$9 sm:$0xff] %v1614_v46  ;;  %v1306_v46 = vsel %vm157_vm0, %v1142_v30, 0.0  ;;  %v1300_v11 = vsel %vm157_vm0, %v1140_v36, 0.0  ;;  %v1303_v30 = vsel %vm157_vm0, %v1141_v9, 0.0  ;;  %v934_v9 = vadd.f32 %v3961_v53, %v3959_v17 }
 0x21d   :  { %2107 = vst [vmem:[#allocation1 + $0x7] ss:$9 sm:$0xff] %v1615_v23  ;;  %v922_v23 = vadd.f32 %v3912_v20, %v3910_v13  ;;  %1307 = vadd.xlane.f32.xlu2 %v1306_v46  ;;  %1301 = vadd.xlane.f32.xlu0 %v1300_v11  ;;  %v1015_v13 = vadd.f32 %v3776_v1, %v928_v24  ;;  %v1623_v20 = vrot.slane %v1375_v42, 1 }
 0x21e   :  { %v931_v46 = vadd.f32 %v3951_v62, %v3949_v27  ;;  %v937_v11 = vadd.f32 %v3974_v33, %v3972_v31  ;;  %1304 = vadd.xlane.f32.xlu1 %v1303_v30 }
 0x21f   :  { %v1013_v55 = vadd.f32 %v3776_v1, %v922_v23  ;;  %v1079_v57 = vmax.f32 %v1015_v13, 0.0  ;;  %v1376_v23 = vadd.f32 %v3664_v5, %v1221_v34 }
 0x220   :  { %v1016_v39 = vadd.f32 %v3776_v1, %v931_v46  ;;  %v1017_v46 = vadd.f32 %v3776_v1, %v934_v9 }
 0x221   :  { %v1077_v35 = vmax.f32 %v1013_v55, 0.0  ;;  %v1145_v58 = vmul.f32 %v3786_v16, %v1079_v57  ;;  %v1631_v31 = vrot.slane %v1376_v23, 2  ;;  %v1632_v13 = vrot.slane %v1376_v23, 3 }
 0x222   :  { %v1080_v62 = vmax.f32 %v1016_v39, 0.0  ;;  %v1634_v32 = vrot.slane %v1376_v23, 5 }
 0x224   :  { %v3998_v29 = vld [vmem:[#allocation1] sm:$0xff] }
 0x225   :  { %2109 = vst [vmem:[#allocation1] ss:$9 sm:$0xff] %v1374_v0 }
 0x226   :  { %2110 = vst [vmem:[#allocation1 + $0x1] ss:$9 sm:$0xff] %v1616_v59  ;;  %v1628_v59 = vrot.slane %v1375_v42, 6 }
 0x227   :  { %2111 = vst [vmem:[#allocation1 + $0x2] ss:$9 sm:$0xff] %v1617_v7  ;;  %v1143_v7 = vmul.f32 %v3786_v16, %v1077_v35  ;;  %v1635_v35 = vrot.slane %v1376_v23, 6 }
 0x228   :  { %2112 = vst [vmem:[#allocation1 + $0x3] ss:$9 sm:$0xff] %v1618_v63  ;;  %v1629_v63 = vrot.slane %v1375_v42, 7 }
 0x229   :  { %2113 = vst [vmem:[#allocation1 + $0x4] ss:$9 sm:$0xff] %v1619_v8  ;;  %v544_v8 = vpop.f32.mrf.mxu2  ;;  %v1309_v36 = vsel %vm157_vm0, %v1143_v7, 0.0  ;;  %v940_v7 = vadd.f32 %v3996_v54, %v3994_v2  ;;  %v1081_v54 = vmax.f32 %v1017_v46, 0.0 }
 0x22a   :  { %2114 = vst [vmem:[#allocation1 + $0x5] ss:$9 sm:$0xff] %v1620_v37  ;;  %v945_v37 = vpop.f32.mrf.mxu3  ;;  %1310 = vadd.xlane.f32.xlu0 %v1309_v36 }
 0x22b   :  { %2115 = vst [vmem:[#allocation1 + $0x6] ss:$9 sm:$0xff] %v1621_v25  ;;  %v1315_v25 = vsel %vm157_vm0, %v1145_v58, 0.0  ;;  %v1019_v17 = vadd.f32 %v3776_v1, %v940_v7 }
 0x22c   :  { %2116 = vst [vmem:[#allocation1 + $0x7] ss:$9 sm:$0xff] %v1622_v38  ;;  %v925_v38 = vadd.f32 %v3924_v3, %v3922_v50  ;;  %1316 = vadd.xlane.f32.xlu2 %v1315_v25  ;;  %v1018_v50 = vadd.f32 %v3776_v1, %v937_v11  ;;  %v1630_v3 = vrot.slane %v1376_v23, 1  ;;  %v1224_v25 = vpop.xlane.xlu1 %1223 }
 0x22d   :  { %v1377_v30 = vadd.f32 %v3664_v5, %v1224_v25 }
 0x22e   :  { %v1014_v24 = vadd.f32 %v3776_v1, %v925_v38 }
 0x22f   :  { %v1637_v2 = vrot.slane %v1377_v30, 1  ;;  %v1638_v11 = vrot.slane %v1377_v30, 2  ;;  %v1641_v39 = vrot.slane %v1377_v30, 5 }
 0x230   :  { %v1078_v27 = vmax.f32 %v1014_v24, 0.0  ;;  %v1640_v24 = vrot.slane %v1377_v30, 4 }
 0x231   :  { %v547_v33 = vpop.f32.mrf.mxu2 }
 0x232   :  { %v948_v47 = vpop.f32.mrf.mxu3 }
 0x233   :  { %v4018_v0 = vld [vmem:[#allocation1] sm:$0xff] }
 0x234   :  { %2118 = vst [vmem:[#allocation1] ss:$9 sm:$0xff] %v1375_v42  ;;  %v1082_v42 = vmax.f32 %v1018_v50, 0.0  ;;  %v1642_v50 = vrot.slane %v1377_v30, 6 }
 0x235   :  { %2119 = vst [vmem:[#allocation1 + $0x1] ss:$9 sm:$0xff] %v1623_v20  ;;  %v1633_v20 = vrot.slane %v1376_v23, 4 }
 0x236   :  { %2120 = vst [vmem:[#allocation1 + $0x2] ss:$9 sm:$0xff] %v1624_v60  ;;  %v1148_v57 = vmul.f32 %v3786_v16, %v1082_v42  ;;  %v1144_v60 = vmul.f32 %v3786_v16, %v1078_v27  ;;  %v1147_v27 = vmul.f32 %v3786_v16, %v1081_v54 }
 0x237   :  { %2121 = vst [vmem:[#allocation1 + $0x3] ss:$9 sm:$0xff] %v1625_v41  ;;  %v1146_v41 = vmul.f32 %v3786_v16, %v1080_v62  ;;  %v1643_v62 = vrot.slane %v1377_v30, 7 }
 0x238   :  { %2122 = vst [vmem:[#allocation1 + $0x4] ss:$9 sm:$0xff] %v1626_v10  ;;  %v1636_v10 = vrot.slane %v1376_v23, 7 }
 0x239   :  { %2123 = vst [vmem:[#allocation1 + $0x5] ss:$9 sm:$0xff] %v1627_v51  ;;  %v1324_v51 = vsel %vm157_vm0, %v1148_v57, 0.0  ;;  %v1318_v58 = vsel %vm157_vm0, %v1146_v41, 0.0  ;;  %v4049_v36 = vpop.f32.mrf.mxu2  ;;  %v949_v57 = vadd.f32 %v948_v47, %v547_v33 }
 0x23a   :  { %2124 = vst [vmem:[#allocation1 + $0x6] ss:$9 sm:$0xff] %v1628_v59  ;;  %v1312_v59 = vsel %vm157_vm0, %v1144_v60, 0.0  ;;  %1325 = vadd.xlane.f32.xlu2 %v1324_v51  ;;  %1319 = vadd.xlane.f32.xlu0 %v1318_v58  ;;  %v4051_v38 = vpop.f32.mrf.mxu3  ;;  %v1227_v60 = vpop.xlane.xlu2 %1226 }
 0x23b   :  { %2125 = vst [vmem:[#allocation1 + $0x7] ss:$9 sm:$0xff] %v1629_v63  ;;  %v946_v63 = vadd.f32 %v945_v37, %v544_v8  ;;  %1313 = vadd.xlane.f32.xlu1 %v1312_v59  ;;  %v1083_v8 = vmax.f32 %v1019_v17, 0.0  ;;  %v4080_v17 = vld [vmem:[%s4456_s4 + $0x1] ss:$0 sm:$0xff] }
 0x23d   :  { %v1021_v53 = vadd.f32 %v3776_v1, %v946_v63  ;;  %v1149_v1 = vmul.f32 %v3786_v16, %v1083_v8 }
 0x23f   :  { %v1085_v37 = vmax.f32 %v1021_v53, 0.0 }
 0x241   :  { %v553_v42 = vpop.f32.mrf.mxu2 }
 0x242   :  { %v4036_v55 = vld [vmem:[#allocation1] sm:$0xff] }
 0x243   :  { %2127 = vst [vmem:[#allocation1] ss:$9 sm:$0xff] %v1376_v23  ;;  %v1639_v23 = vrot.slane %v1377_v30, 3 }
 0x244   :  { %2128 = vst [vmem:[#allocation1 + $0x1] ss:$9 sm:$0xff] %v1630_v3  ;;  %v1151_v3 = vmul.f32 %v3786_v16, %v1085_v37  ;;  %v1378_v16 = vadd.f32 %v3664_v5, %v1227_v60 }
 0x245   :  { %2129 = vst [vmem:[#allocation1 + $0x2] ss:$9 sm:$0xff] %v1631_v31  ;;  %v954_v31 = vpop.f32.mrf.mxu3 }
 0x246   :  { %2130 = vst [vmem:[#allocation1 + $0x3] ss:$9 sm:$0xff] %v1632_v13  ;;  %v1333_v13 = vsel %vm157_vm0, %v1151_v3, 0.0  ;;  %v955_v41 = vadd.f32 %v954_v31, %v553_v42  ;;  %v1644_v33 = vrot.slane %v1378_v16, 1  ;;  %v1645_v58 = vrot.slane %v1378_v16, 2 }
 0x247   :  { %2131 = vst [vmem:[#allocation1 + $0x4] ss:$9 sm:$0xff] %v1633_v20  ;;  %v1321_v20 = vsel %vm157_vm0, %v1147_v27, 0.0  ;;  %1334 = vadd.xlane.f32.xlu2 %v1333_v13  ;;  %v1646_v63 = vrot.slane %v1378_v16, 3  ;;  %v1647_v25 = vrot.slane %v1378_v16, 4  ;;  %v1649_v46 = vrot.slane %v1378_v16, 6 }
 0x248   :  { %2132 = vst [vmem:[#allocation1 + $0x5] ss:$9 sm:$0xff] %v1634_v32  ;;  %v1327_v32 = vsel %vm157_vm0, %v1149_v1, 0.0  ;;  %1322 = vadd.xlane.f32.xlu1 %v1321_v20  ;;  %v1650_v8 = vrot.slane %v1378_v16, 7 }
 0x249   :  { %2133 = vst [vmem:[#allocation1 + $0x6] ss:$9 sm:$0xff] %v1635_v35  ;;  %v943_v35 = vadd.f32 %v4013_v40, %v4011_v43  ;;  %1328 = vadd.xlane.f32.xlu0 %v1327_v32 }
 0x24a   :  { %2134 = vst [vmem:[#allocation1 + $0x7] ss:$9 sm:$0xff] %v1636_v10  ;;  %v4070_v10 = vld [vmem:[%s4456_s4] ss:$0 sm:$0xff]  ;;  %s3067_s4 = smov [#allocation2]  }
 0x24b   :  { %v1020_v51 = vadd.f32 %v4070_v10, %v943_v35  ;;  %v1022_v43 = vadd.f32 %v4070_v10, %v949_v57  ;;  %v1024_v40 = vadd.f32 %v4070_v10, %v955_v41  ;;  %v1233_v57 = vpop.xlane.xlu1 %1232  ;;  %s2882_s7 = sshll.u32 %s3067_s4, 4  ;;  %s2883_s7 = int_to_ptr.vmem [resolvable:$true] %s2882_s7 }
 0x24c   :  { %v1380_v60 = vadd.f32 %v3664_v5, %v1233_v57 }
 0x24d   :  { %v1084_v47 = vmax.f32 %v1020_v51, 0.0  ;;  %v1086_v59 = vmax.f32 %v1022_v43, 0.0  ;;  %v1088_v9 = vmax.f32 %v1024_v40, 0.0 }
 0x24e   :  { %v1658_v41 = vrot.slane %v1380_v60, 1  ;;  %v1660_v43 = vrot.slane %v1380_v60, 3  ;;  %v1661_v40 = vrot.slane %v1380_v60, 4 }
 0x24f   :  { %v1154_v53 = vmul.f32 %v4080_v17, %v1088_v9  ;;  %v1152_v54 = vmul.f32 %v4080_v17, %v1086_v59  ;;  %v1664_v59 = vrot.slane %v1380_v60, 7 }
 0x251   :  { %v4056_v34 = vld [vmem:[#allocation1] sm:$0xff]  ;;  %v1342_v37 = vsel %vm157_vm0, %v1154_v53, 0.0 }
 0x252   :  { %2136 = vst [vmem:[#allocation1] ss:$9 sm:$0xff] %v1377_v30  ;;  %v1648_v30 = vrot.slane %v1378_v16, 5  ;;  %1343 = vadd.xlane.f32.xlu2 %v1342_v37 }
 0x253   :  { %2137 = vst [vmem:[#allocation1 + $0x1] ss:$9 sm:$0xff] %v1637_v2  ;;  %v1150_v2 = vmul.f32 %v4080_v17, %v1084_v47  ;;  %v1663_v47 = vrot.slane %v1380_v60, 6 }
 0x254   :  { %2138 = vst [vmem:[#allocation1 + $0x2] ss:$9 sm:$0xff] %v1638_v11 }
 0x255   :  { %2139 = vst [vmem:[#allocation1 + $0x3] ss:$9 sm:$0xff] %v1639_v23  ;;  %v1330_v11 = vsel %vm157_vm0, %v1150_v2, 0.0  ;;  %v1336_v23 = vsel %vm157_vm0, %v1152_v54, 0.0 }
 0x256   :  { %2140 = vst [vmem:[#allocation1 + $0x4] ss:$9 sm:$0xff] %v1640_v24  ;;  %v952_v24 = vadd.f32 %v4051_v38, %v4049_v36  ;;  %1331 = vadd.xlane.f32.xlu1 %v1330_v11  ;;  %1337 = vadd.xlane.f32.xlu0 %v1336_v23 }
 0x257   :  { %2141 = vst [vmem:[#allocation1 + $0x5] ss:$9 sm:$0xff] %v1641_v39  ;;  %v1230_v39 = vpop.xlane.xlu0 %1229 }
 0x258   :  { %2142 = vst [vmem:[#allocation1 + $0x6] ss:$9 sm:$0xff] %v1642_v50  ;;  %v1379_v50 = vadd.f32 %v3664_v5, %v1230_v39  ;;  %v1023_v3 = vadd.f32 %v4070_v10, %v952_v24 }
 0x259   :  { %2143 = vst [vmem:[#allocation1 + $0x7] ss:$9 sm:$0xff] %v1643_v62 }
 0x25a   :  { %v1651_v27 = vrot.slane %v1379_v50, 1  ;;  %v1087_v1 = vmax.f32 %v1023_v3, 0.0  ;;  %v1652_v62 = vrot.slane %v1379_v50, 2  ;;  %v1653_v31 = vrot.slane %v1379_v50, 3 }
 0x25b   :  { %v1654_v13 = vrot.slane %v1379_v50, 4  ;;  %v1655_v20 = vrot.slane %v1379_v50, 5  ;;  %v1656_v36 = vrot.slane %v1379_v50, 6  ;;  %v1657_v32 = vrot.slane %v1379_v50, 7 }
 0x25c   :  { %v1153_v38 = vmul.f32 %v4080_v17, %v1087_v1 }
 0x25e   :  { %v1339_v35 = vsel %vm157_vm0, %v1153_v38, 0.0 }
 0x25f   :  { %1340 = vadd.xlane.f32.xlu1 %v1339_v35  ;;  %v1239_v53 = vpop.xlane.xlu0 %1238 }
 0x260   :  { %v4075_v7 = vld [vmem:[#allocation1] sm:$0xff] }
 0x261   :  { %2145 = vst [vmem:[#allocation1] ss:$9 sm:$0xff] %v1378_v16  ;;  %v1659_v16 = vrot.slane %v1380_v60, 2 }
 0x262   :  { %2146 = vst [vmem:[#allocation1 + $0x1] ss:$9 sm:$0xff] %v1644_v33  ;;  %v1662_v33 = vrot.slane %v1380_v60, 5 }
 0x263   :  { %2147 = vst [vmem:[#allocation1 + $0x2] ss:$9 sm:$0xff] %v1645_v58 }
 0x264   :  { %2148 = vst [vmem:[#allocation1 + $0x3] ss:$9 sm:$0xff] %v1646_v63 }
 0x265   :  { %2149 = vst [vmem:[#allocation1 + $0x4] ss:$9 sm:$0xff] %v1647_v25 }
 0x266   :  { %2150 = vst [vmem:[#allocation1 + $0x5] ss:$9 sm:$0xff] %v1648_v30 }
 0x267   :  { %2151 = vst [vmem:[#allocation1 + $0x6] ss:$9 sm:$0xff] %v1649_v46 }
 0x268   :  { %2152 = vst [vmem:[#allocation1 + $0x7] ss:$9 sm:$0xff] %v1650_v8 }
 0x26a   :  { %2521 = vperm.xlu0 %3031, %v3720_v56   ;;  %2518 = vperm.xlu2 %3033, %v3706_v28   ;;  %v1236_v56 = vpop.xlane.xlu2 %1235 }
 0x26b   :  { %v1381_v58 = vadd.f32 %v3664_v5, %v1236_v56 }
 0x26d   :  { %v1665_v28 = vrot.slane %v1381_v58, 1  ;;  %v1666_v9 = vrot.slane %v1381_v58, 2  ;;  %v1667_v25 = vrot.slane %v1381_v58, 3  ;;  %v1668_v30 = vrot.slane %v1381_v58, 4 }
 0x26e   :  { %v1670_v46 = vrot.slane %v1381_v58, 6 }
 0x26f   :  { %v4092_v42 = vld [vmem:[#allocation1] sm:$0xff] }
 0x270   :  { %2154 = vst [vmem:[#allocation1] ss:$9 sm:$0xff] %v1379_v50 }
 0x271   :  { %2155 = vst [vmem:[#allocation1 + $0x1] ss:$9 sm:$0xff] %v1651_v27 }
 0x272   :  { %2156 = vst [vmem:[#allocation1 + $0x2] ss:$9 sm:$0xff] %v1652_v62  ;;  %2524 = vperm.xlu0 %3031, %v3734_v18   ;;  %2527 = vperm.xlu2 %3033, %v3748_v48   ;;  %v1669_v18 = vrot.slane %v1381_v58, 5  ;;  %v1671_v48 = vrot.slane %v1381_v58, 7 }
 0x273   :  { %2157 = vst [vmem:[#allocation1 + $0x3] ss:$9 sm:$0xff] %v1653_v31 }
 0x274   :  { %2158 = vst [vmem:[#allocation1 + $0x4] ss:$9 sm:$0xff] %v1654_v13 }
 0x275   :  { %2159 = vst [vmem:[#allocation1 + $0x5] ss:$9 sm:$0xff] %v1655_v20 }
 0x276   :  { %2160 = vst [vmem:[#allocation1 + $0x6] ss:$9 sm:$0xff] %v1656_v36 }
 0x277   :  { %2161 = vst [vmem:[#allocation1 + $0x7] ss:$9 sm:$0xff] %v1657_v32 }
 0x278   :  { %2515 = vperm.xlu1 %3032, %v3689_v52  }
 0x27a   :  { %2533 = vperm.xlu0 %3031, %v3768_v44   ;;  %2536 = vperm.xlu2 %3033, %v3779_v6   ;;  %v1382_v44 = vadd.f32 %v3664_v5, %v1239_v53 }
 0x27c   :  { %v1672_v52 = vrot.slane %v1382_v44, 1  ;;  %v1673_v6 = vrot.slane %v1382_v44, 2  ;;  %v1674_v54 = vrot.slane %v1382_v44, 3  ;;  %v1675_v8 = vrot.slane %v1382_v44, 4 }
 0x27d   :  { %v1676_v37 = vrot.slane %v1382_v44, 5 }
 0x27e   :  { %v4098_v51 = vld [vmem:[#allocation1] sm:$0xff] }
 0x27f   :  { %2163 = vst [vmem:[#allocation1] ss:$9 sm:$0xff] %v1380_v60 }
 0x280   :  { %2164 = vst [vmem:[#allocation1 + $0x1] ss:$9 sm:$0xff] %v1658_v41  ;;  %2530 = vperm.xlu1 %3032, %v3762_v15   ;;  %v1678_v15 = vrot.slane %v1382_v44, 7 }
 0x281   :  { %2165 = vst [vmem:[#allocation1 + $0x2] ss:$9 sm:$0xff] %v1659_v16 }
 0x282   :  { %2166 = vst [vmem:[#allocation1 + $0x3] ss:$9 sm:$0xff] %v1660_v43  ;;  %2542 = vperm.xlu0 %3031, %v3808_v14   ;;  %2545 = vperm.xlu2 %3033, %v3822_v61   ;;  %v1677_v14 = vrot.slane %v1382_v44, 6  ;;  %v1242_v61 = vpop.xlane.xlu1 %1241 }
 0x283   :  { %2167 = vst [vmem:[#allocation1 + $0x4] ss:$9 sm:$0xff] %v1661_v40 }
 0x284   :  { %2168 = vst [vmem:[#allocation1 + $0x5] ss:$9 sm:$0xff] %v1662_v33 }
 0x285   :  { %2169 = vst [vmem:[#allocation1 + $0x6] ss:$9 sm:$0xff] %v1663_v47 }
 0x286   :  { %2170 = vst [vmem:[#allocation1 + $0x7] ss:$9 sm:$0xff] %v1664_v59 }
 0x288   :  { %2539 = vperm.xlu1 %3032, %v3798_v45  }
 0x28a   :  { %2551 = vperm.xlu0 %3031, %v3858_v4   ;;  %2554 = vperm.xlu2 %3033, %v3886_v19   ;;  %v1383_v4 = vadd.f32 %v3664_v5, %v1242_v61  ;;  %v1251_v41 = vpop.xlane.xlu1 %1250 }
 0x28c   :  { %v1679_v45 = vrot.slane %v1383_v4, 1  ;;  %v1680_v11 = vrot.slane %v1383_v4, 2  ;;  %v1681_v23 = vrot.slane %v1383_v4, 3  ;;  %v1682_v24 = vrot.slane %v1383_v4, 4 }
 0x28d   :  { %v4105_v63 = vld [vmem:[#allocation1] sm:$0xff]  ;;  %v1683_v39 = vrot.slane %v1383_v4, 5  ;;  %v1684_v50 = vrot.slane %v1383_v4, 6 }
 0x28e   :  { %2172 = vst [vmem:[#allocation1] ss:$9 sm:$0xff] %v1381_v58 }
 0x28f   :  { %2173 = vst [vmem:[#allocation1 + $0x1] ss:$9 sm:$0xff] %v1665_v28 }
 0x290   :  { %2174 = vst [vmem:[#allocation1 + $0x2] ss:$9 sm:$0xff] %v1666_v9  ;;  %2548 = vperm.xlu1 %3032, %v3834_v49   ;;  %v1245_v49 = vpop.xlane.xlu2 %1244 }
 0x291   :  { %2175 = vst [vmem:[#allocation1 + $0x3] ss:$9 sm:$0xff] %v1667_v25 }
 0x292   :  { %2176 = vst [vmem:[#allocation1 + $0x4] ss:$9 sm:$0xff] %v1668_v30  ;;  %2560 = vperm.xlu0 %3031, %v3936_v12   ;;  %2563 = vperm.xlu2 %3033, %v3954_v26   ;;  %v1685_v12 = vrot.slane %v1383_v4, 7  ;;  %v1384_v26 = vadd.f32 %v3664_v5, %v1245_v49 }
 0x293   :  { %2177 = vst [vmem:[#allocation1 + $0x5] ss:$9 sm:$0xff] %v1669_v18 }
 0x294   :  { %2178 = vst [vmem:[#allocation1 + $0x6] ss:$9 sm:$0xff] %v1670_v46  ;;  %v1686_v3 = vrot.slane %v1384_v26, 1  ;;  %v1687_v27 = vrot.slane %v1384_v26, 2  ;;  %v1688_v62 = vrot.slane %v1384_v26, 3  ;;  %v1691_v31 = vrot.slane %v1384_v26, 6 }
 0x295   :  { %2179 = vst [vmem:[#allocation1 + $0x7] ss:$9 sm:$0xff] %v1671_v48  ;;  %v1692_v13 = vrot.slane %v1384_v26, 7 }
 0x298   :  { %2557 = vperm.xlu1 %3032, %v3915_v22   ;;  %v1689_v22 = vrot.slane %v1384_v26, 4  ;;  %v1254_v28 = vpop.xlane.xlu2 %1253 }
 0x299   :  { %v1387_v9 = vadd.f32 %v3664_v5, %v1254_v28 }
 0x29a   :  { %2572 = vperm.xlu2 %3033, %v4018_v0   ;;  %v1690_v0 = vrot.slane %v1384_v26, 5 }
 0x29b   :  { %v1708_v30 = vrot.slane %v1387_v9, 2  ;;  %v1709_v18 = vrot.slane %v1387_v9, 3  ;;  %v1710_v46 = vrot.slane %v1387_v9, 4  ;;  %v1711_v48 = vrot.slane %v1387_v9, 5 }
 0x29c   :  { %v4114_v2 = vld [vmem:[#allocation1] sm:$0xff]  ;;  %v1712_v53 = vrot.slane %v1387_v9, 6 }
 0x29d   :  { %2181 = vst [vmem:[#allocation1] ss:$9 sm:$0xff] %v1382_v44  ;;  %v1713_v44 = vrot.slane %v1387_v9, 7 }
 0x29e   :  { %2182 = vst [vmem:[#allocation1 + $0x1] ss:$9 sm:$0xff] %v1672_v52 }
 0x29f   :  { %2183 = vst [vmem:[#allocation1 + $0x2] ss:$9 sm:$0xff] %v1673_v6 }
 0x2a0   :  { %2184 = vst [vmem:[#allocation1 + $0x3] ss:$9 sm:$0xff] %v1674_v54  ;;  %2566 = vperm.xlu1 %3032, %v3969_v21   ;;  %v1248_v21 = vpop.xlane.xlu0 %1247 }
 0x2a1   :  { %2185 = vst [vmem:[#allocation1 + $0x4] ss:$9 sm:$0xff] %v1675_v8 }
 0x2a2   :  { %2186 = vst [vmem:[#allocation1 + $0x5] ss:$9 sm:$0xff] %v1676_v37  ;;  %2581 = vperm.xlu2 %3033, %v4075_v7   ;;  %v1385_v7 = vadd.f32 %v3664_v5, %v1248_v21 }
 0x2a3   :  { %2187 = vst [vmem:[#allocation1 + $0x6] ss:$9 sm:$0xff] %v1677_v14 }
 0x2a4   :  { %2188 = vst [vmem:[#allocation1 + $0x7] ss:$9 sm:$0xff] %v1678_v15  ;;  %v1693_v20 = vrot.slane %v1385_v7, 1  ;;  %v1694_v36 = vrot.slane %v1385_v7, 2  ;;  %v1695_v32 = vrot.slane %v1385_v7, 3  ;;  %v1696_v35 = vrot.slane %v1385_v7, 4 }
 0x2a5   :  { %v1697_v57 = vrot.slane %v1385_v7, 5  ;;  %v1699_v60 = vrot.slane %v1385_v7, 7 }
 0x2a8   :  { %2575 = vperm.xlu1 %3032, %v4036_v55   ;;  %v1698_v55 = vrot.slane %v1385_v7, 6  ;;  %v1257_v52 = vpop.xlane.xlu0 %1256 }
 0x2a9   :  { %v1388_v6 = vadd.f32 %v3664_v5, %v1257_v52 }
 0x2aa   :  { %2590 = vperm.xlu2 %3033, %v4105_v63   ;;  %v1707_v63 = vrot.slane %v1387_v9, 1 }
 0x2ab   :  { %v4122_v19 = vld [vmem:[#allocation1] sm:$0xff]  ;;  %v1714_v54 = vrot.slane %v1388_v6, 1  ;;  %v1715_v8 = vrot.slane %v1388_v6, 2  ;;  %v1716_v37 = vrot.slane %v1388_v6, 3  ;;  %v1717_v14 = vrot.slane %v1388_v6, 4 }
 0x2ac   :  { %2190 = vst [vmem:[#allocation1] ss:$9 sm:$0xff] %v1383_v4  ;;  %v1718_v15 = vrot.slane %v1388_v6, 5  ;;  %v1719_v61 = vrot.slane %v1388_v6, 6  ;;  %v1720_v4 = vrot.slane %v1388_v6, 7 }
 0x2ad   :  { %2191 = vst [vmem:[#allocation1 + $0x1] ss:$9 sm:$0xff] %v1679_v45  ;;  %v1260_v45 = vpop.xlane.xlu1 %1259 }
 0x2ae   :  { %2192 = vst [vmem:[#allocation1 + $0x2] ss:$9 sm:$0xff] %v1680_v11  ;;  %v1389_v11 = vadd.f32 %v3664_v5, %v1260_v45 }
 0x2af   :  { %2193 = vst [vmem:[#allocation1 + $0x3] ss:$9 sm:$0xff] %v1681_v23 }
 0x2b0   :  { %2194 = vst [vmem:[#allocation1 + $0x4] ss:$9 sm:$0xff] %v1682_v24  ;;  %2584 = vperm.xlu1 %3032, %v4092_v42   ;;  %v1386_v42 = vadd.f32 %v3664_v5, %v1251_v41  ;;  %v1721_v24 = vrot.slane %v1389_v11, 1  ;;  %v1725_v49 = vrot.slane %v1389_v11, 5 }
 0x2b1   :  { %2195 = vst [vmem:[#allocation1 + $0x5] ss:$9 sm:$0xff] %v1683_v39  ;;  %v1722_v39 = vrot.slane %v1389_v11, 2 }
 0x2b2   :  { %2196 = vst [vmem:[#allocation1 + $0x6] ss:$9 sm:$0xff] %v1684_v50  ;;  %v1700_v16 = vrot.slane %v1386_v42, 1  ;;  %v1701_v43 = vrot.slane %v1386_v42, 2  ;;  %v1702_v33 = vrot.slane %v1386_v42, 3  ;;  %v1703_v47 = vrot.slane %v1386_v42, 4 }
 0x2b3   :  { %2197 = vst [vmem:[#allocation1 + $0x7] ss:$9 sm:$0xff] %v1685_v12  ;;  %v1704_v59 = vrot.slane %v1386_v42, 5  ;;  %v1705_v56 = vrot.slane %v1386_v42, 6  ;;  %v1706_v58 = vrot.slane %v1386_v42, 7  ;;  %v1723_v50 = vrot.slane %v1389_v11, 3 }
 0x2b4   :  { %v1724_v12 = vrot.slane %v1389_v11, 4 }
 0x2b8   :  { %2593 = vperm.xlu1 %3032, %v4114_v2  }
 0x2ba   :  { %v2198_v1 = vld [vmem:[#allocation1] sm:$0xff] }
 0x2bb   :  { %2199 = vst [vmem:[#allocation1] ss:$9 sm:$0xff] %v1384_v26  ;;  %2599 = vperm.xlu2 %3033, %v2198_v1   ;;  %v1726_v26 = vrot.slane %v1389_v11, 6 }
 0x2bc   :  { %2200 = vst [vmem:[#allocation1 + $0x1] ss:$9 sm:$0xff] %v1686_v3  ;;  %v1727_v3 = vrot.slane %v1389_v11, 7 }
 0x2bd   :  { %2201 = vst [vmem:[#allocation1 + $0x2] ss:$9 sm:$0xff] %v1687_v27  ;;  %v1263_v27 = vpop.xlane.xlu2 %1262 }
 0x2be   :  { %2202 = vst [vmem:[#allocation1 + $0x3] ss:$9 sm:$0xff] %v1688_v62  ;;  %v1390_v1 = vadd.f32 %v3664_v5, %v1263_v27 }
 0x2bf   :  { %2203 = vst [vmem:[#allocation1 + $0x4] ss:$9 sm:$0xff] %v1689_v22 }
 0x2c0   :  { %2204 = vst [vmem:[#allocation1 + $0x5] ss:$9 sm:$0xff] %v1690_v0  ;;  %v1728_v62 = vrot.slane %v1390_v1, 1  ;;  %v1729_v0 = vrot.slane %v1390_v1, 2  ;;  %v1732_v21 = vrot.slane %v1390_v1, 5 }
 0x2c1   :  { %2205 = vst [vmem:[#allocation1 + $0x6] ss:$9 sm:$0xff] %v1691_v31  ;;  %v1730_v31 = vrot.slane %v1390_v1, 3 }
 0x2c2   :  { %2206 = vst [vmem:[#allocation1 + $0x7] ss:$9 sm:$0xff] %v1692_v13  ;;  %v1731_v13 = vrot.slane %v1390_v1, 4 }
 0x2c9   :  { %v2207_v38 = vld [vmem:[#allocation1] sm:$0xff] }
 0x2ca   :  { %2208 = vst [vmem:[#allocation1] ss:$9 sm:$0xff] %v1385_v7  ;;  %2602 = vperm.xlu1 %3032, %v2207_v38   ;;  %v1733_v7 = vrot.slane %v1390_v1, 6 }
 0x2cb   :  { %2209 = vst [vmem:[#allocation1 + $0x1] ss:$9 sm:$0xff] %v1693_v20  ;;  %v1734_v20 = vrot.slane %v1390_v1, 7 }
 0x2cc   :  { %2210 = vst [vmem:[#allocation1 + $0x2] ss:$9 sm:$0xff] %v1694_v36  ;;  %v1266_v36 = vpop.xlane.xlu0 %1265 }
 0x2cd   :  { %2211 = vst [vmem:[#allocation1 + $0x3] ss:$9 sm:$0xff] %v1695_v32  ;;  %v1391_v38 = vadd.f32 %v3664_v5, %v1266_v36 }
 0x2ce   :  { %2212 = vst [vmem:[#allocation1 + $0x4] ss:$9 sm:$0xff] %v1696_v35 }
 0x2cf   :  { %2213 = vst [vmem:[#allocation1 + $0x5] ss:$9 sm:$0xff] %v1697_v57  ;;  %v1735_v35 = vrot.slane %v1391_v38, 1  ;;  %v1736_v57 = vrot.slane %v1391_v38, 2  ;;  %v1739_v41 = vrot.slane %v1391_v38, 5 }
 0x2d0   :  { %2214 = vst [vmem:[#allocation1 + $0x6] ss:$9 sm:$0xff] %v1698_v55  ;;  %v1737_v55 = vrot.slane %v1391_v38, 3 }
 0x2d1   :  { %2215 = vst [vmem:[#allocation1 + $0x7] ss:$9 sm:$0xff] %v1699_v60  ;;  %v1738_v60 = vrot.slane %v1391_v38, 4 }
 0x2d8   :  { %v4135_v40 = vld [vmem:[#allocation1] sm:$0xff] }
 0x2d9   :  { %2217 = vst [vmem:[#allocation1] ss:$9 sm:$0xff] %v1386_v42  ;;  %v1740_v42 = vrot.slane %v1391_v38, 6 }
 0x2da   :  { %2218 = vst [vmem:[#allocation1 + $0x1] ss:$9 sm:$0xff] %v1700_v16  ;;  %v1741_v16 = vrot.slane %v1391_v38, 7 }
 0x2db   :  { %2219 = vst [vmem:[#allocation1 + $0x2] ss:$9 sm:$0xff] %v1701_v43  ;;  %v1269_v43 = vpop.xlane.xlu1 %1268 }
 0x2dc   :  { %2220 = vst [vmem:[#allocation1 + $0x3] ss:$9 sm:$0xff] %v1702_v33  ;;  %v1392_v33 = vadd.f32 %v3664_v5, %v1269_v43 }
 0x2dd   :  { %2221 = vst [vmem:[#allocation1 + $0x4] ss:$9 sm:$0xff] %v1703_v47 }
 0x2de   :  { %2222 = vst [vmem:[#allocation1 + $0x5] ss:$9 sm:$0xff] %v1704_v59  ;;  %v1742_v59 = vrot.slane %v1392_v33, 1  ;;  %v1745_v28 = vrot.slane %v1392_v33, 4 }
 0x2df   :  { %2223 = vst [vmem:[#allocation1 + $0x6] ss:$9 sm:$0xff] %v1705_v56  ;;  %v1743_v56 = vrot.slane %v1392_v33, 2 }
 0x2e0   :  { %2224 = vst [vmem:[#allocation1 + $0x7] ss:$9 sm:$0xff] %v1706_v58  ;;  %v1744_v58 = vrot.slane %v1392_v33, 3 }
 0x2e7   :  { %v2225_v25 = vld [vmem:[#allocation1] sm:$0xff] }
 0x2e8   :  { %2226 = vst [vmem:[#allocation1] ss:$9 sm:$0xff] %v1387_v9  ;;  %2608 = vperm.xlu2 %3033, %v2225_v25   ;;  %v1746_v9 = vrot.slane %v1392_v33, 5  ;;  %v1748_v25 = vrot.slane %v1392_v33, 7 }
 0x2e9   :  { %2227 = vst [vmem:[#allocation1 + $0x1] ss:$9 sm:$0xff] %v1707_v63  ;;  %v1747_v63 = vrot.slane %v1392_v33, 6 }
 0x2ea   :  { %2228 = vst [vmem:[#allocation1 + $0x2] ss:$9 sm:$0xff] %v1708_v30  ;;  %v1272_v30 = vpop.xlane.xlu2 %1271 }
 0x2eb   :  { %2229 = vst [vmem:[#allocation1 + $0x3] ss:$9 sm:$0xff] %v1709_v18  ;;  %v1393_v18 = vadd.f32 %v3664_v5, %v1272_v30 }
 0x2ec   :  { %2230 = vst [vmem:[#allocation1 + $0x4] ss:$9 sm:$0xff] %v1710_v46 }
 0x2ed   :  { %2231 = vst [vmem:[#allocation1 + $0x5] ss:$9 sm:$0xff] %v1711_v48  ;;  %v1749_v46 = vrot.slane %v1393_v18, 1  ;;  %v1752_v52 = vrot.slane %v1393_v18, 4 }
 0x2ee   :  { %2232 = vst [vmem:[#allocation1 + $0x6] ss:$9 sm:$0xff] %v1712_v53  ;;  %v1750_v53 = vrot.slane %v1393_v18, 2 }
 0x2ef   :  { %2233 = vst [vmem:[#allocation1 + $0x7] ss:$9 sm:$0xff] %v1713_v44  ;;  %v1751_v44 = vrot.slane %v1393_v18, 3 }
 0x2f6   :  { %v2234_v2 = vld [vmem:[#allocation1] sm:$0xff] }
 0x2f7   :  { %2235 = vst [vmem:[#allocation1] ss:$9 sm:$0xff] %v1388_v6  ;;  %2611 = vperm.xlu1 %3032, %v2234_v2   ;;  %v1753_v6 = vrot.slane %v1393_v18, 5  ;;  %v1754_v2 = vrot.slane %v1393_v18, 6 }
 0x2f8   :  { %2236 = vst [vmem:[#allocation1 + $0x1] ss:$9 sm:$0xff] %v1714_v54  ;;  %v1755_v54 = vrot.slane %v1393_v18, 7 }
 0x2f9   :  { %2237 = vst [vmem:[#allocation1 + $0x2] ss:$9 sm:$0xff] %v1715_v8  ;;  %v1275_v8 = vpop.xlane.xlu0 %1274 }
 0x2fa   :  { %2238 = vst [vmem:[#allocation1 + $0x3] ss:$9 sm:$0xff] %v1716_v37  ;;  %v1394_v37 = vadd.f32 %v3664_v5, %v1275_v8 }
 0x2fb   :  { %2239 = vst [vmem:[#allocation1 + $0x4] ss:$9 sm:$0xff] %v1717_v14 }
 0x2fc   :  { %2240 = vst [vmem:[#allocation1 + $0x5] ss:$9 sm:$0xff] %v1718_v15  ;;  %v1756_v15 = vrot.slane %v1394_v37, 1  ;;  %v1759_v45 = vrot.slane %v1394_v37, 4 }
 0x2fd   :  { %2241 = vst [vmem:[#allocation1 + $0x6] ss:$9 sm:$0xff] %v1719_v61  ;;  %v1757_v61 = vrot.slane %v1394_v37, 2 }
 0x2fe   :  { %2242 = vst [vmem:[#allocation1 + $0x7] ss:$9 sm:$0xff] %v1720_v4  ;;  %v1758_v4 = vrot.slane %v1394_v37, 3 }
 0x305   :  { %v4140_v23 = vld [vmem:[#allocation1] sm:$0xff] }
 0x306   :  { %2244 = vst [vmem:[#allocation1] ss:$9 sm:$0xff] %v1389_v11  ;;  %v1760_v11 = vrot.slane %v1394_v37, 5 }
 0x307   :  { %2245 = vst [vmem:[#allocation1 + $0x1] ss:$9 sm:$0xff] %v1721_v24  ;;  %v1761_v24 = vrot.slane %v1394_v37, 6 }
 0x308   :  { %2246 = vst [vmem:[#allocation1 + $0x2] ss:$9 sm:$0xff] %v1722_v39  ;;  %v1762_v39 = vrot.slane %v1394_v37, 7 }
 0x309   :  { %2247 = vst [vmem:[#allocation1 + $0x3] ss:$9 sm:$0xff] %v1723_v50  ;;  %v1278_v50 = vpop.xlane.xlu1 %1277 }
 0x30a   :  { %2248 = vst [vmem:[#allocation1 + $0x4] ss:$9 sm:$0xff] %v1724_v12  ;;  %v1395_v12 = vadd.f32 %v3664_v5, %v1278_v50 }
 0x30b   :  { %2249 = vst [vmem:[#allocation1 + $0x5] ss:$9 sm:$0xff] %v1725_v49  ;;  %v1281_v49 = vpop.xlane.xlu2 %1280 }
 0x30c   :  { %2250 = vst [vmem:[#allocation1 + $0x6] ss:$9 sm:$0xff] %v1726_v26  ;;  %v1764_v27 = vrot.slane %v1395_v12, 2 }
 0x30d   :  { %2251 = vst [vmem:[#allocation1 + $0x7] ss:$9 sm:$0xff] %v1727_v3  ;;  %v1763_v3 = vrot.slane %v1395_v12, 1 }
 0x311   :  { %v1287_v43 = vpop.xlane.xlu1 %1286 }
 0x314   :  { %v2252_v22 = vld [vmem:[#allocation1] sm:$0xff] }
 0x315   :  { %2253 = vst [vmem:[#allocation1] ss:$9 sm:$0xff] %v1390_v1  ;;  %2617 = vperm.xlu2 %3033, %v2252_v22   ;;  %v1765_v1 = vrot.slane %v1395_v12, 3  ;;  %v1767_v22 = vrot.slane %v1395_v12, 5 }
 0x316   :  { %2254 = vst [vmem:[#allocation1 + $0x1] ss:$9 sm:$0xff] %v1728_v62  ;;  %v1766_v62 = vrot.slane %v1395_v12, 4 }
 0x317   :  { %2255 = vst [vmem:[#allocation1 + $0x2] ss:$9 sm:$0xff] %v1729_v0  ;;  %v1768_v0 = vrot.slane %v1395_v12, 6 }
 0x318   :  { %2256 = vst [vmem:[#allocation1 + $0x3] ss:$9 sm:$0xff] %v1730_v31  ;;  %v1769_v31 = vrot.slane %v1395_v12, 7 }
 0x319   :  { %2257 = vst [vmem:[#allocation1 + $0x4] ss:$9 sm:$0xff] %v1731_v13  ;;  %v4152_v13 = vpop.xlane.xlu2 %1289 }
 0x31a   :  { %2258 = vst [vmem:[#allocation1 + $0x5] ss:$9 sm:$0xff] %v1732_v21  ;;  %v1396_v21 = vadd.f32 %v3664_v5, %v1281_v49 }
 0x31b   :  { %2259 = vst [vmem:[#allocation1 + $0x6] ss:$9 sm:$0xff] %v1733_v7  ;;  %v1284_v7 = vpop.xlane.xlu0 %1283 }
 0x31c   :  { %2260 = vst [vmem:[#allocation1 + $0x7] ss:$9 sm:$0xff] %v1734_v20  ;;  %v1770_v20 = vrot.slane %v1396_v21, 1 }
 0x323   :  { %v2261_v32 = vld [vmem:[#allocation1] sm:$0xff] }
 0x324   :  { %2262 = vst [vmem:[#allocation1] ss:$9 sm:$0xff] %v1391_v38  ;;  %2620 = vperm.xlu1 %3032, %v2261_v32   ;;  %v1771_v38 = vrot.slane %v1396_v21, 2  ;;  %v1772_v32 = vrot.slane %v1396_v21, 3 }
 0x325   :  { %2263 = vst [vmem:[#allocation1 + $0x1] ss:$9 sm:$0xff] %v1735_v35  ;;  %v1773_v35 = vrot.slane %v1396_v21, 4 }
 0x326   :  { %2264 = vst [vmem:[#allocation1 + $0x2] ss:$9 sm:$0xff] %v1736_v57  ;;  %v4155_v57 = vpop.xlane.xlu2 %1298 }
 0x327   :  { %2265 = vst [vmem:[#allocation1 + $0x3] ss:$9 sm:$0xff] %v1737_v55  ;;  %v1774_v55 = vrot.slane %v1396_v21, 5 }
 0x328   :  { %2266 = vst [vmem:[#allocation1 + $0x4] ss:$9 sm:$0xff] %v1738_v60  ;;  %v1775_v60 = vrot.slane %v1396_v21, 6 }
 0x329   :  { %2267 = vst [vmem:[#allocation1 + $0x5] ss:$9 sm:$0xff] %v1739_v41  ;;  %v1776_v41 = vrot.slane %v1396_v21, 7 }
 0x32a   :  { %2268 = vst [vmem:[#allocation1 + $0x6] ss:$9 sm:$0xff] %v1740_v42  ;;  %v4157_v42 = vpop.xlane.xlu0 %1292 }
 0x32b   :  { %2269 = vst [vmem:[#allocation1 + $0x7] ss:$9 sm:$0xff] %v1741_v16  ;;  %v1397_v16 = vadd.f32 %v3664_v5, %v1284_v7 }
 0x332   :  { %v4145_v47 = vld [vmem:[#allocation1] sm:$0xff]  ;;  %v4162_v30 = vpop.xlane.xlu0 %1301 }
 0x333   :  { %2271 = vst [vmem:[#allocation1] ss:$9 sm:$0xff] %v1392_v33  ;;  %v4160_v33 = vpop.xlane.xlu2 %1307 }
 0x334   :  { %2272 = vst [vmem:[#allocation1 + $0x1] ss:$9 sm:$0xff] %v1742_v59 }
 0x335   :  { %2273 = vst [vmem:[#allocation1 + $0x2] ss:$9 sm:$0xff] %v1743_v56  ;;  %v1777_v56 = vrot.slane %v1397_v16, 1 }
 0x336   :  { %2274 = vst [vmem:[#allocation1 + $0x3] ss:$9 sm:$0xff] %v1744_v58  ;;  %v1778_v58 = vrot.slane %v1397_v16, 2 }
 0x337   :  { %2275 = vst [vmem:[#allocation1 + $0x4] ss:$9 sm:$0xff] %v1745_v28  ;;  %v556_v28 = vpop.f32.mrf.mxu2 }
 0x338   :  { %2276 = vst [vmem:[#allocation1 + $0x5] ss:$9 sm:$0xff] %v1746_v9  ;;  %v957_v9 = vpop.f32.mrf.mxu3 }
 0x339   :  { %2277 = vst [vmem:[#allocation1 + $0x6] ss:$9 sm:$0xff] %v1747_v63  ;;  %v1779_v63 = vrot.slane %v1397_v16, 3 }
 0x33a   :  { %2278 = vst [vmem:[#allocation1 + $0x7] ss:$9 sm:$0xff] %v1748_v25  ;;  %v1780_v25 = vrot.slane %v1397_v16, 4  ;;  %v4170_v8 = vpop.xlane.xlu0 %1310 }
 0x341   :  { %v2279_v48 = vld [vmem:[#allocation1] sm:$0xff] }
 0x342   :  { %2280 = vst [vmem:[#allocation1] ss:$9 sm:$0xff] %v1393_v18  ;;  %2626 = vperm.xlu2 %3033, %v2279_v48   ;;  %v1781_v18 = vrot.slane %v1397_v16, 5  ;;  %v1782_v48 = vrot.slane %v1397_v16, 6  ;;  %v4180_v49 = vpop.xlane.xlu0 %1319 }
 0x343   :  { %2281 = vst [vmem:[#allocation1 + $0x1] ss:$9 sm:$0xff] %v1749_v46  ;;  %v958_v46 = vadd.f32 %v957_v9, %v556_v28  ;;  %v2706_v9 = vlaneseq }
 0x344   :  { %2282 = vst [vmem:[#allocation1 + $0x2] ss:$9 sm:$0xff] %v1750_v53  ;;  %v1783_v53 = vrot.slane %v1397_v16, 7 }
 0x345   :  { %2283 = vst [vmem:[#allocation1 + $0x3] ss:$9 sm:$0xff] %v1751_v44  ;;  %v4164_v44 = vpop.xlane.xlu1 %1295 }
 0x346   :  { %2284 = vst [vmem:[#allocation1 + $0x4] ss:$9 sm:$0xff] %v1752_v52  ;;  %v4166_v52 = vpop.xlane.xlu2 %1316 }
 0x347   :  { %2285 = vst [vmem:[#allocation1 + $0x5] ss:$9 sm:$0xff] %v1753_v6  ;;  %v1025_v6 = vadd.f32 %v4070_v10, %v958_v46 }
 0x348   :  { %2286 = vst [vmem:[#allocation1 + $0x6] ss:$9 sm:$0xff] %v1754_v2  ;;  %v1398_v2 = vadd.f32 %v3664_v5, %v1287_v43 }
 0x349   :  { %2287 = vst [vmem:[#allocation1 + $0x7] ss:$9 sm:$0xff] %v1755_v54  ;;  %v1089_v54 = vmax.f32 %v1025_v6, 0.0 }
 0x34a   :  { %v1789_v50 = vrot.slane %v1398_v2, 6 }
 0x350   :  { %v2288_v14 = vld [vmem:[#allocation1] sm:$0xff] }
 0x351   :  { %2289 = vst [vmem:[#allocation1] ss:$9 sm:$0xff] %v1394_v37  ;;  %2629 = vperm.xlu1 %3032, %v2288_v14   ;;  %v1784_v14 = vrot.slane %v1398_v2, 1 }
 0x352   :  { %2290 = vst [vmem:[#allocation1 + $0x1] ss:$9 sm:$0xff] %v1756_v15  ;;  %v1785_v15 = vrot.slane %v1398_v2, 2 }
 0x353   :  { %2291 = vst [vmem:[#allocation1 + $0x2] ss:$9 sm:$0xff] %v1757_v61  ;;  %v4174_v61 = vpop.xlane.xlu1 %1304 }
 0x354   :  { %2292 = vst [vmem:[#allocation1 + $0x3] ss:$9 sm:$0xff] %v1758_v4  ;;  %v1155_v4 = vmul.f32 %v4080_v17, %v1089_v54  ;;  %v1399_v17 = vadd.f32 %v3664_v5, %v4152_v13 }
 0x355   :  { %2293 = vst [vmem:[#allocation1 + $0x4] ss:$9 sm:$0xff] %v1759_v45  ;;  %v1786_v45 = vrot.slane %v1398_v2, 3 }
 0x356   :  { %2294 = vst [vmem:[#allocation1 + $0x5] ss:$9 sm:$0xff] %v1760_v11  ;;  %v1787_v11 = vrot.slane %v1398_v2, 4  ;;  %v1345_v10 = vsel %vm157_vm0, %v1155_v4, 0.0  ;;  %v1795_v7 = vrot.slane %v1399_v17, 5  ;;  %v1797_v13 = vrot.slane %v1399_v17, 7 }
 0x357   :  { %2295 = vst [vmem:[#allocation1 + $0x6] ss:$9 sm:$0xff] %v1761_v24  ;;  %v4177_v24 = vpop.xlane.xlu2 %1325  ;;  %1346 = vadd.xlane.f32.xlu0 %v1345_v10  ;;  %vm2865_vm0 = vcmask 1040384  }
 0x358   :  { %2296 = vst [vmem:[#allocation1 + $0x7] ss:$9 sm:$0xff] %v1762_v39  ;;  %v1788_v39 = vrot.slane %v1398_v2, 5 }
 0x35f   :  { %v4150_v26 = vld [vmem:[#allocation1] sm:$0xff] }
 0x360   :  { %2298 = vst [vmem:[#allocation1] ss:$9 sm:$0xff] %v1395_v12  ;;  %v1790_v12 = vrot.slane %v1398_v2, 7 }
 0x361   :  { %2299 = vst [vmem:[#allocation1 + $0x1] ss:$9 sm:$0xff] %v1763_v3  ;;  %v4184_v3 = vpop.xlane.xlu1 %1313 }
 0x362   :  { %2300 = vst [vmem:[#allocation1 + $0x2] ss:$9 sm:$0xff] %v1764_v27  ;;  %v4186_v27 = vpop.xlane.xlu2 %1334 }
 0x363   :  { %2301 = vst [vmem:[#allocation1 + $0x3] ss:$9 sm:$0xff] %v1765_v1  ;;  %v1791_v1 = vrot.slane %v1399_v17, 1 }
 0x364   :  { %2302 = vst [vmem:[#allocation1 + $0x4] ss:$9 sm:$0xff] %v1766_v62 }
 0x365   :  { %2303 = vst [vmem:[#allocation1 + $0x5] ss:$9 sm:$0xff] %v1767_v22  ;;  %v1792_v22 = vrot.slane %v1399_v17, 2 }
 0x366   :  { %2304 = vst [vmem:[#allocation1 + $0x6] ss:$9 sm:$0xff] %v1768_v0  ;;  %v1793_v0 = vrot.slane %v1399_v17, 3 }
 0x367   :  { %2305 = vst [vmem:[#allocation1 + $0x7] ss:$9 sm:$0xff] %v1769_v31  ;;  %v1794_v31 = vrot.slane %v1399_v17, 4 }
 0x36b   :  { %2569 = vperm.xlu0 %3031, %v3998_v29  }
 0x36e   :  { %v2306_v36 = vld [vmem:[#allocation1] sm:$0xff] }
 0x36f   :  { %2307 = vst [vmem:[#allocation1] ss:$9 sm:$0xff] %v1396_v21  ;;  %2635 = vperm.xlu2 %3033, %v2306_v36   ;;  %v4188_v21 = vpop.xlane.xlu0 %1328  ;;  %v4190_v36 = vpop.xlane.xlu1 %1322 }
 0x370   :  { %2308 = vst [vmem:[#allocation1 + $0x1] ss:$9 sm:$0xff] %v1770_v20  ;;  %v1796_v20 = vrot.slane %v1399_v17, 6 }
 0x371   :  { %2309 = vst [vmem:[#allocation1 + $0x2] ss:$9 sm:$0xff] %v1771_v38  ;;  %v4192_v38 = vpop.xlane.xlu2 %1343 }
 0x372   :  { %2310 = vst [vmem:[#allocation1 + $0x3] ss:$9 sm:$0xff] %v1772_v32  ;;  %v1400_v32 = vadd.f32 %v3664_v5, %v4157_v42 }
 0x373   :  { %2311 = vst [vmem:[#allocation1 + $0x4] ss:$9 sm:$0xff] %v1773_v35  ;;  %2578 = vperm.xlu0 %3031, %v4056_v34   ;;  %v4208_v34 = vand.u32 127, %v2706_v9 }
 0x374   :  { %2312 = vst [vmem:[#allocation1 + $0x5] ss:$9 sm:$0xff] %v1774_v55  ;;  %v1800_v43 = vrot.slane %v1400_v32, 3  ;;  %v1802_v29 = vrot.slane %v1400_v32, 5  ;;  %v1804_v42 = vrot.slane %v1400_v32, 7 }
 0x375   :  { %2313 = vst [vmem:[#allocation1 + $0x6] ss:$9 sm:$0xff] %v1775_v60  ;;  %v1798_v60 = vrot.slane %v1400_v32, 1  ;;  %v4223_v4 = vadd.s32 4294967264, %v4208_v34 }
 0x376   :  { %2314 = vst [vmem:[#allocation1 + $0x7] ss:$9 sm:$0xff] %v1776_v41  ;;  %v1799_v41 = vrot.slane %v1400_v32, 2 }
 0x377   :  { %v4197_v35 = vpop.xlane.xlu0 %1337 }
 0x37b   :  { %2587 = vperm.xlu0 %3031, %v4098_v51   ;;  %v4216_v51 = vadd.s32 4294967280, %v4208_v34 }
 0x37d   :  { %v2315_v59 = vld [vmem:[#allocation1] sm:$0xff] }
 0x37e   :  { %2316 = vst [vmem:[#allocation1] ss:$9 sm:$0xff] %v1397_v16  ;;  %2638 = vperm.xlu1 %3032, %v2315_v59   ;;  %v4199_v16 = vpop.xlane.xlu1 %1331  ;;  %v1801_v59 = vrot.slane %v1400_v32, 4 }
 0x37f   :  { %2317 = vst [vmem:[#allocation1 + $0x1] ss:$9 sm:$0xff] %v1777_v56  ;;  %v2519_v56 = vpop.permute.xlu2 %2518  ;;  %v2522_v28 = vpop.permute.xlu0 %2521 }
 0x380   :  { %2318 = vst [vmem:[#allocation1 + $0x2] ss:$9 sm:$0xff] %v1778_v58  ;;  %v1803_v58 = vrot.slane %v1400_v32, 6 }
 0x381   :  { %2319 = vst [vmem:[#allocation1 + $0x3] ss:$9 sm:$0xff] %v1779_v63  ;;  %v1401_v63 = vadd.f32 %v3664_v5, %v4164_v44 }
 0x382   :  { %2320 = vst [vmem:[#allocation1 + $0x4] ss:$9 sm:$0xff] %v1780_v25 }
 0x383   :  { %2321 = vst [vmem:[#allocation1 + $0x5] ss:$9 sm:$0xff] %v1781_v18  ;;  %v1806_v6 = vrot.slane %v1401_v63, 2  ;;  %v1807_v54 = vrot.slane %v1401_v63, 3  ;;  %v1808_v44 = vrot.slane %v1401_v63, 4  ;;  %2596 = vperm.xlu0 %3031, %v4122_v19  }
 0x384   :  { %2322 = vst [vmem:[#allocation1 + $0x6] ss:$9 sm:$0xff] %v1782_v48 }
 0x385   :  { %2323 = vst [vmem:[#allocation1 + $0x7] ss:$9 sm:$0xff] %v1783_v53  ;;  %v1805_v53 = vrot.slane %v1401_v63, 1 }
 0x386   :  { %v4205_v25 = vpop.xlane.xlu1 %1340 }
 0x387   :  { %v2528_v18 = vpop.permute.xlu2 %2527  ;;  %v2525_v46 = vpop.permute.xlu0 %2524 }
 0x38b   :  { %2605 = vperm.xlu0 %3031, %v4135_v40  }
 0x38c   :  { %v4172_v37 = vld [vmem:[#allocation1] sm:$0xff] }
 0x38d   :  { %2325 = vst [vmem:[#allocation1] ss:$9 sm:$0xff] %v1398_v2  ;;  %v4213_v2 = vadd.s32 4294967288, %v4208_v34 }
 0x38e   :  { %2326 = vst [vmem:[#allocation1 + $0x1] ss:$9 sm:$0xff] %v1784_v14  ;;  %v4219_v14 = vadd.s32 4294967272, %v4208_v34 }
 0x38f   :  { %2327 = vst [vmem:[#allocation1 + $0x2] ss:$9 sm:$0xff] %v1785_v15  ;;  %v1809_v15 = vrot.slane %v1401_v63, 5  ;;  %v2710_v10 = vperm.slane %v2519_v56, %v4213_v2 }
 0x390   :  { %2328 = vst [vmem:[#allocation1 + $0x3] ss:$9 sm:$0xff] %v1786_v45  ;;  %v2516_v45 = vpop.permute.xlu1 %2515  ;;  %v2718_v19 = vperm.slane %v2525_v46, %v4219_v14 }
 0x391   :  { %2329 = vst [vmem:[#allocation1 + $0x4] ss:$9 sm:$0xff] %v1787_v11  ;;  %v1810_v11 = vrot.slane %v1401_v63, 6 }
 0x392   :  { %2330 = vst [vmem:[#allocation1 + $0x5] ss:$9 sm:$0xff] %v1788_v39  ;;  %v2708_v39 = vperm.slane %v2516_v45, %v4208_v34 }
 0x393   :  { %2331 = vst [vmem:[#allocation1 + $0x6] ss:$9 sm:$0xff] %v1789_v50  ;;  %v1811_v50 = vrot.slane %v1401_v63, 7  ;;  %2614 = vperm.xlu0 %3031, %v4140_v23  }
 0x394   :  { %2332 = vst [vmem:[#allocation1 + $0x7] ss:$9 sm:$0xff] %v1790_v12  ;;  %v2714_v12 = vperm.slane %v2522_v28, %v4216_v51 }
 0x39b   :  { %v2333_v62 = vld [vmem:[#allocation1] sm:$0xff]  ;;  %2623 = vperm.xlu0 %3031, %v4145_v47  }
 0x39c   :  { %2334 = vst [vmem:[#allocation1] ss:$9 sm:$0xff] %v1399_v17  ;;  %2644 = vperm.xlu2 %3033, %v2333_v62   ;;  %v2712_v17 = vsel %vm2711_vm1, %v2710_v10, %v2708_v39  ;;  %v2722_v62 = vperm.slane %v2528_v18, %v4223_v4 }
 0x39d   :  { %2335 = vst [vmem:[#allocation1 + $0x1] ss:$9 sm:$0xff] %v1791_v1  ;;  %v2534_v1 = vpop.permute.xlu0 %2533 }
 0x39e   :  { %2336 = vst [vmem:[#allocation1 + $0x2] ss:$9 sm:$0xff] %v1792_v22  ;;  %v2537_v22 = vpop.permute.xlu2 %2536 }
 0x39f   :  { %2337 = vst [vmem:[#allocation1 + $0x3] ss:$9 sm:$0xff] %v1793_v0  ;;  %v2716_v0 = vsel %vm2715_vm2, %v2714_v12, %v2712_v17 }
 0x3a0   :  { %2338 = vst [vmem:[#allocation1 + $0x4] ss:$9 sm:$0xff] %v1794_v31  ;;  %v2720_v31 = vsel %vm2719_vm3, %v2718_v19, %v2716_v0  ;;  %v4278_v0 = vadd.s32 4294967208, %v4208_v34 }
 0x3a1   :  { %2339 = vst [vmem:[#allocation1 + $0x5] ss:$9 sm:$0xff] %v1795_v7  ;;  %v4234_v7 = vadd.s32 4294967248, %v4208_v34 }
 0x3a2   :  { %2340 = vst [vmem:[#allocation1 + $0x6] ss:$9 sm:$0xff] %v1796_v20  ;;  %v2724_v20 = vsel %vm2723_vm4, %v2722_v62, %v2720_v31  ;;  %v4271_v62 = vadd.s32 4294967200, %v4208_v34 }
 0x3a3   :  { %2341 = vst [vmem:[#allocation1 + $0x7] ss:$9 sm:$0xff] %v1797_v13  ;;  %v1402_v13 = vadd.f32 %v3664_v5, %v4155_v57  ;;  %2632 = vperm.xlu0 %3031, %v4150_v26   ;;  %v1404_v26 = vadd.f32 %v3664_v5, %v4174_v61 }
 0x3a5   :  { %v1814_v28 = vrot.slane %v1402_v13, 3  ;;  %v1815_v18 = vrot.slane %v1402_v13, 4  ;;  %v1830_v61 = vrot.slane %v1404_v26, 5 }
 0x3a6   :  { %v2546_v46 = vpop.permute.xlu2 %2545 }
 0x3aa   :  { %v2342_v55 = vld [vmem:[#allocation1] sm:$0xff] }
 0x3ab   :  { %2343 = vst [vmem:[#allocation1] ss:$9 sm:$0xff] %v1400_v32  ;;  %2647 = vperm.xlu1 %3032, %v2342_v55   ;;  %v4240_v32 = vadd.s32 4294967240, %v4208_v34  ;;  %v4244_v55 = vadd.s32 4294967256, %v4208_v34  ;;  %2641 = vperm.xlu0 %3031, %v4172_v37   ;;  %v1832_v37 = vrot.slane %v1404_v26, 7 }
 0x3ac   :  { %2344 = vst [vmem:[#allocation1 + $0x1] ss:$9 sm:$0xff] %v1798_v60  ;;  %v2531_v60 = vpop.permute.xlu1 %2530 }
 0x3ad   :  { %2345 = vst [vmem:[#allocation1 + $0x2] ss:$9 sm:$0xff] %v1799_v41  ;;  %v2726_v41 = vperm.slane %v2531_v60, %v4244_v55 }
 0x3ae   :  { %2346 = vst [vmem:[#allocation1 + $0x3] ss:$9 sm:$0xff] %v1800_v43  ;;  %v2730_v43 = vperm.slane %v2534_v1, %v4234_v7  ;;  %v1403_v1 = vadd.f32 %v3664_v5, %v4162_v30  ;;  %v2555_v31 = vpop.permute.xlu2 %2554 }
 0x3af   :  { %2347 = vst [vmem:[#allocation1 + $0x4] ss:$9 sm:$0xff] %v1801_v59  ;;  %v1812_v59 = vrot.slane %v1402_v13, 1  ;;  %v2728_v57 = vsel %vm2727_vm5, %v2726_v41, %v2724_v20 }
 0x3b0   :  { %2348 = vst [vmem:[#allocation1 + $0x5] ss:$9 sm:$0xff] %v1802_v29  ;;  %v2734_v29 = vperm.slane %v2537_v22, %v4240_v32  ;;  %v2732_v40 = vsel %vm2731_vm6, %v2730_v43, %v2728_v57  ;;  %v4274_v22 = vadd.s32 4294967192, %v4208_v34  ;;  %v1819_v41 = vrot.slane %v1403_v1, 1 }
 0x3b1   :  { %2349 = vst [vmem:[#allocation1 + $0x6] ss:$9 sm:$0xff] %v1803_v58  ;;  %v2543_v58 = vpop.permute.xlu0 %2542  ;;  %v1820_v30 = vrot.slane %v1403_v1, 2  ;;  %v1821_v47 = vrot.slane %v1403_v1, 3  ;;  %v1822_v57 = vrot.slane %v1403_v1, 4 }
 0x3b2   :  { %2350 = vst [vmem:[#allocation1 + $0x7] ss:$9 sm:$0xff] %v1804_v42  ;;  %v1813_v42 = vrot.slane %v1402_v13, 2 }
 0x3b4   :  { %v2540_v45 = vpop.permute.xlu1 %2539 }
 0x3b9   :  { %v4210_v48 = vld [vmem:[#allocation1] sm:$0xff]  ;;  %v2552_v19 = vpop.permute.xlu0 %2551 }
 0x3ba   :  { %2352 = vst [vmem:[#allocation1] ss:$9 sm:$0xff] %v1401_v63  ;;  %v2736_v63 = vsel %vm2735_vm7, %v2734_v29, %v2732_v40  ;;  %v2754_v43 = vperm.slane %v2552_v19, %v4271_v62  ;;  %v4287_v40 = vadd.s32 4294967176, %v4208_v34  ;;  %2650 = vperm.xlu0 %3031, %v4210_v48  }
 0x3bb   :  { %2353 = vst [vmem:[#allocation1 + $0x1] ss:$9 sm:$0xff] %v1805_v53  ;;  %v4253_v53 = vadd.s32 4294967224, %v4208_v34 }
 0x3bc   :  { %2354 = vst [vmem:[#allocation1 + $0x2] ss:$9 sm:$0xff] %v1806_v6  ;;  %v1816_v6 = vrot.slane %v1402_v13, 5  ;;  %v2549_v20 = vpop.permute.xlu1 %2548 }
 0x3bd   :  { %2355 = vst [vmem:[#allocation1 + $0x3] ss:$9 sm:$0xff] %v1807_v54  ;;  %v4256_v54 = vadd.s32 4294967216, %v4208_v34  ;;  %v2742_v39 = vperm.slane %v2543_v58, %v4253_v53 }
 0x3be   :  { %2356 = vst [vmem:[#allocation1 + $0x4] ss:$9 sm:$0xff] %v1808_v44  ;;  %v4260_v44 = vadd.s32 4294967232, %v4208_v34 }
 0x3bf   :  { %2357 = vst [vmem:[#allocation1 + $0x5] ss:$9 sm:$0xff] %v1809_v15  ;;  %v1817_v15 = vrot.slane %v1402_v13, 6 }
 0x3c0   :  { %2358 = vst [vmem:[#allocation1 + $0x6] ss:$9 sm:$0xff] %v1810_v11  ;;  %v1818_v11 = vrot.slane %v1402_v13, 7  ;;  %v2738_v10 = vperm.slane %v2540_v45, %v4260_v44 }
 0x3c1   :  { %2359 = vst [vmem:[#allocation1 + $0x7] ss:$9 sm:$0xff] %v1811_v50  ;;  %v2746_v50 = vperm.slane %v2546_v46, %v4256_v54  ;;  %v1825_v46 = vrot.slane %v1403_v1, 7 }
 0x3c2   :  { %v2740_v23 = vsel %vm2739_vm8, %v2738_v10, %v2736_v63  ;;  %v2561_v63 = vpop.permute.xlu0 %2560 }
 0x3c3   :  { %v2744_v12 = vsel %vm2743_vm9, %v2742_v39, %v2740_v23  ;;  %v2766_v45 = vperm.slane %v2561_v63, %v4287_v40  ;;  %v2564_v39 = vpop.permute.xlu2 %2563 }
 0x3c4   :  { %v2748_v17 = vsel %vm2747_vm10, %v2746_v50, %v2744_v12  ;;  %v1826_v12 = vrot.slane %v1404_v26, 1  ;;  %v2769_v19 = vperm.slane %v2564_v39, %v4208_v34 }
 0x3c8   :  { %v2360_v56 = vld [vmem:[#allocation1] sm:$0xff] }
 0x3c9   :  { %2361 = vst [vmem:[#allocation1] ss:$9 sm:$0xff] %v1402_v13  ;;  %2653 = vperm.xlu2 %3033, %v2360_v56   ;;  %v2750_v13 = vperm.slane %v2549_v20, %v4278_v0 }
 0x3ca   :  { %2362 = vst [vmem:[#allocation1 + $0x1] ss:$9 sm:$0xff] %v1812_v59  ;;  %v2758_v59 = vperm.slane %v2555_v31, %v4274_v22  ;;  %v1828_v31 = vrot.slane %v1404_v26, 3 }
 0x3cb   :  { %2363 = vst [vmem:[#allocation1 + $0x2] ss:$9 sm:$0xff] %v1813_v42  ;;  %v2752_v56 = vsel %vm2751_vm11, %v2750_v13, %v2748_v17  ;;  %v1823_v42 = vrot.slane %v1403_v1, 5  ;;  %v1829_v13 = vrot.slane %v1404_v26, 4 }
 0x3cc   :  { %2364 = vst [vmem:[#allocation1 + $0x3] ss:$9 sm:$0xff] %v1814_v28  ;;  %v2756_v29 = vsel %vm2755_vm12, %v2754_v43, %v2752_v56  ;;  %v1824_v28 = vrot.slane %v1403_v1, 6 }
 0x3cd   :  { %2365 = vst [vmem:[#allocation1 + $0x4] ss:$9 sm:$0xff] %v1815_v18  ;;  %v2760_v58 = vsel %vm2759_vm13, %v2758_v59, %v2756_v29  ;;  %v4291_v18 = vadd.s32 4294967184, %v4208_v34 }
 0x3ce   :  { %2366 = vst [vmem:[#allocation1 + $0x5] ss:$9 sm:$0xff] %v1816_v6  ;;  %v2558_v6 = vpop.permute.xlu1 %2557 }
 0x3cf   :  { %2367 = vst [vmem:[#allocation1 + $0x6] ss:$9 sm:$0xff] %v1817_v15  ;;  %v2762_v15 = vperm.slane %v2558_v6, %v4291_v18 }
 0x3d0   :  { %2368 = vst [vmem:[#allocation1 + $0x7] ss:$9 sm:$0xff] %v1818_v11 }
 0x3d1   :  { %v2764_v11 = vsel %vm2763_vm14, %v2762_v15, %v2760_v58 }
 0x3d2   :  { %v4297_v10 = vsel %vm2767_vm15, %v2766_v45, %v2764_v11  ;;  %v4314_v11 = vpop.xlane.xlu0 %1346 }
 0x3d6   :  { %v2567_v50 = vpop.permute.xlu1 %2566 }
 0x3d7   :  { %v2369_v60 = vld [vmem:[#allocation1] sm:$0xff]  ;;  %v2770_v17 = vperm.slane %v2567_v50, %v4213_v2 }
 0x3d8   :  { %2370 = vst [vmem:[#allocation1] ss:$9 sm:$0xff] %v1403_v1  ;;  %2656 = vperm.xlu1 %3032, %v2369_v60   ;;  %v1827_v1 = vrot.slane %v1404_v26, 2  ;;  %v1831_v60 = vrot.slane %v1404_v26, 6 }
 0x3d9   :  { %2371 = vst [vmem:[#allocation1 + $0x1] ss:$9 sm:$0xff] %v1819_v41  ;;  %v4305_v20 = vsel %vm2711_vm1, %v2770_v17, %v2769_v19  ;;  %v1405_v41 = vadd.f32 %v3664_v5, %v4160_v33  ;;  %v1406_v33 = vadd.f32 %v3664_v5, %v4170_v8  ;;  %v1407_v8 = vadd.f32 %v3664_v5, %v4184_v3 }
 0x3da   :  { %2372 = vst [vmem:[#allocation1 + $0x2] ss:$9 sm:$0xff] %v1820_v30 }
 0x3db   :  { %2373 = vst [vmem:[#allocation1 + $0x3] ss:$9 sm:$0xff] %v1821_v47  ;;  %v1833_v43 = vrot.slane %v1405_v41, 1  ;;  %v1834_v59 = vrot.slane %v1405_v41, 2  ;;  %v1835_v56 = vrot.slane %v1405_v41, 3  ;;  %v1836_v47 = vrot.slane %v1405_v41, 4 }
 0x3dc   :  { %2374 = vst [vmem:[#allocation1 + $0x4] ss:$9 sm:$0xff] %v1822_v57  ;;  %v1837_v29 = vrot.slane %v1405_v41, 5  ;;  %v1838_v57 = vrot.slane %v1405_v41, 6  ;;  %v1839_v48 = vrot.slane %v1405_v41, 7  ;;  %v1842_v63 = vrot.slane %v1406_v33, 3 }
 0x3dd   :  { %2375 = vst [vmem:[#allocation1 + $0x5] ss:$9 sm:$0xff] %v1823_v42  ;;  %v1840_v42 = vrot.slane %v1406_v33, 1  ;;  %v1844_v6 = vrot.slane %v1406_v33, 5  ;;  %v1845_v15 = vrot.slane %v1406_v33, 6  ;;  %v1846_v45 = vrot.slane %v1406_v33, 7 }
 0x3de   :  { %2376 = vst [vmem:[#allocation1 + $0x6] ss:$9 sm:$0xff] %v1824_v28  ;;  %v1841_v28 = vrot.slane %v1406_v33, 2  ;;  %v1847_v39 = vrot.slane %v1407_v8, 1  ;;  %v1848_v50 = vrot.slane %v1407_v8, 2  ;;  %v1851_v19 = vrot.slane %v1407_v8, 5 }
 0x3df   :  { %2377 = vst [vmem:[#allocation1 + $0x7] ss:$9 sm:$0xff] %v1825_v46  ;;  %v1843_v46 = vrot.slane %v1406_v33, 4  ;;  %v1852_v17 = vrot.slane %v1407_v8, 6 }
 0x3e6   :  { %v2378_v23 = vld [vmem:[#allocation1] sm:$0xff] }
 0x3e7   :  { %2379 = vst [vmem:[#allocation1] ss:$9 sm:$0xff] %v1404_v26  ;;  %2659 = vperm.xlu0 %3031, %v2378_v23   ;;  %v1849_v23 = vrot.slane %v1407_v8, 3 }
 0x3e8   :  { %2380 = vst [vmem:[#allocation1 + $0x1] ss:$9 sm:$0xff] %v1826_v12  ;;  %v1850_v12 = vrot.slane %v1407_v8, 4 }
 0x3e9   :  { %2381 = vst [vmem:[#allocation1 + $0x2] ss:$9 sm:$0xff] %v1827_v1  ;;  %v2573_v1 = vpop.permute.xlu2 %2572 }
 0x3ea   :  { %2382 = vst [vmem:[#allocation1 + $0x3] ss:$9 sm:$0xff] %v1828_v31  ;;  %v1853_v31 = vrot.slane %v1407_v8, 7 }
 0x3eb   :  { %2383 = vst [vmem:[#allocation1 + $0x4] ss:$9 sm:$0xff] %v1829_v13  ;;  %v2570_v13 = vpop.permute.xlu0 %2569 }
 0x3ec   :  { %2384 = vst [vmem:[#allocation1 + $0x5] ss:$9 sm:$0xff] %v1830_v61  ;;  %v2772_v3 = vperm.slane %v2570_v13, %v4216_v51  ;;  %v2774_v61 = vperm.slane %v2573_v1, %v4219_v14 }
 0x3ed   :  { %2385 = vst [vmem:[#allocation1 + $0x6] ss:$9 sm:$0xff] %v1831_v60 }
 0x3ee   :  { %2386 = vst [vmem:[#allocation1 + $0x7] ss:$9 sm:$0xff] %v1832_v37  ;;  %v2773_v60 = vsel %vm2715_vm2, %v2772_v3, %v4305_v20 }
 0x3ef   :  { %v2775_v37 = vsel %vm2719_vm3, %v2774_v61, %v2773_v60 }
 0x3f5   :  { %v2387_v30 = vld [vmem:[#allocation1] sm:$0xff] }
 0x3f6   :  { %2388 = vst [vmem:[#allocation1] ss:$9 sm:$0xff] %v1405_v41  ;;  %2662 = vperm.xlu2 %3033, %v2387_v30   ;;  %v1408_v41 = vadd.f32 %v3664_v5, %v4166_v52 }
 0x3f7   :  { %2389 = vst [vmem:[#allocation1 + $0x1] ss:$9 sm:$0xff] %v1833_v43 }
 0x3f8   :  { %2390 = vst [vmem:[#allocation1 + $0x2] ss:$9 sm:$0xff] %v1834_v59  ;;  %v1854_v43 = vrot.slane %v1408_v41, 1  ;;  %v1855_v59 = vrot.slane %v1408_v41, 2  ;;  %v1859_v20 = vrot.slane %v1408_v41, 6 }
 0x3f9   :  { %2391 = vst [vmem:[#allocation1 + $0x3] ss:$9 sm:$0xff] %v1835_v56  ;;  %v2576_v56 = vpop.permute.xlu1 %2575 }
 0x3fa   :  { %2392 = vst [vmem:[#allocation1 + $0x4] ss:$9 sm:$0xff] %v1836_v47  ;;  %v1856_v47 = vrot.slane %v1408_v41, 3 }
 0x3fb   :  { %2393 = vst [vmem:[#allocation1 + $0x5] ss:$9 sm:$0xff] %v1837_v29  ;;  %v1857_v29 = vrot.slane %v1408_v41, 4 }
 0x3fc   :  { %2394 = vst [vmem:[#allocation1 + $0x6] ss:$9 sm:$0xff] %v1838_v57  ;;  %v1858_v57 = vrot.slane %v1408_v41, 5 }
 0x3fd   :  { %2395 = vst [vmem:[#allocation1 + $0x7] ss:$9 sm:$0xff] %v1839_v48  ;;  %v2776_v48 = vperm.slane %v2576_v56, %v4223_v4 }
 0x3ff   :  { %v2777_v52 = vsel %vm2723_vm4, %v2776_v48, %v2775_v37 }
 0x404   :  { %v2396_v58 = vld [vmem:[#allocation1] sm:$0xff] }
 0x405   :  { %2397 = vst [vmem:[#allocation1] ss:$9 sm:$0xff] %v1406_v33  ;;  %2665 = vperm.xlu1 %3032, %v2396_v58   ;;  %v1860_v33 = vrot.slane %v1408_v41, 7  ;;  %v2582_v58 = vpop.permute.xlu2 %2581 }
 0x406   :  { %2398 = vst [vmem:[#allocation1 + $0x1] ss:$9 sm:$0xff] %v1840_v42  ;;  %v2579_v42 = vpop.permute.xlu0 %2578 }
 0x407   :  { %2399 = vst [vmem:[#allocation1 + $0x2] ss:$9 sm:$0xff] %v1841_v28  ;;  %v2778_v28 = vperm.slane %v2579_v42, %v4244_v55 }
 0x408   :  { %2400 = vst [vmem:[#allocation1 + $0x3] ss:$9 sm:$0xff] %v1842_v63  ;;  %v2780_v63 = vperm.slane %v2582_v58, %v4234_v7 }
 0x409   :  { %2401 = vst [vmem:[#allocation1 + $0x4] ss:$9 sm:$0xff] %v1843_v46  ;;  %v2779_v46 = vsel %vm2727_vm5, %v2778_v28, %v2777_v52 }
 0x40a   :  { %2402 = vst [vmem:[#allocation1 + $0x5] ss:$9 sm:$0xff] %v1844_v6  ;;  %v1409_v6 = vadd.f32 %v3664_v5, %v4180_v49 }
 0x40b   :  { %2403 = vst [vmem:[#allocation1 + $0x6] ss:$9 sm:$0xff] %v1845_v15  ;;  %v2781_v15 = vsel %vm2731_vm6, %v2780_v63, %v2779_v46 }
 0x40c   :  { %2404 = vst [vmem:[#allocation1 + $0x7] ss:$9 sm:$0xff] %v1846_v45  ;;  %v1861_v45 = vrot.slane %v1409_v6, 1  ;;  %v1867_v49 = vrot.slane %v1409_v6, 7 }
 0x40d   :  { %v2591_v1 = vpop.permute.xlu2 %2590 }
 0x40e   :  { %v2588_v13 = vpop.permute.xlu0 %2587  ;;  %v2786_v61 = vperm.slane %v2591_v1, %v4253_v53 }
 0x40f   :  { %v2784_v3 = vperm.slane %v2588_v13, %v4260_v44 }
 0x413   :  { %v2405_v26 = vld [vmem:[#allocation1] sm:$0xff] }
 0x414   :  { %2406 = vst [vmem:[#allocation1] ss:$9 sm:$0xff] %v1407_v8  ;;  %2668 = vperm.xlu0 %3031, %v2405_v26   ;;  %v1862_v26 = vrot.slane %v1409_v6, 2 }
 0x415   :  { %2407 = vst [vmem:[#allocation1 + $0x1] ss:$9 sm:$0xff] %v1847_v39  ;;  %v2585_v39 = vpop.permute.xlu1 %2584 }
 0x416   :  { %2408 = vst [vmem:[#allocation1 + $0x2] ss:$9 sm:$0xff] %v1848_v50  ;;  %v1863_v50 = vrot.slane %v1409_v6, 3  ;;  %v2597_v52 = vpop.permute.xlu0 %2596 }
 0x417   :  { %2409 = vst [vmem:[#allocation1 + $0x3] ss:$9 sm:$0xff] %v1849_v23  ;;  %v1864_v23 = vrot.slane %v1409_v6, 4  ;;  %v2790_v42 = vperm.slane %v2597_v52, %v4278_v0 }
 0x418   :  { %2410 = vst [vmem:[#allocation1 + $0x4] ss:$9 sm:$0xff] %v1850_v12  ;;  %v1865_v12 = vrot.slane %v1409_v6, 5 }
 0x419   :  { %2411 = vst [vmem:[#allocation1 + $0x5] ss:$9 sm:$0xff] %v1851_v19  ;;  %v2782_v19 = vperm.slane %v2585_v39, %v4240_v32 }
 0x41a   :  { %2412 = vst [vmem:[#allocation1 + $0x6] ss:$9 sm:$0xff] %v1852_v17  ;;  %v1866_v17 = vrot.slane %v1409_v6, 6 }
 0x41b   :  { %2413 = vst [vmem:[#allocation1 + $0x7] ss:$9 sm:$0xff] %v1853_v31  ;;  %v2783_v31 = vsel %vm2735_vm7, %v2782_v19, %v2781_v15 }
 0x41c   :  { %v2785_v60 = vsel %vm2739_vm8, %v2784_v3, %v2783_v31 }
 0x41d   :  { %v2787_v37 = vsel %vm2743_vm9, %v2786_v61, %v2785_v60  ;;  %v2594_v56 = vpop.permute.xlu1 %2593  ;;  %v1412_v60 = vadd.f32 %v3664_v5, %v4188_v21 }
 0x41e   :  { %v2788_v48 = vperm.slane %v2594_v56, %v4256_v54 }
 0x41f   :  { %v1886_v56 = vrot.slane %v1412_v60, 5 }
 0x422   :  { %v2414_v30 = vld [vmem:[#allocation1] sm:$0xff] }
 0x423   :  { %2415 = vst [vmem:[#allocation1] ss:$9 sm:$0xff] %v1408_v41  ;;  %2671 = vperm.xlu2 %3033, %v2414_v30   ;;  %v1410_v41 = vadd.f32 %v3664_v5, %v4190_v36  ;;  %v2789_v36 = vsel %vm2747_vm10, %v2788_v48, %v2787_v37  ;;  %v1882_v37 = vrot.slane %v1412_v60, 1 }
 0x424   :  { %2416 = vst [vmem:[#allocation1 + $0x1] ss:$9 sm:$0xff] %v1854_v43  ;;  %v2791_v63 = vsel %vm2751_vm11, %v2790_v42, %v2789_v36 }
 0x425   :  { %2417 = vst [vmem:[#allocation1 + $0x2] ss:$9 sm:$0xff] %v1855_v59  ;;  %v1868_v43 = vrot.slane %v1410_v41, 1  ;;  %v1869_v59 = vrot.slane %v1410_v41, 2  ;;  %v1874_v58 = vrot.slane %v1410_v41, 7 }
 0x426   :  { %2418 = vst [vmem:[#allocation1 + $0x3] ss:$9 sm:$0xff] %v1856_v47  ;;  %v1870_v47 = vrot.slane %v1410_v41, 3 }
 0x427   :  { %2419 = vst [vmem:[#allocation1 + $0x4] ss:$9 sm:$0xff] %v1857_v29  ;;  %v1871_v29 = vrot.slane %v1410_v41, 4 }
 0x428   :  { %2420 = vst [vmem:[#allocation1 + $0x5] ss:$9 sm:$0xff] %v1858_v57  ;;  %v1872_v57 = vrot.slane %v1410_v41, 5 }
 0x429   :  { %2421 = vst [vmem:[#allocation1 + $0x6] ss:$9 sm:$0xff] %v1859_v20  ;;  %v1873_v20 = vrot.slane %v1410_v41, 6 }
 0x42a   :  { %2422 = vst [vmem:[#allocation1 + $0x7] ss:$9 sm:$0xff] %v1860_v33  ;;  %v2600_v33 = vpop.permute.xlu2 %2599 }
 0x42b   :  { %v2792_v28 = vperm.slane %v2600_v33, %v4271_v62 }
 0x42d   :  { %v2793_v46 = vsel %vm2755_vm12, %v2792_v28, %v2791_v63 }
 0x431   :  { %v2423_v8 = vld [vmem:[#allocation1] sm:$0xff] }
 0x432   :  { %2674 = vperm.xlu1 %3032, %v2423_v8   ;;  %2424 = vst [vmem:[#allocation1] ss:$9 sm:$0xff] %v1409_v6  ;;  %v1411_v6 = vadd.f32 %v3664_v5, %v4177_v24 }
 0x433   :  { %2425 = vst [vmem:[#allocation1 + $0x1] ss:$9 sm:$0xff] %v1861_v45 }
 0x434   :  { %2426 = vst [vmem:[#allocation1 + $0x2] ss:$9 sm:$0xff] %v1862_v26  ;;  %v1875_v15 = vrot.slane %v1411_v6, 1  ;;  %v1876_v8 = vrot.slane %v1411_v6, 2  ;;  %v2603_v26 = vpop.permute.xlu1 %2602  ;;  %v1877_v39 = vrot.slane %v1411_v6, 3  ;;  %v1880_v19 = vrot.slane %v1411_v6, 6 }
 0x435   :  { %2427 = vst [vmem:[#allocation1 + $0x3] ss:$9 sm:$0xff] %v1863_v50  ;;  %v1878_v50 = vrot.slane %v1411_v6, 4  ;;  %v1881_v1 = vrot.slane %v1411_v6, 7 }
 0x436   :  { %2428 = vst [vmem:[#allocation1 + $0x4] ss:$9 sm:$0xff] %v1864_v23  ;;  %v1879_v23 = vrot.slane %v1411_v6, 5 }
 0x437   :  { %2429 = vst [vmem:[#allocation1 + $0x5] ss:$9 sm:$0xff] %v1865_v12  ;;  %v2794_v12 = vperm.slane %v2603_v26, %v4274_v22 }
 0x438   :  { %2430 = vst [vmem:[#allocation1 + $0x6] ss:$9 sm:$0xff] %v1866_v17  ;;  %v2609_v17 = vpop.permute.xlu2 %2608 }
 0x439   :  { %2431 = vst [vmem:[#allocation1 + $0x7] ss:$9 sm:$0xff] %v1867_v49  ;;  %v2795_v24 = vsel %vm2759_vm13, %v2794_v12, %v2793_v46  ;;  %v2606_v49 = vpop.permute.xlu0 %2605  ;;  %v2798_v13 = vperm.slane %v2609_v17, %v4287_v40 }
 0x43a   :  { %v2796_v31 = vperm.slane %v2606_v49, %v4291_v18 }
 0x43c   :  { %v2797_v3 = vsel %vm2763_vm14, %v2796_v31, %v2795_v24 }
 0x43d   :  { %v4353_v61 = vsel %vm2767_vm15, %v2798_v13, %v2797_v3 }
 0x440   :  { %v2432_v30 = vld [vmem:[#allocation1] sm:$0xff] }
 0x441   :  { %2677 = vperm.xlu0 %3031, %v2432_v30   ;;  %2433 = vst [vmem:[#allocation1] ss:$9 sm:$0xff] %v1410_v41  ;;  %v1884_v30 = vrot.slane %v1412_v60, 3  ;;  %v2615_v48 = vpop.permute.xlu0 %2614 }
 0x442   :  { %2434 = vst [vmem:[#allocation1 + $0x1] ss:$9 sm:$0xff] %v1868_v43  ;;  %v1883_v43 = vrot.slane %v1412_v60, 2  ;;  %v2801_v21 = vperm.slane %v2615_v48, %v4213_v2 }
 0x443   :  { %2435 = vst [vmem:[#allocation1 + $0x2] ss:$9 sm:$0xff] %v1869_v59  ;;  %v1885_v59 = vrot.slane %v1412_v60, 4 }
 0x444   :  { %2436 = vst [vmem:[#allocation1 + $0x3] ss:$9 sm:$0xff] %v1870_v47  ;;  %v2612_v47 = vpop.permute.xlu1 %2611 }
 0x445   :  { %2437 = vst [vmem:[#allocation1 + $0x4] ss:$9 sm:$0xff] %v1871_v29  ;;  %v1887_v29 = vrot.slane %v1412_v60, 6 }
 0x446   :  { %2438 = vst [vmem:[#allocation1 + $0x5] ss:$9 sm:$0xff] %v1872_v57  ;;  %v1888_v57 = vrot.slane %v1412_v60, 7 }
 0x447   :  { %2439 = vst [vmem:[#allocation1 + $0x6] ss:$9 sm:$0xff] %v1873_v20  ;;  %v2800_v20 = vperm.slane %v2612_v47, %v4208_v34 }
 0x448   :  { %2440 = vst [vmem:[#allocation1 + $0x7] ss:$9 sm:$0xff] %v1874_v58  ;;  %v1413_v58 = vadd.f32 %v3664_v5, %v4199_v16  ;;  %v1414_v16 = vadd.f32 %v3664_v5, %v4186_v27 }
 0x449   :  { %v4360_v33 = vsel %vm2711_vm1, %v2801_v21, %v2800_v20 }
 0x44a   :  { %v1889_v36 = vrot.slane %v1413_v58, 1  ;;  %v1890_v42 = vrot.slane %v1413_v58, 2  ;;  %v1891_v28 = vrot.slane %v1413_v58, 3  ;;  %v1892_v63 = vrot.slane %v1413_v58, 4 }
 0x44b   :  { %v1893_v46 = vrot.slane %v1413_v58, 5  ;;  %v1897_v26 = vrot.slane %v1414_v16, 2  ;;  %v1900_v12 = vrot.slane %v1414_v16, 5  ;;  %v1902_v17 = vrot.slane %v1414_v16, 7 }
 0x44f   :  { %v2441_v45 = vld [vmem:[#allocation1] sm:$0xff] }
 0x450   :  { %2680 = vperm.xlu2 %3033, %v2441_v45   ;;  %2442 = vst [vmem:[#allocation1] ss:$9 sm:$0xff] %v1411_v6  ;;  %v1894_v6 = vrot.slane %v1413_v58, 6  ;;  %v1896_v45 = vrot.slane %v1414_v16, 1 }
 0x451   :  { %2443 = vst [vmem:[#allocation1 + $0x1] ss:$9 sm:$0xff] %v1875_v15  ;;  %v1895_v15 = vrot.slane %v1413_v58, 7 }
 0x452   :  { %2444 = vst [vmem:[#allocation1 + $0x2] ss:$9 sm:$0xff] %v1876_v8 }
 0x453   :  { %2445 = vst [vmem:[#allocation1 + $0x3] ss:$9 sm:$0xff] %v1877_v39  ;;  %v1898_v39 = vrot.slane %v1414_v16, 3 }
 0x454   :  { %2446 = vst [vmem:[#allocation1 + $0x4] ss:$9 sm:$0xff] %v1878_v50  ;;  %v1899_v50 = vrot.slane %v1414_v16, 4 }
 0x455   :  { %2447 = vst [vmem:[#allocation1 + $0x5] ss:$9 sm:$0xff] %v1879_v23  ;;  %v2862_v23 = vrot.slane %v4353_v61, 7 }
 0x456   :  { %2448 = vst [vmem:[#allocation1 + $0x6] ss:$9 sm:$0xff] %v1880_v19  ;;  %v1901_v19 = vrot.slane %v1414_v16, 6 }
 0x457   :  { %2449 = vst [vmem:[#allocation1 + $0x7] ss:$9 sm:$0xff] %v1881_v1  ;;  %v4368_v27 = vsel %vm2865_vm0, %v4297_v10, %v2862_v23  ;;  %v1415_v1 = vadd.f32 %v3664_v5, %v4197_v35  ;;  %v1416_v35 = vadd.f32 %v3664_v5, %v4205_v25  ;;  %v1417_v25 = vadd.f32 %v3664_v5, %v4192_v38 }
 0x458   :  { %v1418_v38 = vadd.f32 %v3664_v5, %v4314_v11  ;;  %v2621_v5 = vpop.permute.xlu1 %2620  ;;  %v2624_v11 = vpop.permute.xlu0 %2623 }
 0x459   :  { %v1903_v24 = vrot.slane %v1415_v1, 1  ;;  %v1904_v31 = vrot.slane %v1415_v1, 2  ;;  %v1905_v13 = vrot.slane %v1415_v1, 3  ;;  %v1906_v3 = vrot.slane %v1415_v1, 4 }
 0x45a   :  { %v1907_v61 = vrot.slane %v1415_v1, 5  ;;  %v1910_v10 = vrot.slane %v1416_v35, 1  ;;  %v1915_v47 = vrot.slane %v1416_v35, 6  ;;  %v1918_v20 = vrot.slane %v1417_v25, 2 }
 0x45b   :  { %v1919_v21 = vrot.slane %v1417_v25, 3 }
 0x45e   :  { %v2450_v41 = vld [vmem:[#allocation1] sm:$0xff] }
 0x45f   :  { %2683 = vperm.xlu1 %3032, %v2450_v41   ;;  %2451 = vst [vmem:[#allocation1] ss:$9 sm:$0xff] %v1412_v60  ;;  %v1908_v60 = vrot.slane %v1415_v1, 6 }
 0x460   :  { %2452 = vst [vmem:[#allocation1 + $0x1] ss:$9 sm:$0xff] %v1882_v37  ;;  %v1909_v37 = vrot.slane %v1415_v1, 7  ;;  %v2633_v23 = vpop.permute.xlu0 %2632 }
 0x461   :  { %2453 = vst [vmem:[#allocation1 + $0x2] ss:$9 sm:$0xff] %v1883_v43  ;;  %v1911_v43 = vrot.slane %v1416_v35, 2 }
 0x462   :  { %2454 = vst [vmem:[#allocation1 + $0x3] ss:$9 sm:$0xff] %v1884_v30  ;;  %v1912_v30 = vrot.slane %v1416_v35, 3 }
 0x463   :  { %2455 = vst [vmem:[#allocation1 + $0x4] ss:$9 sm:$0xff] %v1885_v59  ;;  %v1913_v59 = vrot.slane %v1416_v35, 4 }
 0x464   :  { %2456 = vst [vmem:[#allocation1 + $0x5] ss:$9 sm:$0xff] %v1886_v56  ;;  %v1914_v56 = vrot.slane %v1416_v35, 5 }
 0x465   :  { %2457 = vst [vmem:[#allocation1 + $0x6] ss:$9 sm:$0xff] %v1887_v29  ;;  %v1916_v29 = vrot.slane %v1416_v35, 7 }
 0x466   :  { %2458 = vst [vmem:[#allocation1 + $0x7] ss:$9 sm:$0xff] %v1888_v57  ;;  %v1917_v57 = vrot.slane %v1417_v25, 1 }
 0x46d   :  { %v2459_v52 = vld [vmem:[#allocation1] sm:$0xff] }
 0x46e   :  { %2686 = vperm.xlu0 %3031, %v2459_v52   ;;  %2460 = vst [vmem:[#allocation1] ss:$9 sm:$0xff] %v1413_v58  ;;  %v1920_v58 = vrot.slane %v1417_v25, 4  ;;  %v1922_v52 = vrot.slane %v1417_v25, 6 }
 0x46f   :  { %2461 = vst [vmem:[#allocation1 + $0x1] ss:$9 sm:$0xff] %v1889_v36  ;;  %v1921_v36 = vrot.slane %v1417_v25, 5 }
 0x470   :  { %2462 = vst [vmem:[#allocation1 + $0x2] ss:$9 sm:$0xff] %v1890_v42  ;;  %v1923_v42 = vrot.slane %v1417_v25, 7 }
 0x471   :  { %2463 = vst [vmem:[#allocation1 + $0x3] ss:$9 sm:$0xff] %v1891_v28  ;;  %v1924_v28 = vrot.slane %v1418_v38, 1 }
 0x472   :  { %2464 = vst [vmem:[#allocation1 + $0x4] ss:$9 sm:$0xff] %v1892_v63 }
 0x473   :  { %2465 = vst [vmem:[#allocation1 + $0x5] ss:$9 sm:$0xff] %v1893_v46  ;;  %v1925_v46 = vrot.slane %v1418_v38, 2 }
 0x474   :  { %2466 = vst [vmem:[#allocation1 + $0x6] ss:$9 sm:$0xff] %v1894_v6  ;;  %v1926_v6 = vrot.slane %v1418_v38, 3 }
 0x475   :  { %2467 = vst [vmem:[#allocation1 + $0x7] ss:$9 sm:$0xff] %v1895_v15  ;;  %v1927_v15 = vrot.slane %v1418_v38, 4 }
 0x47c   :  { %v2468_v8 = vld [vmem:[#allocation1] sm:$0xff] }
 0x47d   :  { %2689 = vperm.xlu2 %3033, %v2468_v8   ;;  %2469 = vst [vmem:[#allocation1] ss:$9 sm:$0xff] %v1414_v16  ;;  %v1928_v16 = vrot.slane %v1418_v38, 5  ;;  %v1930_v8 = vrot.slane %v1418_v38, 7 }
 0x47e   :  { %2470 = vst [vmem:[#allocation1 + $0x1] ss:$9 sm:$0xff] %v1896_v45  ;;  %v1929_v45 = vrot.slane %v1418_v38, 6 }
 0x47f   :  { %2471 = vst [vmem:[#allocation1 + $0x2] ss:$9 sm:$0xff] %v1897_v26 }
 0x480   :  { %2472 = vst [vmem:[#allocation1 + $0x3] ss:$9 sm:$0xff] %v1898_v39  ;;  %v2618_v39 = vpop.permute.xlu2 %2617 }
 0x481   :  { %2473 = vst [vmem:[#allocation1 + $0x4] ss:$9 sm:$0xff] %v1899_v50  ;;  %v2630_v50 = vpop.permute.xlu1 %2629 }
 0x482   :  { %2474 = vst [vmem:[#allocation1 + $0x5] ss:$9 sm:$0xff] %v1900_v12 }
 0x483   :  { %2475 = vst [vmem:[#allocation1 + $0x6] ss:$9 sm:$0xff] %v1901_v19 }
 0x484   :  { %2476 = vst [vmem:[#allocation1 + $0x7] ss:$9 sm:$0xff] %v1902_v17  ;;  %v2642_v17 = vpop.permute.xlu0 %2641 }
 0x488   :  { %v2627_v12 = vpop.permute.xlu2 %2626 }
 0x489   :  { %v2639_v19 = vpop.permute.xlu1 %2638 }
 0x48b   :  { %v2477_v49 = vld [vmem:[#allocation1] sm:$0xff] }
 0x48c   :  { %2692 = vperm.xlu1 %3032, %v2477_v49   ;;  %2478 = vst [vmem:[#allocation1] ss:$9 sm:$0xff] %v1415_v1 }
 0x48d   :  { %2479 = vst [vmem:[#allocation1 + $0x1] ss:$9 sm:$0xff] %v1903_v24 }
 0x48e   :  { %2480 = vst [vmem:[#allocation1 + $0x2] ss:$9 sm:$0xff] %v1904_v31  ;;  %v4378_v31 = vpop.permute.xlu0 %2650 }
 0x48f   :  { %2481 = vst [vmem:[#allocation1 + $0x3] ss:$9 sm:$0xff] %v1905_v13 }
 0x490   :  { %2482 = vst [vmem:[#allocation1 + $0x4] ss:$9 sm:$0xff] %v1906_v3  ;;  %v2636_v1 = vpop.permute.xlu2 %2635 }
 0x491   :  { %2483 = vst [vmem:[#allocation1 + $0x5] ss:$9 sm:$0xff] %v1907_v61  ;;  %v2648_v24 = vpop.permute.xlu1 %2647 }
 0x492   :  { %2484 = vst [vmem:[#allocation1 + $0x6] ss:$9 sm:$0xff] %v1908_v60 }
 0x493   :  { %2485 = vst [vmem:[#allocation1 + $0x7] ss:$9 sm:$0xff] %v1909_v37 }
 0x496   :  { %v2660_v61 = vpop.permute.xlu0 %2659 }
 0x498   :  { %v2645_v49 = vpop.permute.xlu2 %2644 }
 0x499   :  { %v4380_v13 = vpop.permute.xlu1 %2656 }
 0x49a   :  { %v2486_v41 = vld [vmem:[#allocation1] sm:$0xff] }
 0x49b   :  { %2695 = vperm.xlu0 %3031, %v2486_v41   ;;  %2487 = vst [vmem:[#allocation1] ss:$9 sm:$0xff] %v1416_v35 }
 0x49c   :  { %2488 = vst [vmem:[#allocation1 + $0x1] ss:$9 sm:$0xff] %v1910_v10  ;;  %v2803_v10 = vperm.slane %v2618_v39, %v4216_v51 }
 0x49d   :  { %2489 = vst [vmem:[#allocation1 + $0x2] ss:$9 sm:$0xff] %v1911_v43  ;;  %v2807_v43 = vperm.slane %v2624_v11, %v4223_v4 }
 0x49e   :  { %2490 = vst [vmem:[#allocation1 + $0x3] ss:$9 sm:$0xff] %v1912_v30  ;;  %v2669_v35 = vpop.permute.xlu0 %2668  ;;  %v2804_v41 = vsel %vm2715_vm2, %v2803_v10, %v4360_v33  ;;  %v2805_v30 = vperm.slane %v2621_v5, %v4219_v14  ;;  %v2811_v33 = vperm.slane %v2630_v50, %v4234_v7 }
 0x49f   :  { %2491 = vst [vmem:[#allocation1 + $0x4] ss:$9 sm:$0xff] %v1913_v59 }
 0x4a0   :  { %2492 = vst [vmem:[#allocation1 + $0x5] ss:$9 sm:$0xff] %v1914_v56  ;;  %v4382_v3 = vpop.permute.xlu2 %2653 }
 0x4a1   :  { %2493 = vst [vmem:[#allocation1 + $0x6] ss:$9 sm:$0xff] %v1915_v47  ;;  %v2666_v60 = vpop.permute.xlu1 %2665  ;;  %v2806_v47 = vsel %vm2719_vm3, %v2805_v30, %v2804_v41  ;;  %v2827_v30 = vperm.slane %v4382_v3, %v4291_v18 }
 0x4a2   :  { %2494 = vst [vmem:[#allocation1 + $0x7] ss:$9 sm:$0xff] %v1916_v29  ;;  %v2808_v29 = vsel %vm2723_vm4, %v2807_v43, %v2806_v47 }
 0x4a8   :  { %v2663_v37 = vpop.permute.xlu2 %2662 }
 0x4a9   :  { %v2495_v48 = vld [vmem:[#allocation1] sm:$0xff]  ;;  %v2675_v59 = vpop.permute.xlu1 %2674 }
 0x4aa   :  { %2698 = vperm.xlu2 %3033, %v2495_v48   ;;  %2496 = vst [vmem:[#allocation1] ss:$9 sm:$0xff] %v1417_v25  ;;  %v2809_v25 = vperm.slane %v2627_v12, %v4244_v55 }
 0x4ab   :  { %2497 = vst [vmem:[#allocation1 + $0x1] ss:$9 sm:$0xff] %v1917_v57 }
 0x4ac   :  { %2498 = vst [vmem:[#allocation1 + $0x2] ss:$9 sm:$0xff] %v1918_v20  ;;  %v2810_v48 = vsel %vm2727_vm5, %v2809_v25, %v2808_v29  ;;  %v2813_v20 = vperm.slane %v2633_v23, %v4240_v32 }
 0x4ad   :  { %2499 = vst [vmem:[#allocation1 + $0x3] ss:$9 sm:$0xff] %v1919_v21  ;;  %v2831_v21 = vperm.slane %v2660_v61, %v4208_v34  ;;  %v2825_v61 = vperm.slane %v4378_v31, %v4274_v22 }
 0x4ae   :  { %2500 = vst [vmem:[#allocation1 + $0x4] ss:$9 sm:$0xff] %v1920_v58  ;;  %v2834_v58 = vperm.slane %v2666_v60, %v4216_v51  ;;  %v2840_v51 = vperm.slane %v2675_v59, %v4244_v55 }
 0x4af   :  { %2501 = vst [vmem:[#allocation1 + $0x5] ss:$9 sm:$0xff] %v1921_v36  ;;  %v2832_v36 = vperm.slane %v2663_v37, %v4213_v2 }
 0x4b0   :  { %2502 = vst [vmem:[#allocation1 + $0x6] ss:$9 sm:$0xff] %v1922_v52  ;;  %v2672_v56 = vpop.permute.xlu2 %2671  ;;  %v2836_v52 = vperm.slane %v2669_v35, %v4219_v14  ;;  %v2819_v14 = vperm.slane %v2642_v17, %v4256_v54  ;;  %v2823_v35 = vperm.slane %v2648_v24, %v4271_v62 }
 0x4b1   :  { %2503 = vst [vmem:[#allocation1 + $0x7] ss:$9 sm:$0xff] %v1923_v42 }
 0x4b3   :  { %v2678_v57 = vpop.permute.xlu0 %2677 }
 0x4b8   :  { %v2504_v63 = vld [vmem:[#allocation1] sm:$0xff] }
 0x4b9   :  { %2701 = vperm.xlu1 %3032, %v2504_v63   ;;  %2505 = vst [vmem:[#allocation1] ss:$9 sm:$0xff] %v1418_v38  ;;  %v2812_v38 = vsel %vm2731_vm6, %v2811_v33, %v2810_v48 }
 0x4ba   :  { %2506 = vst [vmem:[#allocation1 + $0x1] ss:$9 sm:$0xff] %v1924_v28  ;;  %v2681_v28 = vpop.permute.xlu2 %2680  ;;  %v2814_v63 = vsel %vm2735_vm7, %v2813_v20, %v2812_v38 }
 0x4bb   :  { %2507 = vst [vmem:[#allocation1 + $0x2] ss:$9 sm:$0xff] %v1925_v46  ;;  %v2833_v46 = vsel %vm2711_vm1, %v2832_v36, %v2831_v21  ;;  %vm2867_vm1 = vcmask 1042434  }
 0x4bc   :  { %2508 = vst [vmem:[#allocation1 + $0x3] ss:$9 sm:$0xff] %v1926_v6  ;;  %v2815_v6 = vperm.slane %v2636_v1, %v4260_v44  ;;  %v2835_v34 = vsel %vm2715_vm2, %v2834_v58, %v2833_v46  ;;  %vm2869_vm2 = vcmask 1041408  }
 0x4bd   :  { %2509 = vst [vmem:[#allocation1 + $0x4] ss:$9 sm:$0xff] %v1927_v15  ;;  %v2837_v15 = vsel %vm2719_vm3, %v2836_v52, %v2835_v34  ;;  %vm2874_vm3 = vcmp.lt.s32.totalorder %v2706_v9, 512 }
 0x4be   :  { %2510 = vst [vmem:[#allocation1 + $0x5] ss:$9 sm:$0xff] %v1928_v16  ;;  %v2816_v2 = vsel %vm2739_vm8, %v2815_v6, %v2814_v63 }
 0x4bf   :  { %2511 = vst [vmem:[#allocation1 + $0x6] ss:$9 sm:$0xff] %v1929_v45  ;;  %v2838_v45 = vperm.slane %v2672_v56, %v4223_v4  ;;  %v2821_v4 = vperm.slane %v2645_v49, %v4278_v0 }
 0x4c0   :  { %2512 = vst [vmem:[#allocation1 + $0x7] ss:$9 sm:$0xff] %v1930_v8  ;;  %v2842_v8 = vperm.slane %v2678_v57, %v4234_v7  ;;  %v2844_v7 = vperm.slane %v2681_v28, %v4240_v32 }
 0x4c1   :  { %v2839_v5 = vsel %vm2723_vm4, %v2838_v45, %v2837_v15 }
 0x4c2   :  { %v2841_v39 = vsel %vm2727_vm5, %v2840_v51, %v2839_v5 }
 0x4c3   :  { %v2843_v23 = vsel %vm2731_vm6, %v2842_v8, %v2841_v39 }
 0x4c4   :  { %v2845_v60 = vsel %vm2735_vm7, %v2844_v7, %v2843_v23 }
 0x4c7   :  { %v2513_v26 = vld [vmem:[#allocation1] sm:$0xff] }
 0x4c8   :  { %2704 = vperm.xlu0 %3031, %v2513_v26   ;;  %v2817_v26 = vperm.slane %v2639_v19, %v4253_v53 }
 0x4ca   :  { %v2818_v11 = vsel %vm2743_vm9, %v2817_v26, %v2816_v2 }
 0x4cb   :  { %v2820_v55 = vsel %vm2747_vm10, %v2819_v14, %v2818_v11 }
 0x4cc   :  { %v2822_v1 = vsel %vm2751_vm11, %v2821_v4, %v2820_v55 }
 0x4cd   :  { %v2824_v32 = vsel %vm2755_vm12, %v2823_v35, %v2822_v1 }
 0x4ce   :  { %v2826_v43 = vsel %vm2759_vm13, %v2825_v61, %v2824_v32 }
 0x4cf   :  { %v2828_v47 = vsel %vm2763_vm14, %v2827_v30, %v2826_v43 }
 0x4d1   :  { %v2684_v42 = vpop.permute.xlu1 %2683 }
 0x4d2   :  { %v2846_v17 = vperm.slane %v2684_v42, %v4260_v44 }
 0x4d4   :  { %v2847_v10 = vsel %vm2739_vm8, %v2846_v17, %v2845_v60 }
 0x4d7   :  { %v2690_v12 = vpop.permute.xlu2 %2689 }
 0x4e0   :  { %v2687_v16 = vpop.permute.xlu0 %2686 }
 0x4e1   :  { %v2848_v19 = vperm.slane %v2687_v16, %v4253_v53  ;;  %v2850_v53 = vperm.slane %v2690_v12, %v4256_v54  ;;  %v2829_v54 = vperm.slane %v4380_v13, %v4287_v40 }
 0x4e3   :  { %v2849_v44 = vsel %vm2743_vm9, %v2848_v19, %v2847_v10  ;;  %v2830_v57 = vsel %vm2767_vm15, %v2829_v54, %v2828_v47 }
 0x4e4   :  { %v2851_v24 = vsel %vm2747_vm10, %v2850_v53, %v2849_v44 }
 0x4fe   :  { %v2693_v50 = vpop.permute.xlu1 %2692 }
 0x4ff   :  { %v2852_v49 = vperm.slane %v2693_v50, %v4278_v0 }
 0x501   :  { %v2853_v56 = vsel %vm2751_vm11, %v2852_v49, %v2851_v24 }
 0x504   :  { %v2699_v59 = vpop.permute.xlu2 %2698 }
 0x50d   :  { %v2696_v37 = vpop.permute.xlu0 %2695 }
 0x50e   :  { %v2854_v41 = vperm.slane %v2696_v37, %v4271_v62  ;;  %v2856_v62 = vperm.slane %v2699_v59, %v4274_v22 }
 0x510   :  { %v2855_v0 = vsel %vm2755_vm12, %v2854_v41, %v2853_v56 }
 0x511   :  { %v2857_v3 = vsel %vm2759_vm13, %v2856_v62, %v2855_v0 }
 0x52b   :  { %v2702_v31 = vpop.permute.xlu1 %2701 }
 0x52c   :  { %v2858_v29 = vperm.slane %v2702_v31, %v4291_v18  ;;  %v2863_v18 = vrot.slane %v2830_v57, 6 }
 0x52e   :  { %v2859_v20 = vsel %vm2763_vm14, %v2858_v29, %v2857_v3 }
 0x53a   :  { %v2705_v25 = vpop.permute.xlu0 %2704 }
 0x53b   :  { %v2860_v48 = vperm.slane %v2705_v25, %v4287_v40 }
 0x53d   :  { %v2861_v21 = vsel %vm2767_vm15, %v2860_v48, %v2859_v20 }
 0x53e   :  { %v2864_v22 = vrot.slane %v2861_v21, 5 }
 0x540   :  { %v2868_v13 = vsel %vm2867_vm1, %v2863_v18, %v2864_v22 }
 0x541   :  { %v2870_v40 = vsel %vm2869_vm2, %v4368_v27, %v2868_v13 }
 0x542   :  { %2876 = vst.msk [vmem:[#allocation2] sm:$0xf] %vm2874_vm3, %v2870_v40 }
 0x543   :  { %2887 = dma.vmem_to_hbm [thread:$0]  %s2883_s7, 64, %s2885_s10, [#allocation3]  }
 0x544   :  { %3064 = dma.done.wait [#allocation3], 64  }
 0x545   :  { %3065 = vsyncadd [#allocation3], 4294967232 }
 0x546   :  { %2892 = vsyncpa [#allocation3], 1 }

</bundles_post_ra>
